<compile_context>
chip_gen: v6e
topology: v6e:2x2x1
jax: 0.10.0
libtpu: 0.0.40
codegen_flags: <defaults>
</compile_context>

<pallas_src>
import functools

import jax
import jax.numpy as jnp
import numpy as np
from jax import lax
from jax.experimental import pallas as pl
from jax.experimental.pallas import tpu as pltpu


# ----------------------------- Pallas kernels ------------------------------

def _lstm_cell_step(x_t, h_ref, c_ref, w_ref, b_ref, valid, H):
    """One LSTM cell update for one direction at one timestep.

    x_t:   (B, Din) f32        current input rows
    h_ref: (B, H)   f32 VMEM   hidden state (updated in place)
    c_ref: (B, H)   f32 VMEM   cell state   (updated in place)
    w_ref: (Din+H, 4H) bf16    stacked [W_ih; W_hh], PyTorch gate order (i,f,g,o)
    b_ref: (1, 4H)  f32        b_ih + b_hh
    valid: (B, 1)   bool       len > t mask (packed-sequence emulation)
    Returns the masked per-step output (B, H) f32.
    """
    h = h_ref[...]
    c = c_ref[...]
    # Single stacked matmul: [x_t, h] @ [W_ih; W_hh]  (one MXU push per step,
    # bf16 operands, f32 accumulation).
    xh = jnp.concatenate([x_t, h], axis=-1).astype(jnp.bfloat16)
    gates = (jnp.dot(xh, w_ref[...], preferred_element_type=jnp.float32)
             + b_ref[...])                                   # (B, 4H) f32
    i_g = jax.nn.sigmoid(gates[:, 0 * H:1 * H])
    f_g = jax.nn.sigmoid(gates[:, 1 * H:2 * H])
    g_g = jnp.tanh(gates[:, 2 * H:3 * H])
    o_g = jax.nn.sigmoid(gates[:, 3 * H:4 * H])
    c_new = f_g * c + i_g * g_g
    h_new = o_g * jnp.tanh(c_new)
    h_ref[...] = jnp.where(valid, h_new, h)      # freeze state past sequence end
    c_ref[...] = jnp.where(valid, c_new, c)
    return jnp.where(valid, h_new, 0.0)          # padded steps emit zeros


def _bilstm_mid_kernel(x_ref, lens_ref, w_f_ref, b_f_ref, w_b_ref, b_b_ref,
                       out_ref, h_f, c_f, h_b, c_b, *, H):
    """Fused fwd+bwd LSTM layer; full time loop in-kernel; writes (T, B, 2H)."""
    T = x_ref.shape[0]
    for r in (h_f, c_f, h_b, c_b):
        r[...] = jnp.zeros_like(r)
    lens = lens_ref[...]                         # (B, 1) int32

    def step(t, carry):
        rt = T - 1 - t
        o_f = _lstm_cell_step(x_ref[t], h_f, c_f, w_f_ref, b_f_ref, lens > t, H)
        o_b = _lstm_cell_step(x_ref[rt], h_b, c_b, w_b_ref, b_b_ref, lens > rt, H)
        out_ref[t, :, pl.ds(0, H)] = o_f.astype(out_ref.dtype)
        out_ref[rt, :, pl.ds(H, H)] = o_b.astype(out_ref.dtype)
        return carry

    lax.fori_loop(0, T, step, 0, unroll=True)


def _bilstm_last_kernel(x_ref, lens_ref, w_f_ref, b_f_ref, w_b_ref, b_b_ref,
                        fc_w_ref, fc_b_ref, out_ref, h_f, c_f, h_b, c_b, *, H):
    """Last fused fwd+bwd layer: only hn is needed, so the per-step output is
    skipped and the final Linear is folded into the same kernel."""
    T = x_ref.shape[0]
    for r in (h_f, c_f, h_b, c_b):
        r[...] = jnp.zeros_like(r)
    lens = lens_ref[...]

    def step(t, carry):
        rt = T - 1 - t
        _lstm_cell_step(x_ref[t], h_f, c_f, w_f_ref, b_f_ref, lens > t, H)
        _lstm_cell_step(x_ref[rt], h_b, c_b, w_b_ref, b_b_ref, lens > rt, H)
        return carry

    lax.fori_loop(0, T, step, 0, unroll=True)

    # hidden = cat(hn_fwd, hn_bwd); dropout -> identity; fc in f32.
    hidden = jnp.concatenate([h_f[...], h_b[...]], axis=-1)      # (B, 2H)
    out_ref[...] = (jnp.dot(hidden, fc_w_ref[...],
                            preferred_element_type=jnp.float32) + fc_b_ref[...])


_VMEM = functools.partial(pl.BlockSpec, memory_space=pltpu.MemorySpace.VMEM)


def bilstm_mid_layer(x_tbd, lens, w_f, b_f, w_b, b_b):
    """x_tbd: (T, B, Din) f32 time-major. Returns fused output (T, B, 2H) f32."""
    T, B, _ = x_tbd.shape
    H = w_f.shape[1] // 4
    return pl.pallas_call(
        functools.partial(_bilstm_mid_kernel, H=H),
        out_shape=jax.ShapeDtypeStruct((T, B, 2 * H), jnp.float32),
        in_specs=[_VMEM()] * 6,
        out_specs=_VMEM(),
        scratch_shapes=[pltpu.VMEM((B, H), jnp.float32)] * 4,
    )(x_tbd, lens, w_f, b_f, w_b, b_b)


def bilstm_last_layer(x_tbd, lens, w_f, b_f, w_b, b_b, fc_w, fc_b):
    """Last layer + folded Linear. Returns logits (B, out_dim) f32."""
    T, B, _ = x_tbd.shape
    H = w_f.shape[1] // 4
    out_dim = fc_w.shape[1]
    return pl.pallas_call(
        functools.partial(_bilstm_last_kernel, H=H),
        out_shape=jax.ShapeDtypeStruct((B, out_dim), jnp.float32),
        in_specs=[_VMEM()] * 8,
        out_specs=_VMEM(),
        scratch_shapes=[pltpu.VMEM((B, H), jnp.float32)] * 4,
    )(x_tbd, lens, w_f, b_f, w_b, b_b, fc_w, fc_b)


# ------------------------------- Parameters --------------------------------

def init_params(key, input_dim, hidden_dim, layer_dim, output_dim):
    """Deterministic init mirroring nn.LSTM / nn.Linear uniform(-1/sqrt(H), 1/sqrt(H))."""
    k_lstm = 1.0 / np.sqrt(hidden_dim)
    params = {"layers": []}
    keys = iter(jax.random.split(key, layer_dim * 2 * 4 + 2))

    def u(shape, k):
        return jax.random.uniform(next(keys), shape, jnp.float32, -k, k)

    for layer in range(layer_dim):
        d_in = input_dim if layer == 0 else 2 * hidden_dim
        layer_params = []
        for _direction in range(2):   # forward, backward
            w_ih = u((d_in, 4 * hidden_dim), k_lstm)
            w_hh = u((hidden_dim, 4 * hidden_dim), k_lstm)
            b = (u((1, 4 * hidden_dim), k_lstm)
                 + u((1, 4 * hidden_dim), k_lstm))   # b_ih + b_hh
            layer_params.extend([w_ih, w_hh, b])
        params["layers"].append(tuple(layer_params))

    k_fc = 1.0 / np.sqrt(2 * hidden_dim)
    params["fc_w"] = u((2 * hidden_dim, output_dim), k_fc)
    params["fc_b"] = u((1, output_dim), k_fc)
    return params


# ------------------------------ Model forward -------------------------------

def lstm_model_forward(params, x, x_length):
    """x: (B, T, input_dim), x_length: (B,) int32.  Returns (B, output_dim)."""
    x = x.astype(jnp.float32)
    B = x.shape[0]
    # dropout (p=0.5) -> identity in eval mode
    order = jnp.argsort(-x_length)                 # torch.sort(descending=True) perm
    x = x[order]
    lens = x_length[order].astype(jnp.int32)

    # Pad batch to a sublane multiple (8); pad rows get length 0 so the in-kernel
    # masking keeps them at zero state/output throughout.
    B_pad = max(8, -(-B // 8) * 8)
    if B_pad != B:
        x = jnp.pad(x, ((0, B_pad - B), (0, 0), (0, 0)))
        lens = jnp.pad(lens, (0, B_pad - B))

    # One tiny time-major relayout of the raw input; all layer activations are
    # produced and consumed time-major (T, B, D) with no XLA transposes/concats.
    layer_in = jnp.transpose(x, (1, 0, 2))
    lens2 = lens.reshape(-1, 1)

    # Pre-stack [W_ih; W_hh] once per direction, store bf16 (MXU-native operands);
    # biases, states and all element-wise gate math stay f32 inside the kernels.
    stacked = []
    for (w_ih_f, w_hh_f, b_f, w_ih_b, w_hh_b, b_b) in params["layers"]:
        stacked.append((
            jnp.concatenate([w_ih_f, w_hh_f], axis=0).astype(jnp.bfloat16), b_f,
            jnp.concatenate([w_ih_b, w_hh_b], axis=0).astype(jnp.bfloat16), b_b))

    for (w_f, b_f, w_b, b_b) in stacked[:-1]:
        layer_in = bilstm_mid_layer(layer_in, lens2, w_f, b_f, w_b, b_b)

    w_f, b_f, w_b, b_b = stacked[-1]
    logits = bilstm_last_layer(layer_in, lens2, w_f, b_f, w_b, b_b,
                               params["fc_w"], params["fc_b"])
    return logits[:B]


# ------------------------------ Pure-JAX reference ---------------------------

def _ref_dir(x_tbd, lens, w_ih, w_hh, b, reverse):
    T, B, _ = x_tbd.shape
    H = w_hh.shape[0]
    h = jnp.zeros((B, H), jnp.float32)
    c = jnp.zeros((B, H), jnp.float32)
    outs = [None] * T
    order = range(T - 1, -1, -1) if reverse else range(T)
    for t in order:
        gates = x_tbd[t] @ w_ih + h @ w_hh + b
        i_g = jax.nn.sigmoid(gates[:, 0:H])
        f_g = jax.nn.sigmoid(gates[:, H:2 * H])
        g_g = jnp.tanh(gates[:, 2 * H:3 * H])
        o_g = jax.nn.sigmoid(gates[:, 3 * H:4 * H])
        c_new = f_g * c + i_g * g_g
        h_new = o_g * jnp.tanh(c_new)
        valid = (lens > t)
        h = jnp.where(valid, h_new, h)
        c = jnp.where(valid, c_new, c)
        outs[t] = jnp.where(valid, h_new, 0.0)
    return jnp.stack(outs, 0), h


def lstm_model_reference(params, x, x_length):
    x = x.astype(jnp.float32)
    order = jnp.argsort(-x_length)
    lens = x_length[order].astype(jnp.int32).reshape(-1, 1)
    layer_in = jnp.transpose(x[order], (1, 0, 2))
    hn_f = hn_b = None
    for (w_ih_f, w_hh_f, b_f, w_ih_b, w_hh_b, b_b) in params["layers"]:
        out_f, hn_f = _ref_dir(layer_in, lens, w_ih_f, w_hh_f, b_f, False)
        out_b, hn_b = _ref_dir(layer_in, lens, w_ih_b, w_hh_b, b_b, True)
        layer_in = jnp.concatenate([out_f, out_b], -1)
    hidden = jnp.concatenate([hn_f, hn_b], -1)
    return hidden @ params["fc_w"] + params["fc_b"]


# ---------------------------------- Main -------------------------------------

if __name__ == "__main__":
    INPUT_DIM, HIDDEN_DIM, LAYER_DIM, OUTPUT_DIM = 16, 32, 2, 2
    BATCH, SEQ = 2, 8

    root = jax.random.PRNGKey(0)
    k_param, k_data = jax.random.split(root)

    params = init_params(k_param, INPUT_DIM, HIDDEN_DIM, LAYER_DIM, OUTPUT_DIM)
    x = jax.random.normal(k_data, (BATCH, SEQ, INPUT_DIM), jnp.float32)
    x_length = jnp.array([5, 8], dtype=jnp.int32)   # variable lengths (padded seqs)

    out = jax.block_until_ready(lstm_model_forward(params, x, x_length))
    ref = jax.block_until_ready(lstm_model_reference(params, x, x_length))

    assert out.shape == (BATCH, OUTPUT_DIM), out.shape
    np.testing.assert_allclose(np.asarray(out), np.asarray(ref), rtol=5e-2, atol=5e-2)
    print("KERNEL_OK")
</pallas_src>

<mosaic_0001>
module attributes {stable_mosaic.version = 11 : i64} {
  func.func @_bilstm_mid_kernel(%arg0: memref<8x8x16xf32, #tpu.memory_space<vmem>>, %arg1: memref<8x1xi32, #tpu.memory_space<vmem>>, %arg2: memref<48x128xbf16, #tpu.memory_space<vmem>>, %arg3: memref<1x128xf32, #tpu.memory_space<vmem>>, %arg4: memref<48x128xbf16, #tpu.memory_space<vmem>>, %arg5: memref<1x128xf32, #tpu.memory_space<vmem>>, %arg6: memref<8x8x64xf32, #tpu.memory_space<vmem>>, %arg7: memref<8x32xf32, #tpu.memory_space<vmem>>, %arg8: memref<8x32xf32, #tpu.memory_space<vmem>>, %arg9: memref<8x32xf32, #tpu.memory_space<vmem>>, %arg10: memref<8x32xf32, #tpu.memory_space<vmem>>) attributes {dimension_semantics = [], scalar_prefetch = 0 : i64, scratch_operands = 4 : i64, tpu.core_type = #tpu.core_type<tc>} {
    %cst = arith.constant 0.000000e+00 : f32
    %0 = vector.broadcast %cst : f32 to vector<8x32xf32>
    %c0 = arith.constant 0 : index
    %c0_0 = arith.constant 0 : index
    %1 = vector.load %arg7[%c0, %c0_0] : memref<8x32xf32, #tpu.memory_space<vmem>>, vector<8x32xf32>
    tpu.vector_store %arg7[%c0, %c0_0], %0 {strides = array<i32>} : memref<8x32xf32, #tpu.memory_space<vmem>>, vector<8x32xf32>,
    %cst_1 = arith.constant 0.000000e+00 : f32
    %2 = vector.broadcast %cst_1 : f32 to vector<8x32xf32>
    %c0_2 = arith.constant 0 : index
    %c0_3 = arith.constant 0 : index
    %3 = vector.load %arg8[%c0_2, %c0_3] : memref<8x32xf32, #tpu.memory_space<vmem>>, vector<8x32xf32>
    tpu.vector_store %arg8[%c0_2, %c0_3], %2 {strides = array<i32>} : memref<8x32xf32, #tpu.memory_space<vmem>>, vector<8x32xf32>,
    %cst_4 = arith.constant 0.000000e+00 : f32
    %4 = vector.broadcast %cst_4 : f32 to vector<8x32xf32>
    %c0_5 = arith.constant 0 : index
    %c0_6 = arith.constant 0 : index
    %5 = vector.load %arg9[%c0_5, %c0_6] : memref<8x32xf32, #tpu.memory_space<vmem>>, vector<8x32xf32>
    tpu.vector_store %arg9[%c0_5, %c0_6], %4 {strides = array<i32>} : memref<8x32xf32, #tpu.memory_space<vmem>>, vector<8x32xf32>,
    %cst_7 = arith.constant 0.000000e+00 : f32
    %6 = vector.broadcast %cst_7 : f32 to vector<8x32xf32>
    %c0_8 = arith.constant 0 : index
    %c0_9 = arith.constant 0 : index
    %7 = vector.load %arg10[%c0_8, %c0_9] : memref<8x32xf32, #tpu.memory_space<vmem>>, vector<8x32xf32>
    tpu.vector_store %arg10[%c0_8, %c0_9], %6 {strides = array<i32>} : memref<8x32xf32, #tpu.memory_space<vmem>>, vector<8x32xf32>,
    %c0_10 = arith.constant 0 : index
    %c0_11 = arith.constant 0 : index
    %8 = vector.load %arg1[%c0_10, %c0_11] : memref<8x1xi32, #tpu.memory_space<vmem>>, vector<8x1xi32>
    %c0_i32 = arith.constant 0 : i32
    %c7_i32 = arith.constant 7 : i32
    %9 = arith.subi %c7_i32, %c0_i32 : i32
    %10 = arith.index_cast %c0_i32 : i32 to index
    %c0_12 = arith.constant 0 : index
    %c0_13 = arith.constant 0 : index
    %11 = vector.load %arg0[%10, %c0_12, %c0_13] : memref<8x8x16xf32, #tpu.memory_space<vmem>>, vector<1x8x16xf32>
    %12 = vector.shape_cast %11 : vector<1x8x16xf32> to vector<8x16xf32>
    %13 = vector.broadcast %c0_i32 : i32 to vector<8x1xi32>
    %14 = arith.cmpi sgt, %8, %13 : vector<8x1xi32>
    %c0_14 = arith.constant 0 : index
    %c0_15 = arith.constant 0 : index
    %15 = vector.load %arg7[%c0_14, %c0_15] : memref<8x32xf32, #tpu.memory_space<vmem>>, vector<8x32xf32>
    %c0_16 = arith.constant 0 : index
    %c0_17 = arith.constant 0 : index
    %16 = vector.load %arg8[%c0_16, %c0_17] : memref<8x32xf32, #tpu.memory_space<vmem>>, vector<8x32xf32>
    %17 = tpu.concatenate %12, %15 in 1 : vector<8x16xf32>, vector<8x32xf32> -> vector<8x48xf32>
    %18 = arith.truncf %17 : vector<8x48xf32> to vector<8x48xbf16>
    %c0_18 = arith.constant 0 : index
    %c0_19 = arith.constant 0 : index
    %19 = vector.load %arg2[%c0_18, %c0_19] : memref<48x128xbf16, #tpu.memory_space<vmem>>, vector<48x128xbf16>
    %cst_20 = arith.constant dense<0.000000e+00> : vector<8x128xf32>
    %20 = tpu.matmul %18, %19, %cst_20 {dimension_numbers = #tpu.dot_dimension_numbers<[1], [0], [0], [1], [0, 0, 1, 1], [], []>} : vector<8x48xbf16>, vector<48x128xbf16>, vector<8x128xf32> -> vector<8x128xf32>
    %c0_21 = arith.constant 0 : index
    %c0_22 = arith.constant 0 : index
    %21 = vector.load %arg3[%c0_21, %c0_22] : memref<1x128xf32, #tpu.memory_space<vmem>>, vector<1x128xf32>
    %22 = vector.broadcast %21 : vector<1x128xf32> to vector<8x128xf32>
    %23 = arith.addf %20, %22 : vector<8x128xf32>
    %24 = vector.extract_strided_slice %23 {offsets = [0, 0], sizes = [8, 32], strides = [1, 1]} : vector<8x128xf32> to vector<8x32xf32>
    %25 = arith.negf %24 : vector<8x32xf32>
    %26 = math.exp %25 : vector<8x32xf32>
    %cst_23 = arith.constant 1.000000e+00 : f32
    %27 = vector.broadcast %cst_23 : f32 to vector<8x32xf32>
    %28 = arith.addf %27, %26 : vector<8x32xf32>
    %29 = arith.divf %27, %28 : vector<8x32xf32>
    %30 = vector.extract_strided_slice %23 {offsets = [0, 32], sizes = [8, 32], strides = [1, 1]} : vector<8x128xf32> to vector<8x32xf32>
    %31 = arith.negf %30 : vector<8x32xf32>
    %32 = math.exp %31 : vector<8x32xf32>
    %cst_24 = arith.constant 1.000000e+00 : f32
    %33 = vector.broadcast %cst_24 : f32 to vector<8x32xf32>
    %34 = arith.addf %33, %32 : vector<8x32xf32>
    %35 = arith.divf %33, %34 : vector<8x32xf32>
    %36 = vector.extract_strided_slice %23 {offsets = [0, 64], sizes = [8, 32], strides = [1, 1]} : vector<8x128xf32> to vector<8x32xf32>
    %37 = math.tanh %36 : vector<8x32xf32>
    %38 = vector.extract_strided_slice %23 {offsets = [0, 96], sizes = [8, 32], strides = [1, 1]} : vector<8x128xf32> to vector<8x32xf32>
    %39 = arith.negf %38 : vector<8x32xf32>
    %40 = math.exp %39 : vector<8x32xf32>
    %cst_25 = arith.constant 1.000000e+00 : f32
    %41 = vector.broadcast %cst_25 : f32 to vector<8x32xf32>
    %42 = arith.addf %41, %40 : vector<8x32xf32>
    %43 = arith.divf %41, %42 : vector<8x32xf32>
    %44 = arith.mulf %35, %16 : vector<8x32xf32>
    %45 = arith.mulf %29, %37 : vector<8x32xf32>
    %46 = arith.addf %44, %45 : vector<8x32xf32>
    %47 = math.tanh %46 : vector<8x32xf32>
    %48 = arith.mulf %43, %47 : vector<8x32xf32>
    %49 = vector.shape_cast %14 : vector<8x1xi1> to vector<8x1xi1>
    %50 = vector.broadcast %49 : vector<8x1xi1> to vector<8x32xi1>
    %51 = arith.select %50, %48, %15 : vector<8x32xi1>, vector<8x32xf32>
    %c0_26 = arith.constant 0 : index
    %c0_27 = arith.constant 0 : index
    %52 = vector.load %arg7[%c0_26, %c0_27] : memref<8x32xf32, #tpu.memory_space<vmem>>, vector<8x32xf32>
    tpu.vector_store %arg7[%c0_26, %c0_27], %51 {strides = array<i32>} : memref<8x32xf32, #tpu.memory_space<vmem>>, vector<8x32xf32>,
    %53 = vector.shape_cast %14 : vector<8x1xi1> to vector<8x1xi1>
    %54 = vector.broadcast %53 : vector<8x1xi1> to vector<8x32xi1>
    %55 = arith.select %54, %46, %16 : vector<8x32xi1>, vector<8x32xf32>
    %c0_28 = arith.constant 0 : index
    %c0_29 = arith.constant 0 : index
    %56 = vector.load %arg8[%c0_28, %c0_29] : memref<8x32xf32, #tpu.memory_space<vmem>>, vector<8x32xf32>
    tpu.vector_store %arg8[%c0_28, %c0_29], %55 {strides = array<i32>} : memref<8x32xf32, #tpu.memory_space<vmem>>, vector<8x32xf32>,
    %cst_30 = arith.constant 0.000000e+00 : f32
    %57 = vector.shape_cast %14 : vector<8x1xi1> to vector<8x1xi1>
    %58 = vector.broadcast %57 : vector<8x1xi1> to vector<8x32xi1>
    %59 = vector.broadcast %cst_30 : f32 to vector<8x32xf32>
    %60 = arith.select %58, %48, %59 : vector<8x32xi1>, vector<8x32xf32>
    %61 = arith.index_cast %9 : i32 to index
    %c0_31 = arith.constant 0 : index
    %c0_32 = arith.constant 0 : index
    %62 = vector.load %arg0[%61, %c0_31, %c0_32] : memref<8x8x16xf32, #tpu.memory_space<vmem>>, vector<1x8x16xf32>
    %63 = vector.shape_cast %62 : vector<1x8x16xf32> to vector<8x16xf32>
    %64 = vector.broadcast %9 : i32 to vector<8x1xi32>
    %65 = arith.cmpi sgt, %8, %64 : vector<8x1xi32>
    %c0_33 = arith.constant 0 : index
    %c0_34 = arith.constant 0 : index
    %66 = vector.load %arg9[%c0_33, %c0_34] : memref<8x32xf32, #tpu.memory_space<vmem>>, vector<8x32xf32>
    %c0_35 = arith.constant 0 : index
    %c0_36 = arith.constant 0 : index
    %67 = vector.load %arg10[%c0_35, %c0_36] : memref<8x32xf32, #tpu.memory_space<vmem>>, vector<8x32xf32>
    %68 = tpu.concatenate %63, %66 in 1 : vector<8x16xf32>, vector<8x32xf32> -> vector<8x48xf32>
    %69 = arith.truncf %68 : vector<8x48xf32> to vector<8x48xbf16>
    %c0_37 = arith.constant 0 : index
    %c0_38 = arith.constant 0 : index
    %70 = vector.load %arg4[%c0_37, %c0_38] : memref<48x128xbf16, #tpu.memory_space<vmem>>, vector<48x128xbf16>
    %cst_39 = arith.constant dense<0.000000e+00> : vector<8x128xf32>
    %71 = tpu.matmul %69, %70, %cst_39 {dimension_numbers = #tpu.dot_dimension_numbers<[1], [0], [0], [1], [0, 0, 1, 1], [], []>} : vector<8x48xbf16>, vector<48x128xbf16>, vector<8x128xf32> -> vector<8x128xf32>
    %c0_40 = arith.constant 0 : index
    %c0_41 = arith.constant 0 : index
    %72 = vector.load %arg5[%c0_40, %c0_41] : memref<1x128xf32, #tpu.memory_space<vmem>>, vector<1x128xf32>
    %73 = vector.broadcast %72 : vector<1x128xf32> to vector<8x128xf32>
    %74 = arith.addf %71, %73 : vector<8x128xf32>
    %75 = vector.extract_strided_slice %74 {offsets = [0, 0], sizes = [8, 32], strides = [1, 1]} : vector<8x128xf32> to vector<8x32xf32>
    %76 = arith.negf %75 : vector<8x32xf32>
    %77 = math.exp %76 : vector<8x32xf32>
    %cst_42 = arith.constant 1.000000e+00 : f32
    %78 = vector.broadcast %cst_42 : f32 to vector<8x32xf32>
    %79 = arith.addf %78, %77 : vector<8x32xf32>
    %80 = arith.divf %78, %79 : vector<8x32xf32>
    %81 = vector.extract_strided_slice %74 {offsets = [0, 32], sizes = [8, 32], strides = [1, 1]} : vector<8x128xf32> to vector<8x32xf32>
    %82 = arith.negf %81 : vector<8x32xf32>
    %83 = math.exp %82 : vector<8x32xf32>
    %cst_43 = arith.constant 1.000000e+00 : f32
    %84 = vector.broadcast %cst_43 : f32 to vector<8x32xf32>
    %85 = arith.addf %84, %83 : vector<8x32xf32>
    %86 = arith.divf %84, %85 : vector<8x32xf32>
    %87 = vector.extract_strided_slice %74 {offsets = [0, 64], sizes = [8, 32], strides = [1, 1]} : vector<8x128xf32> to vector<8x32xf32>
    %88 = math.tanh %87 : vector<8x32xf32>
    %89 = vector.extract_strided_slice %74 {offsets = [0, 96], sizes = [8, 32], strides = [1, 1]} : vector<8x128xf32> to vector<8x32xf32>
    %90 = arith.negf %89 : vector<8x32xf32>
    %91 = math.exp %90 : vector<8x32xf32>
    %cst_44 = arith.constant 1.000000e+00 : f32
    %92 = vector.broadcast %cst_44 : f32 to vector<8x32xf32>
    %93 = arith.addf %92, %91 : vector<8x32xf32>
    %94 = arith.divf %92, %93 : vector<8x32xf32>
    %95 = arith.mulf %86, %67 : vector<8x32xf32>
    %96 = arith.mulf %80, %88 : vector<8x32xf32>
    %97 = arith.addf %95, %96 : vector<8x32xf32>
    %98 = math.tanh %97 : vector<8x32xf32>
    %99 = arith.mulf %94, %98 : vector<8x32xf32>
    %100 = vector.shape_cast %65 : vector<8x1xi1> to vector<8x1xi1>
    %101 = vector.broadcast %100 : vector<8x1xi1> to vector<8x32xi1>
    %102 = arith.select %101, %99, %66 : vector<8x32xi1>, vector<8x32xf32>
    %c0_45 = arith.constant 0 : index
    %c0_46 = arith.constant 0 : index
    %103 = vector.load %arg9[%c0_45, %c0_46] : memref<8x32xf32, #tpu.memory_space<vmem>>, vector<8x32xf32>
    tpu.vector_store %arg9[%c0_45, %c0_46], %102 {strides = array<i32>} : memref<8x32xf32, #tpu.memory_space<vmem>>, vector<8x32xf32>,
    %104 = vector.shape_cast %65 : vector<8x1xi1> to vector<8x1xi1>
    %105 = vector.broadcast %104 : vector<8x1xi1> to vector<8x32xi1>
    %106 = arith.select %105, %97, %67 : vector<8x32xi1>, vector<8x32xf32>
    %c0_47 = arith.constant 0 : index
    %c0_48 = arith.constant 0 : index
    %107 = vector.load %arg10[%c0_47, %c0_48] : memref<8x32xf32, #tpu.memory_space<vmem>>, vector<8x32xf32>
    tpu.vector_store %arg10[%c0_47, %c0_48], %106 {strides = array<i32>} : memref<8x32xf32, #tpu.memory_space<vmem>>, vector<8x32xf32>,
    %cst_49 = arith.constant 0.000000e+00 : f32
    %108 = vector.shape_cast %65 : vector<8x1xi1> to vector<8x1xi1>
    %109 = vector.broadcast %108 : vector<8x1xi1> to vector<8x32xi1>
    %110 = vector.broadcast %cst_49 : f32 to vector<8x32xf32>
    %111 = arith.select %109, %99, %110 : vector<8x32xi1>, vector<8x32xf32>
    %112 = arith.index_cast %c0_i32 : i32 to index
    %c0_50 = arith.constant 0 : index
    %c0_51 = arith.constant 0 : index
    %113 = vector.load %arg6[%112, %c0_50, %c0_51] : memref<8x8x64xf32, #tpu.memory_space<vmem>>, vector<1x8x32xf32>
    %114 = vector.shape_cast %113 : vector<1x8x32xf32> to vector<8x32xf32>
    %115 = vector.shape_cast %60 : vector<8x32xf32> to vector<1x8x32xf32>
    tpu.vector_store %arg6[%112, %c0_50, %c0_51], %115 {strides = array<i32>} : memref<8x8x64xf32, #tpu.memory_space<vmem>>, vector<1x8x32xf32>,
    %116 = arith.index_cast %9 : i32 to index
    %c0_52 = arith.constant 0 : index
    %c32 = arith.constant 32 : index
    %117 = vector.load %arg6[%116, %c0_52, %c32] : memref<8x8x64xf32, #tpu.memory_space<vmem>>, vector<1x8x32xf32>
    %118 = vector.shape_cast %117 : vector<1x8x32xf32> to vector<8x32xf32>
    %119 = vector.shape_cast %111 : vector<8x32xf32> to vector<1x8x32xf32>
    tpu.vector_store %arg6[%116, %c0_52, %c32], %119 {strides = array<i32>} : memref<8x8x64xf32, #tpu.memory_space<vmem>>, vector<1x8x32xf32>,
    %c1_i32 = arith.constant 1 : i32
    %c7_i32_53 = arith.constant 7 : i32
    %120 = arith.subi %c7_i32_53, %c1_i32 : i32
    %121 = arith.index_cast %c1_i32 : i32 to index
    %c0_54 = arith.constant 0 : index
    %c0_55 = arith.constant 0 : index
    %122 = vector.load %arg0[%121, %c0_54, %c0_55] : memref<8x8x16xf32, #tpu.memory_space<vmem>>, vector<1x8x16xf32>
    %123 = vector.shape_cast %122 : vector<1x8x16xf32> to vector<8x16xf32>
    %124 = vector.broadcast %c1_i32 : i32 to vector<8x1xi32>
    %125 = arith.cmpi sgt, %8, %124 : vector<8x1xi32>
    %c0_56 = arith.constant 0 : index
    %c0_57 = arith.constant 0 : index
    %126 = vector.load %arg7[%c0_56, %c0_57] : memref<8x32xf32, #tpu.memory_space<vmem>>, vector<8x32xf32>
    %c0_58 = arith.constant 0 : index
    %c0_59 = arith.constant 0 : index
    %127 = vector.load %arg8[%c0_58, %c0_59] : memref<8x32xf32, #tpu.memory_space<vmem>>, vector<8x32xf32>
    %128 = tpu.concatenate %123, %126 in 1 : vector<8x16xf32>, vector<8x32xf32> -> vector<8x48xf32>
    %129 = arith.truncf %128 : vector<8x48xf32> to vector<8x48xbf16>
    %c0_60 = arith.constant 0 : index
    %c0_61 = arith.constant 0 : index
    %130 = vector.load %arg2[%c0_60, %c0_61] : memref<48x128xbf16, #tpu.memory_space<vmem>>, vector<48x128xbf16>
    %cst_62 = arith.constant dense<0.000000e+00> : vector<8x128xf32>
    %131 = tpu.matmul %129, %130, %cst_62 {dimension_numbers = #tpu.dot_dimension_numbers<[1], [0], [0], [1], [0, 0, 1, 1], [], []>} : vector<8x48xbf16>, vector<48x128xbf16>, vector<8x128xf32> -> vector<8x128xf32>
    %c0_63 = arith.constant 0 : index
    %c0_64 = arith.constant 0 : index
    %132 = vector.load %arg3[%c0_63, %c0_64] : memref<1x128xf32, #tpu.memory_space<vmem>>, vector<1x128xf32>
    %133 = vector.broadcast %132 : vector<1x128xf32> to vector<8x128xf32>
    %134 = arith.addf %131, %133 : vector<8x128xf32>
    %135 = vector.extract_strided_slice %134 {offsets = [0, 0], sizes = [8, 32], strides = [1, 1]} : vector<8x128xf32> to vector<8x32xf32>
    %136 = arith.negf %135 : vector<8x32xf32>
    %137 = math.exp %136 : vector<8x32xf32>
    %cst_65 = arith.constant 1.000000e+00 : f32
    %138 = vector.broadcast %cst_65 : f32 to vector<8x32xf32>
    %139 = arith.addf %138, %137 : vector<8x32xf32>
    %140 = arith.divf %138, %139 : vector<8x32xf32>
    %141 = vector.extract_strided_slice %134 {offsets = [0, 32], sizes = [8, 32], strides = [1, 1]} : vector<8x128xf32> to vector<8x32xf32>
    %142 = arith.negf %141 : vector<8x32xf32>
    %143 = math.exp %142 : vector<8x32xf32>
    %cst_66 = arith.constant 1.000000e+00 : f32
    %144 = vector.broadcast %cst_66 : f32 to vector<8x32xf32>
    %145 = arith.addf %144, %143 : vector<8x32xf32>
    %146 = arith.divf %144, %145 : vector<8x32xf32>
    %147 = vector.extract_strided_slice %134 {offsets = [0, 64], sizes = [8, 32], strides = [1, 1]} : vector<8x128xf32> to vector<8x32xf32>
    %148 = math.tanh %147 : vector<8x32xf32>
    %149 = vector.extract_strided_slice %134 {offsets = [0, 96], sizes = [8, 32], strides = [1, 1]} : vector<8x128xf32> to vector<8x32xf32>
    %150 = arith.negf %149 : vector<8x32xf32>
    %151 = math.exp %150 : vector<8x32xf32>
    %cst_67 = arith.constant 1.000000e+00 : f32
    %152 = vector.broadcast %cst_67 : f32 to vector<8x32xf32>
    %153 = arith.addf %152, %151 : vector<8x32xf32>
    %154 = arith.divf %152, %153 : vector<8x32xf32>
    %155 = arith.mulf %146, %127 : vector<8x32xf32>
    %156 = arith.mulf %140, %148 : vector<8x32xf32>
    %157 = arith.addf %155, %156 : vector<8x32xf32>
    %158 = math.tanh %157 : vector<8x32xf32>
    %159 = arith.mulf %154, %158 : vector<8x32xf32>
    %160 = vector.shape_cast %125 : vector<8x1xi1> to vector<8x1xi1>
    %161 = vector.broadcast %160 : vector<8x1xi1> to vector<8x32xi1>
    %162 = arith.select %161, %159, %126 : vector<8x32xi1>, vector<8x32xf32>
    %c0_68 = arith.constant 0 : index
    %c0_69 = arith.constant 0 : index
    %163 = vector.load %arg7[%c0_68, %c0_69] : memref<8x32xf32, #tpu.memory_space<vmem>>, vector<8x32xf32>
    tpu.vector_store %arg7[%c0_68, %c0_69], %162 {strides = array<i32>} : memref<8x32xf32, #tpu.memory_space<vmem>>, vector<8x32xf32>,
    %164 = vector.shape_cast %125 : vector<8x1xi1> to vector<8x1xi1>
    %165 = vector.broadcast %164 : vector<8x1xi1> to vector<8x32xi1>
    %166 = arith.select %165, %157, %127 : vector<8x32xi1>, vector<8x32xf32>
    %c0_70 = arith.constant 0 : index
    %c0_71 = arith.constant 0 : index
    %167 = vector.load %arg8[%c0_70, %c0_71] : memref<8x32xf32, #tpu.memory_space<vmem>>, vector<8x32xf32>
    tpu.vector_store %arg8[%c0_70, %c0_71], %166 {strides = array<i32>} : memref<8x32xf32, #tpu.memory_space<vmem>>, vector<8x32xf32>,
    %cst_72 = arith.constant 0.000000e+00 : f32
    %168 = vector.shape_cast %125 : vector<8x1xi1> to vector<8x1xi1>
    %169 = vector.broadcast %168 : vector<8x1xi1> to vector<8x32xi1>
    %170 = vector.broadcast %cst_72 : f32 to vector<8x32xf32>
    %171 = arith.select %169, %159, %170 : vector<8x32xi1>, vector<8x32xf32>
    %172 = arith.index_cast %120 : i32 to index
    %c0_73 = arith.constant 0 : index
    %c0_74 = arith.constant 0 : index
    %173 = vector.load %arg0[%172, %c0_73, %c0_74] : memref<8x8x16xf32, #tpu.memory_space<vmem>>, vector<1x8x16xf32>
    %174 = vector.shape_cast %173 : vector<1x8x16xf32> to vector<8x16xf32>
    %175 = vector.broadcast %120 : i32 to vector<8x1xi32>
    %176 = arith.cmpi sgt, %8, %175 : vector<8x1xi32>
    %c0_75 = arith.constant 0 : index
    %c0_76 = arith.constant 0 : index
    %177 = vector.load %arg9[%c0_75, %c0_76] : memref<8x32xf32, #tpu.memory_space<vmem>>, vector<8x32xf32>
    %c0_77 = arith.constant 0 : index
    %c0_78 = arith.constant 0 : index
    %178 = vector.load %arg10[%c0_77, %c0_78] : memref<8x32xf32, #tpu.memory_space<vmem>>, vector<8x32xf32>
    %179 = tpu.concatenate %174, %177 in 1 : vector<8x16xf32>, vector<8x32xf32> -> vector<8x48xf32>
    %180 = arith.truncf %179 : vector<8x48xf32> to vector<8x48xbf16>
    %c0_79 = arith.constant 0 : index
    %c0_80 = arith.constant 0 : index
    %181 = vector.load %arg4[%c0_79, %c0_80] : memref<48x128xbf16, #tpu.memory_space<vmem>>, vector<48x128xbf16>
    %cst_81 = arith.constant dense<0.000000e+00> : vector<8x128xf32>
    %182 = tpu.matmul %180, %181, %cst_81 {dimension_numbers = #tpu.dot_dimension_numbers<[1], [0], [0], [1], [0, 0, 1, 1], [], []>} : vector<8x48xbf16>, vector<48x128xbf16>, vector<8x128xf32> -> vector<8x128xf32>
    %c0_82 = arith.constant 0 : index
    %c0_83 = arith.constant 0 : index
    %183 = vector.load %arg5[%c0_82, %c0_83] : memref<1x128xf32, #tpu.memory_space<vmem>>, vector<1x128xf32>
    %184 = vector.broadcast %183 : vector<1x128xf32> to vector<8x128xf32>
    %185 = arith.addf %182, %184 : vector<8x128xf32>
    %186 = vector.extract_strided_slice %185 {offsets = [0, 0], sizes = [8, 32], strides = [1, 1]} : vector<8x128xf32> to vector<8x32xf32>
    %187 = arith.negf %186 : vector<8x32xf32>
    %188 = math.exp %187 : vector<8x32xf32>
    %cst_84 = arith.constant 1.000000e+00 : f32
    %189 = vector.broadcast %cst_84 : f32 to vector<8x32xf32>
    %190 = arith.addf %189, %188 : vector<8x32xf32>
    %191 = arith.divf %189, %190 : vector<8x32xf32>
    %192 = vector.extract_strided_slice %185 {offsets = [0, 32], sizes = [8, 32], strides = [1, 1]} : vector<8x128xf32> to vector<8x32xf32>
    %193 = arith.negf %192 : vector<8x32xf32>
    %194 = math.exp %193 : vector<8x32xf32>
    %cst_85 = arith.constant 1.000000e+00 : f32
    %195 = vector.broadcast %cst_85 : f32 to vector<8x32xf32>
    %196 = arith.addf %195, %194 : vector<8x32xf32>
    %197 = arith.divf %195, %196 : vector<8x32xf32>
    %198 = vector.extract_strided_slice %185 {offsets = [0, 64], sizes = [8, 32], strides = [1, 1]} : vector<8x128xf32> to vector<8x32xf32>
    %199 = math.tanh %198 : vector<8x32xf32>
    %200 = vector.extract_strided_slice %185 {offsets = [0, 96], sizes = [8, 32], strides = [1, 1]} : vector<8x128xf32> to vector<8x32xf32>
    %201 = arith.negf %200 : vector<8x32xf32>
    %202 = math.exp %201 : vector<8x32xf32>
    %cst_86 = arith.constant 1.000000e+00 : f32
    %203 = vector.broadcast %cst_86 : f32 to vector<8x32xf32>
    %204 = arith.addf %203, %202 : vector<8x32xf32>
    %205 = arith.divf %203, %204 : vector<8x32xf32>
    %206 = arith.mulf %197, %178 : vector<8x32xf32>
    %207 = arith.mulf %191, %199 : vector<8x32xf32>
    %208 = arith.addf %206, %207 : vector<8x32xf32>
    %209 = math.tanh %208 : vector<8x32xf32>
    %210 = arith.mulf %205, %209 : vector<8x32xf32>
    %211 = vector.shape_cast %176 : vector<8x1xi1> to vector<8x1xi1>
    %212 = vector.broadcast %211 : vector<8x1xi1> to vector<8x32xi1>
    %213 = arith.select %212, %210, %177 : vector<8x32xi1>, vector<8x32xf32>
    %c0_87 = arith.constant 0 : index
    %c0_88 = arith.constant 0 : index
    %214 = vector.load %arg9[%c0_87, %c0_88] : memref<8x32xf32, #tpu.memory_space<vmem>>, vector<8x32xf32>
    tpu.vector_store %arg9[%c0_87, %c0_88], %213 {strides = array<i32>} : memref<8x32xf32, #tpu.memory_space<vmem>>, vector<8x32xf32>,
    %215 = vector.shape_cast %176 : vector<8x1xi1> to vector<8x1xi1>
    %216 = vector.broadcast %215 : vector<8x1xi1> to vector<8x32xi1>
    %217 = arith.select %216, %208, %178 : vector<8x32xi1>, vector<8x32xf32>
    %c0_89 = arith.constant 0 : index
    %c0_90 = arith.constant 0 : index
    %218 = vector.load %arg10[%c0_89, %c0_90] : memref<8x32xf32, #tpu.memory_space<vmem>>, vector<8x32xf32>
    tpu.vector_store %arg10[%c0_89, %c0_90], %217 {strides = array<i32>} : memref<8x32xf32, #tpu.memory_space<vmem>>, vector<8x32xf32>,
    %cst_91 = arith.constant 0.000000e+00 : f32
    %219 = vector.shape_cast %176 : vector<8x1xi1> to vector<8x1xi1>
    %220 = vector.broadcast %219 : vector<8x1xi1> to vector<8x32xi1>
    %221 = vector.broadcast %cst_91 : f32 to vector<8x32xf32>
    %222 = arith.select %220, %210, %221 : vector<8x32xi1>, vector<8x32xf32>
    %223 = arith.index_cast %c1_i32 : i32 to index
    %c0_92 = arith.constant 0 : index
    %c0_93 = arith.constant 0 : index
    %224 = vector.load %arg6[%223, %c0_92, %c0_93] : memref<8x8x64xf32, #tpu.memory_space<vmem>>, vector<1x8x32xf32>
    %225 = vector.shape_cast %224 : vector<1x8x32xf32> to vector<8x32xf32>
    %226 = vector.shape_cast %171 : vector<8x32xf32> to vector<1x8x32xf32>
    tpu.vector_store %arg6[%223, %c0_92, %c0_93], %226 {strides = array<i32>} : memref<8x8x64xf32, #tpu.memory_space<vmem>>, vector<1x8x32xf32>,
    %227 = arith.index_cast %120 : i32 to index
    %c0_94 = arith.constant 0 : index
    %c32_95 = arith.constant 32 : index
    %228 = vector.load %arg6[%227, %c0_94, %c32_95] : memref<8x8x64xf32, #tpu.memory_space<vmem>>, vector<1x8x32xf32>
    %229 = vector.shape_cast %228 : vector<1x8x32xf32> to vector<8x32xf32>
    %230 = vector.shape_cast %222 : vector<8x32xf32> to vector<1x8x32xf32>
    tpu.vector_store %arg6[%227, %c0_94, %c32_95], %230 {strides = array<i32>} : memref<8x8x64xf32, #tpu.memory_space<vmem>>, vector<1x8x32xf32>,
    %c2_i32 = arith.constant 2 : i32
    %c7_i32_96 = arith.constant 7 : i32
    %231 = arith.subi %c7_i32_96, %c2_i32 : i32
    %232 = arith.index_cast %c2_i32 : i32 to index
    %c0_97 = arith.constant 0 : index
    %c0_98 = arith.constant 0 : index
    %233 = vector.load %arg0[%232, %c0_97, %c0_98] : memref<8x8x16xf32, #tpu.memory_space<vmem>>, vector<1x8x16xf32>
    %234 = vector.shape_cast %233 : vector<1x8x16xf32> to vector<8x16xf32>
    %235 = vector.broadcast %c2_i32 : i32 to vector<8x1xi32>
    %236 = arith.cmpi sgt, %8, %235 : vector<8x1xi32>
    %c0_99 = arith.constant 0 : index
    %c0_100 = arith.constant 0 : index
    %237 = vector.load %arg7[%c0_99, %c0_100] : memref<8x32xf32, #tpu.memory_space<vmem>>, vector<8x32xf32>
    %c0_101 = arith.constant 0 : index
    %c0_102 = arith.constant 0 : index
    %238 = vector.load %arg8[%c0_101, %c0_102] : memref<8x32xf32, #tpu.memory_space<vmem>>, vector<8x32xf32>
    %239 = tpu.concatenate %234, %237 in 1 : vector<8x16xf32>, vector<8x32xf32> -> vector<8x48xf32>
    %240 = arith.truncf %239 : vector<8x48xf32> to vector<8x48xbf16>
    %c0_103 = arith.constant 0 : index
    %c0_104 = arith.constant 0 : index
    %241 = vector.load %arg2[%c0_103, %c0_104] : memref<48x128xbf16, #tpu.memory_space<vmem>>, vector<48x128xbf16>
    %cst_105 = arith.constant dense<0.000000e+00> : vector<8x128xf32>
    %242 = tpu.matmul %240, %241, %cst_105 {dimension_numbers = #tpu.dot_dimension_numbers<[1], [0], [0], [1], [0, 0, 1, 1], [], []>} : vector<8x48xbf16>, vector<48x128xbf16>, vector<8x128xf32> -> vector<8x128xf32>
    %c0_106 = arith.constant 0 : index
    %c0_107 = arith.constant 0 : index
    %243 = vector.load %arg3[%c0_106, %c0_107] : memref<1x128xf32, #tpu.memory_space<vmem>>, vector<1x128xf32>
    %244 = vector.broadcast %243 : vector<1x128xf32> to vector<8x128xf32>
    %245 = arith.addf %242, %244 : vector<8x128xf32>
    %246 = vector.extract_strided_slice %245 {offsets = [0, 0], sizes = [8, 32], strides = [1, 1]} : vector<8x128xf32> to vector<8x32xf32>
    %247 = arith.negf %246 : vector<8x32xf32>
    %248 = math.exp %247 : vector<8x32xf32>
    %cst_108 = arith.constant 1.000000e+00 : f32
    %249 = vector.broadcast %cst_108 : f32 to vector<8x32xf32>
    %250 = arith.addf %249, %248 : vector<8x32xf32>
    %251 = arith.divf %249, %250 : vector<8x32xf32>
    %252 = vector.extract_strided_slice %245 {offsets = [0, 32], sizes = [8, 32], strides = [1, 1]} : vector<8x128xf32> to vector<8x32xf32>
    %253 = arith.negf %252 : vector<8x32xf32>
    %254 = math.exp %253 : vector<8x32xf32>
    %cst_109 = arith.constant 1.000000e+00 : f32
    %255 = vector.broadcast %cst_109 : f32 to vector<8x32xf32>
    %256 = arith.addf %255, %254 : vector<8x32xf32>
    %257 = arith.divf %255, %256 : vector<8x32xf32>
    %258 = vector.extract_strided_slice %245 {offsets = [0, 64], sizes = [8, 32], strides = [1, 1]} : vector<8x128xf32> to vector<8x32xf32>
    %259 = math.tanh %258 : vector<8x32xf32>
    %260 = vector.extract_strided_slice %245 {offsets = [0, 96], sizes = [8, 32], strides = [1, 1]} : vector<8x128xf32> to vector<8x32xf32>
    %261 = arith.negf %260 : vector<8x32xf32>
    %262 = math.exp %261 : vector<8x32xf32>
    %cst_110 = arith.constant 1.000000e+00 : f32
    %263 = vector.broadcast %cst_110 : f32 to vector<8x32xf32>
    %264 = arith.addf %263, %262 : vector<8x32xf32>
    %265 = arith.divf %263, %264 : vector<8x32xf32>
    %266 = arith.mulf %257, %238 : vector<8x32xf32>
    %267 = arith.mulf %251, %259 : vector<8x32xf32>
    %268 = arith.addf %266, %267 : vector<8x32xf32>
    %269 = math.tanh %268 : vector<8x32xf32>
    %270 = arith.mulf %265, %269 : vector<8x32xf32>
    %271 = vector.shape_cast %236 : vector<8x1xi1> to vector<8x1xi1>
    %272 = vector.broadcast %271 : vector<8x1xi1> to vector<8x32xi1>
    %273 = arith.select %272, %270, %237 : vector<8x32xi1>, vector<8x32xf32>
    %c0_111 = arith.constant 0 : index
    %c0_112 = arith.constant 0 : index
    %274 = vector.load %arg7[%c0_111, %c0_112] : memref<8x32xf32, #tpu.memory_space<vmem>>, vector<8x32xf32>
    tpu.vector_store %arg7[%c0_111, %c0_112], %273 {strides = array<i32>} : memref<8x32xf32, #tpu.memory_space<vmem>>, vector<8x32xf32>,
    %275 = vector.shape_cast %236 : vector<8x1xi1> to vector<8x1xi1>
    %276 = vector.broadcast %275 : vector<8x1xi1> to vector<8x32xi1>
    %277 = arith.select %276, %268, %238 : vector<8x32xi1>, vector<8x32xf32>
    %c0_113 = arith.constant 0 : index
    %c0_114 = arith.constant 0 : index
    %278 = vector.load %arg8[%c0_113, %c0_114] : memref<8x32xf32, #tpu.memory_space<vmem>>, vector<8x32xf32>
    tpu.vector_store %arg8[%c0_113, %c0_114], %277 {strides = array<i32>} : memref<8x32xf32, #tpu.memory_space<vmem>>, vector<8x32xf32>,
    %cst_115 = arith.constant 0.000000e+00 : f32
    %279 = vector.shape_cast %236 : vector<8x1xi1> to vector<8x1xi1>
    %280 = vector.broadcast %279 : vector<8x1xi1> to vector<8x32xi1>
    %281 = vector.broadcast %cst_115 : f32 to vector<8x32xf32>
    %282 = arith.select %280, %270, %281 : vector<8x32xi1>, vector<8x32xf32>
    %283 = arith.index_cast %231 : i32 to index
    %c0_116 = arith.constant 0 : index
    %c0_117 = arith.constant 0 : index
    %284 = vector.load %arg0[%283, %c0_116, %c0_117] : memref<8x8x16xf32, #tpu.memory_space<vmem>>, vector<1x8x16xf32>
    %285 = vector.shape_cast %284 : vector<1x8x16xf32> to vector<8x16xf32>
    %286 = vector.broadcast %231 : i32 to vector<8x1xi32>
    %287 = arith.cmpi sgt, %8, %286 : vector<8x1xi32>
    %c0_118 = arith.constant 0 : index
    %c0_119 = arith.constant 0 : index
    %288 = vector.load %arg9[%c0_118, %c0_119] : memref<8x32xf32, #tpu.memory_space<vmem>>, vector<8x32xf32>
    %c0_120 = arith.constant 0 : index
    %c0_121 = arith.constant 0 : index
    %289 = vector.load %arg10[%c0_120, %c0_121] : memref<8x32xf32, #tpu.memory_space<vmem>>, vector<8x32xf32>
    %290 = tpu.concatenate %285, %288 in 1 : vector<8x16xf32>, vector<8x32xf32> -> vector<8x48xf32>
    %291 = arith.truncf %290 : vector<8x48xf32> to vector<8x48xbf16>
    %c0_122 = arith.constant 0 : index
    %c0_123 = arith.constant 0 : index
    %292 = vector.load %arg4[%c0_122, %c0_123] : memref<48x128xbf16, #tpu.memory_space<vmem>>, vector<48x128xbf16>
    %cst_124 = arith.constant dense<0.000000e+00> : vector<8x128xf32>
    %293 = tpu.matmul %291, %292, %cst_124 {dimension_numbers = #tpu.dot_dimension_numbers<[1], [0], [0], [1], [0, 0, 1, 1], [], []>} : vector<8x48xbf16>, vector<48x128xbf16>, vector<8x128xf32> -> vector<8x128xf32>
    %c0_125 = arith.constant 0 : index
    %c0_126 = arith.constant 0 : index
    %294 = vector.load %arg5[%c0_125, %c0_126] : memref<1x128xf32, #tpu.memory_space<vmem>>, vector<1x128xf32>
    %295 = vector.broadcast %294 : vector<1x128xf32> to vector<8x128xf32>
    %296 = arith.addf %293, %295 : vector<8x128xf32>
    %297 = vector.extract_strided_slice %296 {offsets = [0, 0], sizes = [8, 32], strides = [1, 1]} : vector<8x128xf32> to vector<8x32xf32>
    %298 = arith.negf %297 : vector<8x32xf32>
    %299 = math.exp %298 : vector<8x32xf32>
    %cst_127 = arith.constant 1.000000e+00 : f32
    %300 = vector.broadcast %cst_127 : f32 to vector<8x32xf32>
    %301 = arith.addf %300, %299 : vector<8x32xf32>
    %302 = arith.divf %300, %301 : vector<8x32xf32>
    %303 = vector.extract_strided_slice %296 {offsets = [0, 32], sizes = [8, 32], strides = [1, 1]} : vector<8x128xf32> to vector<8x32xf32>
    %304 = arith.negf %303 : vector<8x32xf32>
    %305 = math.exp %304 : vector<8x32xf32>
    %cst_128 = arith.constant 1.000000e+00 : f32
    %306 = vector.broadcast %cst_128 : f32 to vector<8x32xf32>
    %307 = arith.addf %306, %305 : vector<8x32xf32>
    %308 = arith.divf %306, %307 : vector<8x32xf32>
    %309 = vector.extract_strided_slice %296 {offsets = [0, 64], sizes = [8, 32], strides = [1, 1]} : vector<8x128xf32> to vector<8x32xf32>
    %310 = math.tanh %309 : vector<8x32xf32>
    %311 = vector.extract_strided_slice %296 {offsets = [0, 96], sizes = [8, 32], strides = [1, 1]} : vector<8x128xf32> to vector<8x32xf32>
    %312 = arith.negf %311 : vector<8x32xf32>
    %313 = math.exp %312 : vector<8x32xf32>
    %cst_129 = arith.constant 1.000000e+00 : f32
    %314 = vector.broadcast %cst_129 : f32 to vector<8x32xf32>
    %315 = arith.addf %314, %313 : vector<8x32xf32>
    %316 = arith.divf %314, %315 : vector<8x32xf32>
    %317 = arith.mulf %308, %289 : vector<8x32xf32>
    %318 = arith.mulf %302, %310 : vector<8x32xf32>
    %319 = arith.addf %317, %318 : vector<8x32xf32>
    %320 = math.tanh %319 : vector<8x32xf32>
    %321 = arith.mulf %316, %320 : vector<8x32xf32>
    %322 = vector.shape_cast %287 : vector<8x1xi1> to vector<8x1xi1>
    %323 = vector.broadcast %322 : vector<8x1xi1> to vector<8x32xi1>
    %324 = arith.select %323, %321, %288 : vector<8x32xi1>, vector<8x32xf32>
    %c0_130 = arith.constant 0 : index
    %c0_131 = arith.constant 0 : index
    %325 = vector.load %arg9[%c0_130, %c0_131] : memref<8x32xf32, #tpu.memory_space<vmem>>, vector<8x32xf32>
    tpu.vector_store %arg9[%c0_130, %c0_131], %324 {strides = array<i32>} : memref<8x32xf32, #tpu.memory_space<vmem>>, vector<8x32xf32>,
    %326 = vector.shape_cast %287 : vector<8x1xi1> to vector<8x1xi1>
    %327 = vector.broadcast %326 : vector<8x1xi1> to vector<8x32xi1>
    %328 = arith.select %327, %319, %289 : vector<8x32xi1>, vector<8x32xf32>
    %c0_132 = arith.constant 0 : index
    %c0_133 = arith.constant 0 : index
    %329 = vector.load %arg10[%c0_132, %c0_133] : memref<8x32xf32, #tpu.memory_space<vmem>>, vector<8x32xf32>
    tpu.vector_store %arg10[%c0_132, %c0_133], %328 {strides = array<i32>} : memref<8x32xf32, #tpu.memory_space<vmem>>, vector<8x32xf32>,
    %cst_134 = arith.constant 0.000000e+00 : f32
    %330 = vector.shape_cast %287 : vector<8x1xi1> to vector<8x1xi1>
    %331 = vector.broadcast %330 : vector<8x1xi1> to vector<8x32xi1>
    %332 = vector.broadcast %cst_134 : f32 to vector<8x32xf32>
    %333 = arith.select %331, %321, %332 : vector<8x32xi1>, vector<8x32xf32>
    %334 = arith.index_cast %c2_i32 : i32 to index
    %c0_135 = arith.constant 0 : index
    %c0_136 = arith.constant 0 : index
    %335 = vector.load %arg6[%334, %c0_135, %c0_136] : memref<8x8x64xf32, #tpu.memory_space<vmem>>, vector<1x8x32xf32>
    %336 = vector.shape_cast %335 : vector<1x8x32xf32> to vector<8x32xf32>
    %337 = vector.shape_cast %282 : vector<8x32xf32> to vector<1x8x32xf32>
    tpu.vector_store %arg6[%334, %c0_135, %c0_136], %337 {strides = array<i32>} : memref<8x8x64xf32, #tpu.memory_space<vmem>>, vector<1x8x32xf32>,
    %338 = arith.index_cast %231 : i32 to index
    %c0_137 = arith.constant 0 : index
    %c32_138 = arith.constant 32 : index
    %339 = vector.load %arg6[%338, %c0_137, %c32_138] : memref<8x8x64xf32, #tpu.memory_space<vmem>>, vector<1x8x32xf32>
    %340 = vector.shape_cast %339 : vector<1x8x32xf32> to vector<8x32xf32>
    %341 = vector.shape_cast %333 : vector<8x32xf32> to vector<1x8x32xf32>
    tpu.vector_store %arg6[%338, %c0_137, %c32_138], %341 {strides = array<i32>} : memref<8x8x64xf32, #tpu.memory_space<vmem>>, vector<1x8x32xf32>,
    %c3_i32 = arith.constant 3 : i32
    %c7_i32_139 = arith.constant 7 : i32
    %342 = arith.subi %c7_i32_139, %c3_i32 : i32
    %343 = arith.index_cast %c3_i32 : i32 to index
    %c0_140 = arith.constant 0 : index
    %c0_141 = arith.constant 0 : index
    %344 = vector.load %arg0[%343, %c0_140, %c0_141] : memref<8x8x16xf32, #tpu.memory_space<vmem>>, vector<1x8x16xf32>
    %345 = vector.shape_cast %344 : vector<1x8x16xf32> to vector<8x16xf32>
    %346 = vector.broadcast %c3_i32 : i32 to vector<8x1xi32>
    %347 = arith.cmpi sgt, %8, %346 : vector<8x1xi32>
    %c0_142 = arith.constant 0 : index
    %c0_143 = arith.constant 0 : index
    %348 = vector.load %arg7[%c0_142, %c0_143] : memref<8x32xf32, #tpu.memory_space<vmem>>, vector<8x32xf32>
    %c0_144 = arith.constant 0 : index
    %c0_145 = arith.constant 0 : index
    %349 = vector.load %arg8[%c0_144, %c0_145] : memref<8x32xf32, #tpu.memory_space<vmem>>, vector<8x32xf32>
    %350 = tpu.concatenate %345, %348 in 1 : vector<8x16xf32>, vector<8x32xf32> -> vector<8x48xf32>
    %351 = arith.truncf %350 : vector<8x48xf32> to vector<8x48xbf16>
    %c0_146 = arith.constant 0 : index
    %c0_147 = arith.constant 0 : index
    %352 = vector.load %arg2[%c0_146, %c0_147] : memref<48x128xbf16, #tpu.memory_space<vmem>>, vector<48x128xbf16>
    %cst_148 = arith.constant dense<0.000000e+00> : vector<8x128xf32>
    %353 = tpu.matmul %351, %352, %cst_148 {dimension_numbers = #tpu.dot_dimension_numbers<[1], [0], [0], [1], [0, 0, 1, 1], [], []>} : vector<8x48xbf16>, vector<48x128xbf16>, vector<8x128xf32> -> vector<8x128xf32>
    %c0_149 = arith.constant 0 : index
    %c0_150 = arith.constant 0 : index
    %354 = vector.load %arg3[%c0_149, %c0_150] : memref<1x128xf32, #tpu.memory_space<vmem>>, vector<1x128xf32>
    %355 = vector.broadcast %354 : vector<1x128xf32> to vector<8x128xf32>
    %356 = arith.addf %353, %355 : vector<8x128xf32>
    %357 = vector.extract_strided_slice %356 {offsets = [0, 0], sizes = [8, 32], strides = [1, 1]} : vector<8x128xf32> to vector<8x32xf32>
    %358 = arith.negf %357 : vector<8x32xf32>
    %359 = math.exp %358 : vector<8x32xf32>
    %cst_151 = arith.constant 1.000000e+00 : f32
    %360 = vector.broadcast %cst_151 : f32 to vector<8x32xf32>
    %361 = arith.addf %360, %359 : vector<8x32xf32>
    %362 = arith.divf %360, %361 : vector<8x32xf32>
    %363 = vector.extract_strided_slice %356 {offsets = [0, 32], sizes = [8, 32], strides = [1, 1]} : vector<8x128xf32> to vector<8x32xf32>
    %364 = arith.negf %363 : vector<8x32xf32>
    %365 = math.exp %364 : vector<8x32xf32>
    %cst_152 = arith.constant 1.000000e+00 : f32
    %366 = vector.broadcast %cst_152 : f32 to vector<8x32xf32>
    %367 = arith.addf %366, %365 : vector<8x32xf32>
    %368 = arith.divf %366, %367 : vector<8x32xf32>
    %369 = vector.extract_strided_slice %356 {offsets = [0, 64], sizes = [8, 32], strides = [1, 1]} : vector<8x128xf32> to vector<8x32xf32>
    %370 = math.tanh %369 : vector<8x32xf32>
    %371 = vector.extract_strided_slice %356 {offsets = [0, 96], sizes = [8, 32], strides = [1, 1]} : vector<8x128xf32> to vector<8x32xf32>
    %372 = arith.negf %371 : vector<8x32xf32>
    %373 = math.exp %372 : vector<8x32xf32>
    %cst_153 = arith.constant 1.000000e+00 : f32
    %374 = vector.broadcast %cst_153 : f32 to vector<8x32xf32>
    %375 = arith.addf %374, %373 : vector<8x32xf32>
    %376 = arith.divf %374, %375 : vector<8x32xf32>
    %377 = arith.mulf %368, %349 : vector<8x32xf32>
    %378 = arith.mulf %362, %370 : vector<8x32xf32>
    %379 = arith.addf %377, %378 : vector<8x32xf32>
    %380 = math.tanh %379 : vector<8x32xf32>
    %381 = arith.mulf %376, %380 : vector<8x32xf32>
    %382 = vector.shape_cast %347 : vector<8x1xi1> to vector<8x1xi1>
    %383 = vector.broadcast %382 : vector<8x1xi1> to vector<8x32xi1>
    %384 = arith.select %383, %381, %348 : vector<8x32xi1>, vector<8x32xf32>
    %c0_154 = arith.constant 0 : index
    %c0_155 = arith.constant 0 : index
    %385 = vector.load %arg7[%c0_154, %c0_155] : memref<8x32xf32, #tpu.memory_space<vmem>>, vector<8x32xf32>
    tpu.vector_store %arg7[%c0_154, %c0_155], %384 {strides = array<i32>} : memref<8x32xf32, #tpu.memory_space<vmem>>, vector<8x32xf32>,
    %386 = vector.shape_cast %347 : vector<8x1xi1> to vector<8x1xi1>
    %387 = vector.broadcast %386 : vector<8x1xi1> to vector<8x32xi1>
    %388 = arith.select %387, %379, %349 : vector<8x32xi1>, vector<8x32xf32>
    %c0_156 = arith.constant 0 : index
    %c0_157 = arith.constant 0 : index
    %389 = vector.load %arg8[%c0_156, %c0_157] : memref<8x32xf32, #tpu.memory_space<vmem>>, vector<8x32xf32>
    tpu.vector_store %arg8[%c0_156, %c0_157], %388 {strides = array<i32>} : memref<8x32xf32, #tpu.memory_space<vmem>>, vector<8x32xf32>,
    %cst_158 = arith.constant 0.000000e+00 : f32
    %390 = vector.shape_cast %347 : vector<8x1xi1> to vector<8x1xi1>
    %391 = vector.broadcast %390 : vector<8x1xi1> to vector<8x32xi1>
    %392 = vector.broadcast %cst_158 : f32 to vector<8x32xf32>
    %393 = arith.select %391, %381, %392 : vector<8x32xi1>, vector<8x32xf32>
    %394 = arith.index_cast %342 : i32 to index
    %c0_159 = arith.constant 0 : index
    %c0_160 = arith.constant 0 : index
    %395 = vector.load %arg0[%394, %c0_159, %c0_160] : memref<8x8x16xf32, #tpu.memory_space<vmem>>, vector<1x8x16xf32>
    %396 = vector.shape_cast %395 : vector<1x8x16xf32> to vector<8x16xf32>
    %397 = vector.broadcast %342 : i32 to vector<8x1xi32>
    %398 = arith.cmpi sgt, %8, %397 : vector<8x1xi32>
    %c0_161 = arith.constant 0 : index
    %c0_162 = arith.constant 0 : index
    %399 = vector.load %arg9[%c0_161, %c0_162] : memref<8x32xf32, #tpu.memory_space<vmem>>, vector<8x32xf32>
    %c0_163 = arith.constant 0 : index
    %c0_164 = arith.constant 0 : index
    %400 = vector.load %arg10[%c0_163, %c0_164] : memref<8x32xf32, #tpu.memory_space<vmem>>, vector<8x32xf32>
    %401 = tpu.concatenate %396, %399 in 1 : vector<8x16xf32>, vector<8x32xf32> -> vector<8x48xf32>
    %402 = arith.truncf %401 : vector<8x48xf32> to vector<8x48xbf16>
    %c0_165 = arith.constant 0 : index
    %c0_166 = arith.constant 0 : index
    %403 = vector.load %arg4[%c0_165, %c0_166] : memref<48x128xbf16, #tpu.memory_space<vmem>>, vector<48x128xbf16>
    %cst_167 = arith.constant dense<0.000000e+00> : vector<8x128xf32>
    %404 = tpu.matmul %402, %403, %cst_167 {dimension_numbers = #tpu.dot_dimension_numbers<[1], [0], [0], [1], [0, 0, 1, 1], [], []>} : vector<8x48xbf16>, vector<48x128xbf16>, vector<8x128xf32> -> vector<8x128xf32>
    %c0_168 = arith.constant 0 : index
    %c0_169 = arith.constant 0 : index
    %405 = vector.load %arg5[%c0_168, %c0_169] : memref<1x128xf32, #tpu.memory_space<vmem>>, vector<1x128xf32>
    %406 = vector.broadcast %405 : vector<1x128xf32> to vector<8x128xf32>
    %407 = arith.addf %404, %406 : vector<8x128xf32>
    %408 = vector.extract_strided_slice %407 {offsets = [0, 0], sizes = [8, 32], strides = [1, 1]} : vector<8x128xf32> to vector<8x32xf32>
    %409 = arith.negf %408 : vector<8x32xf32>
    %410 = math.exp %409 : vector<8x32xf32>
    %cst_170 = arith.constant 1.000000e+00 : f32
    %411 = vector.broadcast %cst_170 : f32 to vector<8x32xf32>
    %412 = arith.addf %411, %410 : vector<8x32xf32>
    %413 = arith.divf %411, %412 : vector<8x32xf32>
    %414 = vector.extract_strided_slice %407 {offsets = [0, 32], sizes = [8, 32], strides = [1, 1]} : vector<8x128xf32> to vector<8x32xf32>
    %415 = arith.negf %414 : vector<8x32xf32>
    %416 = math.exp %415 : vector<8x32xf32>
    %cst_171 = arith.constant 1.000000e+00 : f32
    %417 = vector.broadcast %cst_171 : f32 to vector<8x32xf32>
    %418 = arith.addf %417, %416 : vector<8x32xf32>
    %419 = arith.divf %417, %418 : vector<8x32xf32>
    %420 = vector.extract_strided_slice %407 {offsets = [0, 64], sizes = [8, 32], strides = [1, 1]} : vector<8x128xf32> to vector<8x32xf32>
    %421 = math.tanh %420 : vector<8x32xf32>
    %422 = vector.extract_strided_slice %407 {offsets = [0, 96], sizes = [8, 32], strides = [1, 1]} : vector<8x128xf32> to vector<8x32xf32>
    %423 = arith.negf %422 : vector<8x32xf32>
    %424 = math.exp %423 : vector<8x32xf32>
    %cst_172 = arith.constant 1.000000e+00 : f32
    %425 = vector.broadcast %cst_172 : f32 to vector<8x32xf32>
    %426 = arith.addf %425, %424 : vector<8x32xf32>
    %427 = arith.divf %425, %426 : vector<8x32xf32>
    %428 = arith.mulf %419, %400 : vector<8x32xf32>
    %429 = arith.mulf %413, %421 : vector<8x32xf32>
    %430 = arith.addf %428, %429 : vector<8x32xf32>
    %431 = math.tanh %430 : vector<8x32xf32>
    %432 = arith.mulf %427, %431 : vector<8x32xf32>
    %433 = vector.shape_cast %398 : vector<8x1xi1> to vector<8x1xi1>
    %434 = vector.broadcast %433 : vector<8x1xi1> to vector<8x32xi1>
    %435 = arith.select %434, %432, %399 : vector<8x32xi1>, vector<8x32xf32>
    %c0_173 = arith.constant 0 : index
    %c0_174 = arith.constant 0 : index
    %436 = vector.load %arg9[%c0_173, %c0_174] : memref<8x32xf32, #tpu.memory_space<vmem>>, vector<8x32xf32>
    tpu.vector_store %arg9[%c0_173, %c0_174], %435 {strides = array<i32>} : memref<8x32xf32, #tpu.memory_space<vmem>>, vector<8x32xf32>,
    %437 = vector.shape_cast %398 : vector<8x1xi1> to vector<8x1xi1>
    %438 = vector.broadcast %437 : vector<8x1xi1> to vector<8x32xi1>
    %439 = arith.select %438, %430, %400 : vector<8x32xi1>, vector<8x32xf32>
    %c0_175 = arith.constant 0 : index
    %c0_176 = arith.constant 0 : index
    %440 = vector.load %arg10[%c0_175, %c0_176] : memref<8x32xf32, #tpu.memory_space<vmem>>, vector<8x32xf32>
    tpu.vector_store %arg10[%c0_175, %c0_176], %439 {strides = array<i32>} : memref<8x32xf32, #tpu.memory_space<vmem>>, vector<8x32xf32>,
    %cst_177 = arith.constant 0.000000e+00 : f32
    %441 = vector.shape_cast %398 : vector<8x1xi1> to vector<8x1xi1>
    %442 = vector.broadcast %441 : vector<8x1xi1> to vector<8x32xi1>
    %443 = vector.broadcast %cst_177 : f32 to vector<8x32xf32>
    %444 = arith.select %442, %432, %443 : vector<8x32xi1>, vector<8x32xf32>
    %445 = arith.index_cast %c3_i32 : i32 to index
    %c0_178 = arith.constant 0 : index
    %c0_179 = arith.constant 0 : index
    %446 = vector.load %arg6[%445, %c0_178, %c0_179] : memref<8x8x64xf32, #tpu.memory_space<vmem>>, vector<1x8x32xf32>
    %447 = vector.shape_cast %446 : vector<1x8x32xf32> to vector<8x32xf32>
    %448 = vector.shape_cast %393 : vector<8x32xf32> to vector<1x8x32xf32>
    tpu.vector_store %arg6[%445, %c0_178, %c0_179], %448 {strides = array<i32>} : memref<8x8x64xf32, #tpu.memory_space<vmem>>, vector<1x8x32xf32>,
    %449 = arith.index_cast %342 : i32 to index
    %c0_180 = arith.constant 0 : index
    %c32_181 = arith.constant 32 : index
    %450 = vector.load %arg6[%449, %c0_180, %c32_181] : memref<8x8x64xf32, #tpu.memory_space<vmem>>, vector<1x8x32xf32>
    %451 = vector.shape_cast %450 : vector<1x8x32xf32> to vector<8x32xf32>
    %452 = vector.shape_cast %444 : vector<8x32xf32> to vector<1x8x32xf32>
    tpu.vector_store %arg6[%449, %c0_180, %c32_181], %452 {strides = array<i32>} : memref<8x8x64xf32, #tpu.memory_space<vmem>>, vector<1x8x32xf32>,
    %c4_i32 = arith.constant 4 : i32
    %c7_i32_182 = arith.constant 7 : i32
    %453 = arith.subi %c7_i32_182, %c4_i32 : i32
    %454 = arith.index_cast %c4_i32 : i32 to index
    %c0_183 = arith.constant 0 : index
    %c0_184 = arith.constant 0 : index
    %455 = vector.load %arg0[%454, %c0_183, %c0_184] : memref<8x8x16xf32, #tpu.memory_space<vmem>>, vector<1x8x16xf32>
    %456 = vector.shape_cast %455 : vector<1x8x16xf32> to vector<8x16xf32>
    %457 = vector.broadcast %c4_i32 : i32 to vector<8x1xi32>
    %458 = arith.cmpi sgt, %8, %457 : vector<8x1xi32>
    %c0_185 = arith.constant 0 : index
    %c0_186 = arith.constant 0 : index
    %459 = vector.load %arg7[%c0_185, %c0_186] : memref<8x32xf32, #tpu.memory_space<vmem>>, vector<8x32xf32>
    %c0_187 = arith.constant 0 : index
    %c0_188 = arith.constant 0 : index
    %460 = vector.load %arg8[%c0_187, %c0_188] : memref<8x32xf32, #tpu.memory_space<vmem>>, vector<8x32xf32>
    %461 = tpu.concatenate %456, %459 in 1 : vector<8x16xf32>, vector<8x32xf32> -> vector<8x48xf32>
    %462 = arith.truncf %461 : vector<8x48xf32> to vector<8x48xbf16>
    %c0_189 = arith.constant 0 : index
    %c0_190 = arith.constant 0 : index
    %463 = vector.load %arg2[%c0_189, %c0_190] : memref<48x128xbf16, #tpu.memory_space<vmem>>, vector<48x128xbf16>
    %cst_191 = arith.constant dense<0.000000e+00> : vector<8x128xf32>
    %464 = tpu.matmul %462, %463, %cst_191 {dimension_numbers = #tpu.dot_dimension_numbers<[1], [0], [0], [1], [0, 0, 1, 1], [], []>} : vector<8x48xbf16>, vector<48x128xbf16>, vector<8x128xf32> -> vector<8x128xf32>
    %c0_192 = arith.constant 0 : index
    %c0_193 = arith.constant 0 : index
    %465 = vector.load %arg3[%c0_192, %c0_193] : memref<1x128xf32, #tpu.memory_space<vmem>>, vector<1x128xf32>
    %466 = vector.broadcast %465 : vector<1x128xf32> to vector<8x128xf32>
    %467 = arith.addf %464, %466 : vector<8x128xf32>
    %468 = vector.extract_strided_slice %467 {offsets = [0, 0], sizes = [8, 32], strides = [1, 1]} : vector<8x128xf32> to vector<8x32xf32>
    %469 = arith.negf %468 : vector<8x32xf32>
    %470 = math.exp %469 : vector<8x32xf32>
    %cst_194 = arith.constant 1.000000e+00 : f32
    %471 = vector.broadcast %cst_194 : f32 to vector<8x32xf32>
    %472 = arith.addf %471, %470 : vector<8x32xf32>
    %473 = arith.divf %471, %472 : vector<8x32xf32>
    %474 = vector.extract_strided_slice %467 {offsets = [0, 32], sizes = [8, 32], strides = [1, 1]} : vector<8x128xf32> to vector<8x32xf32>
    %475 = arith.negf %474 : vector<8x32xf32>
    %476 = math.exp %475 : vector<8x32xf32>
    %cst_195 = arith.constant 1.000000e+00 : f32
    %477 = vector.broadcast %cst_195 : f32 to vector<8x32xf32>
    %478 = arith.addf %477, %476 : vector<8x32xf32>
    %479 = arith.divf %477, %478 : vector<8x32xf32>
    %480 = vector.extract_strided_slice %467 {offsets = [0, 64], sizes = [8, 32], strides = [1, 1]} : vector<8x128xf32> to vector<8x32xf32>
    %481 = math.tanh %480 : vector<8x32xf32>
    %482 = vector.extract_strided_slice %467 {offsets = [0, 96], sizes = [8, 32], strides = [1, 1]} : vector<8x128xf32> to vector<8x32xf32>
    %483 = arith.negf %482 : vector<8x32xf32>
    %484 = math.exp %483 : vector<8x32xf32>
    %cst_196 = arith.constant 1.000000e+00 : f32
    %485 = vector.broadcast %cst_196 : f32 to vector<8x32xf32>
    %486 = arith.addf %485, %484 : vector<8x32xf32>
    %487 = arith.divf %485, %486 : vector<8x32xf32>
    %488 = arith.mulf %479, %460 : vector<8x32xf32>
    %489 = arith.mulf %473, %481 : vector<8x32xf32>
    %490 = arith.addf %488, %489 : vector<8x32xf32>
    %491 = math.tanh %490 : vector<8x32xf32>
    %492 = arith.mulf %487, %491 : vector<8x32xf32>
    %493 = vector.shape_cast %458 : vector<8x1xi1> to vector<8x1xi1>
    %494 = vector.broadcast %493 : vector<8x1xi1> to vector<8x32xi1>
    %495 = arith.select %494, %492, %459 : vector<8x32xi1>, vector<8x32xf32>
    %c0_197 = arith.constant 0 : index
    %c0_198 = arith.constant 0 : index
    %496 = vector.load %arg7[%c0_197, %c0_198] : memref<8x32xf32, #tpu.memory_space<vmem>>, vector<8x32xf32>
    tpu.vector_store %arg7[%c0_197, %c0_198], %495 {strides = array<i32>} : memref<8x32xf32, #tpu.memory_space<vmem>>, vector<8x32xf32>,
    %497 = vector.shape_cast %458 : vector<8x1xi1> to vector<8x1xi1>
    %498 = vector.broadcast %497 : vector<8x1xi1> to vector<8x32xi1>
    %499 = arith.select %498, %490, %460 : vector<8x32xi1>, vector<8x32xf32>
    %c0_199 = arith.constant 0 : index
    %c0_200 = arith.constant 0 : index
    %500 = vector.load %arg8[%c0_199, %c0_200] : memref<8x32xf32, #tpu.memory_space<vmem>>, vector<8x32xf32>
    tpu.vector_store %arg8[%c0_199, %c0_200], %499 {strides = array<i32>} : memref<8x32xf32, #tpu.memory_space<vmem>>, vector<8x32xf32>,
    %cst_201 = arith.constant 0.000000e+00 : f32
    %501 = vector.shape_cast %458 : vector<8x1xi1> to vector<8x1xi1>
    %502 = vector.broadcast %501 : vector<8x1xi1> to vector<8x32xi1>
    %503 = vector.broadcast %cst_201 : f32 to vector<8x32xf32>
    %504 = arith.select %502, %492, %503 : vector<8x32xi1>, vector<8x32xf32>
    %505 = arith.index_cast %453 : i32 to index
    %c0_202 = arith.constant 0 : index
    %c0_203 = arith.constant 0 : index
    %506 = vector.load %arg0[%505, %c0_202, %c0_203] : memref<8x8x16xf32, #tpu.memory_space<vmem>>, vector<1x8x16xf32>
    %507 = vector.shape_cast %506 : vector<1x8x16xf32> to vector<8x16xf32>
    %508 = vector.broadcast %453 : i32 to vector<8x1xi32>
    %509 = arith.cmpi sgt, %8, %508 : vector<8x1xi32>
    %c0_204 = arith.constant 0 : index
    %c0_205 = arith.constant 0 : index
    %510 = vector.load %arg9[%c0_204, %c0_205] : memref<8x32xf32, #tpu.memory_space<vmem>>, vector<8x32xf32>
    %c0_206 = arith.constant 0 : index
    %c0_207 = arith.constant 0 : index
    %511 = vector.load %arg10[%c0_206, %c0_207] : memref<8x32xf32, #tpu.memory_space<vmem>>, vector<8x32xf32>
    %512 = tpu.concatenate %507, %510 in 1 : vector<8x16xf32>, vector<8x32xf32> -> vector<8x48xf32>
    %513 = arith.truncf %512 : vector<8x48xf32> to vector<8x48xbf16>
    %c0_208 = arith.constant 0 : index
    %c0_209 = arith.constant 0 : index
    %514 = vector.load %arg4[%c0_208, %c0_209] : memref<48x128xbf16, #tpu.memory_space<vmem>>, vector<48x128xbf16>
    %cst_210 = arith.constant dense<0.000000e+00> : vector<8x128xf32>
    %515 = tpu.matmul %513, %514, %cst_210 {dimension_numbers = #tpu.dot_dimension_numbers<[1], [0], [0], [1], [0, 0, 1, 1], [], []>} : vector<8x48xbf16>, vector<48x128xbf16>, vector<8x128xf32> -> vector<8x128xf32>
    %c0_211 = arith.constant 0 : index
    %c0_212 = arith.constant 0 : index
    %516 = vector.load %arg5[%c0_211, %c0_212] : memref<1x128xf32, #tpu.memory_space<vmem>>, vector<1x128xf32>
    %517 = vector.broadcast %516 : vector<1x128xf32> to vector<8x128xf32>
    %518 = arith.addf %515, %517 : vector<8x128xf32>
    %519 = vector.extract_strided_slice %518 {offsets = [0, 0], sizes = [8, 32], strides = [1, 1]} : vector<8x128xf32> to vector<8x32xf32>
    %520 = arith.negf %519 : vector<8x32xf32>
    %521 = math.exp %520 : vector<8x32xf32>
    %cst_213 = arith.constant 1.000000e+00 : f32
    %522 = vector.broadcast %cst_213 : f32 to vector<8x32xf32>
    %523 = arith.addf %522, %521 : vector<8x32xf32>
    %524 = arith.divf %522, %523 : vector<8x32xf32>
    %525 = vector.extract_strided_slice %518 {offsets = [0, 32], sizes = [8, 32], strides = [1, 1]} : vector<8x128xf32> to vector<8x32xf32>
    %526 = arith.negf %525 : vector<8x32xf32>
    %527 = math.exp %526 : vector<8x32xf32>
    %cst_214 = arith.constant 1.000000e+00 : f32
    %528 = vector.broadcast %cst_214 : f32 to vector<8x32xf32>
    %529 = arith.addf %528, %527 : vector<8x32xf32>
    %530 = arith.divf %528, %529 : vector<8x32xf32>
    %531 = vector.extract_strided_slice %518 {offsets = [0, 64], sizes = [8, 32], strides = [1, 1]} : vector<8x128xf32> to vector<8x32xf32>
    %532 = math.tanh %531 : vector<8x32xf32>
    %533 = vector.extract_strided_slice %518 {offsets = [0, 96], sizes = [8, 32], strides = [1, 1]} : vector<8x128xf32> to vector<8x32xf32>
    %534 = arith.negf %533 : vector<8x32xf32>
    %535 = math.exp %534 : vector<8x32xf32>
    %cst_215 = arith.constant 1.000000e+00 : f32
    %536 = vector.broadcast %cst_215 : f32 to vector<8x32xf32>
    %537 = arith.addf %536, %535 : vector<8x32xf32>
    %538 = arith.divf %536, %537 : vector<8x32xf32>
    %539 = arith.mulf %530, %511 : vector<8x32xf32>
    %540 = arith.mulf %524, %532 : vector<8x32xf32>
    %541 = arith.addf %539, %540 : vector<8x32xf32>
    %542 = math.tanh %541 : vector<8x32xf32>
    %543 = arith.mulf %538, %542 : vector<8x32xf32>
    %544 = vector.shape_cast %509 : vector<8x1xi1> to vector<8x1xi1>
    %545 = vector.broadcast %544 : vector<8x1xi1> to vector<8x32xi1>
    %546 = arith.select %545, %543, %510 : vector<8x32xi1>, vector<8x32xf32>
    %c0_216 = arith.constant 0 : index
    %c0_217 = arith.constant 0 : index
    %547 = vector.load %arg9[%c0_216, %c0_217] : memref<8x32xf32, #tpu.memory_space<vmem>>, vector<8x32xf32>
    tpu.vector_store %arg9[%c0_216, %c0_217], %546 {strides = array<i32>} : memref<8x32xf32, #tpu.memory_space<vmem>>, vector<8x32xf32>,
    %548 = vector.shape_cast %509 : vector<8x1xi1> to vector<8x1xi1>
    %549 = vector.broadcast %548 : vector<8x1xi1> to vector<8x32xi1>
    %550 = arith.select %549, %541, %511 : vector<8x32xi1>, vector<8x32xf32>
    %c0_218 = arith.constant 0 : index
    %c0_219 = arith.constant 0 : index
    %551 = vector.load %arg10[%c0_218, %c0_219] : memref<8x32xf32, #tpu.memory_space<vmem>>, vector<8x32xf32>
    tpu.vector_store %arg10[%c0_218, %c0_219], %550 {strides = array<i32>} : memref<8x32xf32, #tpu.memory_space<vmem>>, vector<8x32xf32>,
    %cst_220 = arith.constant 0.000000e+00 : f32
    %552 = vector.shape_cast %509 : vector<8x1xi1> to vector<8x1xi1>
    %553 = vector.broadcast %552 : vector<8x1xi1> to vector<8x32xi1>
    %554 = vector.broadcast %cst_220 : f32 to vector<8x32xf32>
    %555 = arith.select %553, %543, %554 : vector<8x32xi1>, vector<8x32xf32>
    %556 = arith.index_cast %c4_i32 : i32 to index
    %c0_221 = arith.constant 0 : index
    %c0_222 = arith.constant 0 : index
    %557 = vector.load %arg6[%556, %c0_221, %c0_222] : memref<8x8x64xf32, #tpu.memory_space<vmem>>, vector<1x8x32xf32>
    %558 = vector.shape_cast %557 : vector<1x8x32xf32> to vector<8x32xf32>
    %559 = vector.shape_cast %504 : vector<8x32xf32> to vector<1x8x32xf32>
    tpu.vector_store %arg6[%556, %c0_221, %c0_222], %559 {strides = array<i32>} : memref<8x8x64xf32, #tpu.memory_space<vmem>>, vector<1x8x32xf32>,
    %560 = arith.index_cast %453 : i32 to index
    %c0_223 = arith.constant 0 : index
    %c32_224 = arith.constant 32 : index
    %561 = vector.load %arg6[%560, %c0_223, %c32_224] : memref<8x8x64xf32, #tpu.memory_space<vmem>>, vector<1x8x32xf32>
    %562 = vector.shape_cast %561 : vector<1x8x32xf32> to vector<8x32xf32>
    %563 = vector.shape_cast %555 : vector<8x32xf32> to vector<1x8x32xf32>
    tpu.vector_store %arg6[%560, %c0_223, %c32_224], %563 {strides = array<i32>} : memref<8x8x64xf32, #tpu.memory_space<vmem>>, vector<1x8x32xf32>,
    %c5_i32 = arith.constant 5 : i32
    %c7_i32_225 = arith.constant 7 : i32
    %564 = arith.subi %c7_i32_225, %c5_i32 : i32
    %565 = arith.index_cast %c5_i32 : i32 to index
    %c0_226 = arith.constant 0 : index
    %c0_227 = arith.constant 0 : index
    %566 = vector.load %arg0[%565, %c0_226, %c0_227] : memref<8x8x16xf32, #tpu.memory_space<vmem>>, vector<1x8x16xf32>
    %567 = vector.shape_cast %566 : vector<1x8x16xf32> to vector<8x16xf32>
    %568 = vector.broadcast %c5_i32 : i32 to vector<8x1xi32>
    %569 = arith.cmpi sgt, %8, %568 : vector<8x1xi32>
    %c0_228 = arith.constant 0 : index
    %c0_229 = arith.constant 0 : index
    %570 = vector.load %arg7[%c0_228, %c0_229] : memref<8x32xf32, #tpu.memory_space<vmem>>, vector<8x32xf32>
    %c0_230 = arith.constant 0 : index
    %c0_231 = arith.constant 0 : index
    %571 = vector.load %arg8[%c0_230, %c0_231] : memref<8x32xf32, #tpu.memory_space<vmem>>, vector<8x32xf32>
    %572 = tpu.concatenate %567, %570 in 1 : vector<8x16xf32>, vector<8x32xf32> -> vector<8x48xf32>
    %573 = arith.truncf %572 : vector<8x48xf32> to vector<8x48xbf16>
    %c0_232 = arith.constant 0 : index
    %c0_233 = arith.constant 0 : index
    %574 = vector.load %arg2[%c0_232, %c0_233] : memref<48x128xbf16, #tpu.memory_space<vmem>>, vector<48x128xbf16>
    %cst_234 = arith.constant dense<0.000000e+00> : vector<8x128xf32>
    %575 = tpu.matmul %573, %574, %cst_234 {dimension_numbers = #tpu.dot_dimension_numbers<[1], [0], [0], [1], [0, 0, 1, 1], [], []>} : vector<8x48xbf16>, vector<48x128xbf16>, vector<8x128xf32> -> vector<8x128xf32>
    %c0_235 = arith.constant 0 : index
    %c0_236 = arith.constant 0 : index
    %576 = vector.load %arg3[%c0_235, %c0_236] : memref<1x128xf32, #tpu.memory_space<vmem>>, vector<1x128xf32>
    %577 = vector.broadcast %576 : vector<1x128xf32> to vector<8x128xf32>
    %578 = arith.addf %575, %577 : vector<8x128xf32>
    %579 = vector.extract_strided_slice %578 {offsets = [0, 0], sizes = [8, 32], strides = [1, 1]} : vector<8x128xf32> to vector<8x32xf32>
    %580 = arith.negf %579 : vector<8x32xf32>
    %581 = math.exp %580 : vector<8x32xf32>
    %cst_237 = arith.constant 1.000000e+00 : f32
    %582 = vector.broadcast %cst_237 : f32 to vector<8x32xf32>
    %583 = arith.addf %582, %581 : vector<8x32xf32>
    %584 = arith.divf %582, %583 : vector<8x32xf32>
    %585 = vector.extract_strided_slice %578 {offsets = [0, 32], sizes = [8, 32], strides = [1, 1]} : vector<8x128xf32> to vector<8x32xf32>
    %586 = arith.negf %585 : vector<8x32xf32>
    %587 = math.exp %586 : vector<8x32xf32>
    %cst_238 = arith.constant 1.000000e+00 : f32
    %588 = vector.broadcast %cst_238 : f32 to vector<8x32xf32>
    %589 = arith.addf %588, %587 : vector<8x32xf32>
    %590 = arith.divf %588, %589 : vector<8x32xf32>
    %591 = vector.extract_strided_slice %578 {offsets = [0, 64], sizes = [8, 32], strides = [1, 1]} : vector<8x128xf32> to vector<8x32xf32>
    %592 = math.tanh %591 : vector<8x32xf32>
    %593 = vector.extract_strided_slice %578 {offsets = [0, 96], sizes = [8, 32], strides = [1, 1]} : vector<8x128xf32> to vector<8x32xf32>
    %594 = arith.negf %593 : vector<8x32xf32>
    %595 = math.exp %594 : vector<8x32xf32>
    %cst_239 = arith.constant 1.000000e+00 : f32
    %596 = vector.broadcast %cst_239 : f32 to vector<8x32xf32>
    %597 = arith.addf %596, %595 : vector<8x32xf32>
    %598 = arith.divf %596, %597 : vector<8x32xf32>
    %599 = arith.mulf %590, %571 : vector<8x32xf32>
    %600 = arith.mulf %584, %592 : vector<8x32xf32>
    %601 = arith.addf %599, %600 : vector<8x32xf32>
    %602 = math.tanh %601 : vector<8x32xf32>
    %603 = arith.mulf %598, %602 : vector<8x32xf32>
    %604 = vector.shape_cast %569 : vector<8x1xi1> to vector<8x1xi1>
    %605 = vector.broadcast %604 : vector<8x1xi1> to vector<8x32xi1>
    %606 = arith.select %605, %603, %570 : vector<8x32xi1>, vector<8x32xf32>
    %c0_240 = arith.constant 0 : index
    %c0_241 = arith.constant 0 : index
    %607 = vector.load %arg7[%c0_240, %c0_241] : memref<8x32xf32, #tpu.memory_space<vmem>>, vector<8x32xf32>
    tpu.vector_store %arg7[%c0_240, %c0_241], %606 {strides = array<i32>} : memref<8x32xf32, #tpu.memory_space<vmem>>, vector<8x32xf32>,
    %608 = vector.shape_cast %569 : vector<8x1xi1> to vector<8x1xi1>
    %609 = vector.broadcast %608 : vector<8x1xi1> to vector<8x32xi1>
    %610 = arith.select %609, %601, %571 : vector<8x32xi1>, vector<8x32xf32>
    %c0_242 = arith.constant 0 : index
    %c0_243 = arith.constant 0 : index
    %611 = vector.load %arg8[%c0_242, %c0_243] : memref<8x32xf32, #tpu.memory_space<vmem>>, vector<8x32xf32>
    tpu.vector_store %arg8[%c0_242, %c0_243], %610 {strides = array<i32>} : memref<8x32xf32, #tpu.memory_space<vmem>>, vector<8x32xf32>,
    %cst_244 = arith.constant 0.000000e+00 : f32
    %612 = vector.shape_cast %569 : vector<8x1xi1> to vector<8x1xi1>
    %613 = vector.broadcast %612 : vector<8x1xi1> to vector<8x32xi1>
    %614 = vector.broadcast %cst_244 : f32 to vector<8x32xf32>
    %615 = arith.select %613, %603, %614 : vector<8x32xi1>, vector<8x32xf32>
    %616 = arith.index_cast %564 : i32 to index
    %c0_245 = arith.constant 0 : index
    %c0_246 = arith.constant 0 : index
    %617 = vector.load %arg0[%616, %c0_245, %c0_246] : memref<8x8x16xf32, #tpu.memory_space<vmem>>, vector<1x8x16xf32>
    %618 = vector.shape_cast %617 : vector<1x8x16xf32> to vector<8x16xf32>
    %619 = vector.broadcast %564 : i32 to vector<8x1xi32>
    %620 = arith.cmpi sgt, %8, %619 : vector<8x1xi32>
    %c0_247 = arith.constant 0 : index
    %c0_248 = arith.constant 0 : index
    %621 = vector.load %arg9[%c0_247, %c0_248] : memref<8x32xf32, #tpu.memory_space<vmem>>, vector<8x32xf32>
    %c0_249 = arith.constant 0 : index
    %c0_250 = arith.constant 0 : index
    %622 = vector.load %arg10[%c0_249, %c0_250] : memref<8x32xf32, #tpu.memory_space<vmem>>, vector<8x32xf32>
    %623 = tpu.concatenate %618, %621 in 1 : vector<8x16xf32>, vector<8x32xf32> -> vector<8x48xf32>
    %624 = arith.truncf %623 : vector<8x48xf32> to vector<8x48xbf16>
    %c0_251 = arith.constant 0 : index
    %c0_252 = arith.constant 0 : index
    %625 = vector.load %arg4[%c0_251, %c0_252] : memref<48x128xbf16, #tpu.memory_space<vmem>>, vector<48x128xbf16>
    %cst_253 = arith.constant dense<0.000000e+00> : vector<8x128xf32>
    %626 = tpu.matmul %624, %625, %cst_253 {dimension_numbers = #tpu.dot_dimension_numbers<[1], [0], [0], [1], [0, 0, 1, 1], [], []>} : vector<8x48xbf16>, vector<48x128xbf16>, vector<8x128xf32> -> vector<8x128xf32>
    %c0_254 = arith.constant 0 : index
    %c0_255 = arith.constant 0 : index
    %627 = vector.load %arg5[%c0_254, %c0_255] : memref<1x128xf32, #tpu.memory_space<vmem>>, vector<1x128xf32>
    %628 = vector.broadcast %627 : vector<1x128xf32> to vector<8x128xf32>
    %629 = arith.addf %626, %628 : vector<8x128xf32>
    %630 = vector.extract_strided_slice %629 {offsets = [0, 0], sizes = [8, 32], strides = [1, 1]} : vector<8x128xf32> to vector<8x32xf32>
    %631 = arith.negf %630 : vector<8x32xf32>
    %632 = math.exp %631 : vector<8x32xf32>
    %cst_256 = arith.constant 1.000000e+00 : f32
    %633 = vector.broadcast %cst_256 : f32 to vector<8x32xf32>
    %634 = arith.addf %633, %632 : vector<8x32xf32>
    %635 = arith.divf %633, %634 : vector<8x32xf32>
    %636 = vector.extract_strided_slice %629 {offsets = [0, 32], sizes = [8, 32], strides = [1, 1]} : vector<8x128xf32> to vector<8x32xf32>
    %637 = arith.negf %636 : vector<8x32xf32>
    %638 = math.exp %637 : vector<8x32xf32>
    %cst_257 = arith.constant 1.000000e+00 : f32
    %639 = vector.broadcast %cst_257 : f32 to vector<8x32xf32>
    %640 = arith.addf %639, %638 : vector<8x32xf32>
    %641 = arith.divf %639, %640 : vector<8x32xf32>
    %642 = vector.extract_strided_slice %629 {offsets = [0, 64], sizes = [8, 32], strides = [1, 1]} : vector<8x128xf32> to vector<8x32xf32>
    %643 = math.tanh %642 : vector<8x32xf32>
    %644 = vector.extract_strided_slice %629 {offsets = [0, 96], sizes = [8, 32], strides = [1, 1]} : vector<8x128xf32> to vector<8x32xf32>
    %645 = arith.negf %644 : vector<8x32xf32>
    %646 = math.exp %645 : vector<8x32xf32>
    %cst_258 = arith.constant 1.000000e+00 : f32
    %647 = vector.broadcast %cst_258 : f32 to vector<8x32xf32>
    %648 = arith.addf %647, %646 : vector<8x32xf32>
    %649 = arith.divf %647, %648 : vector<8x32xf32>
    %650 = arith.mulf %641, %622 : vector<8x32xf32>
    %651 = arith.mulf %635, %643 : vector<8x32xf32>
    %652 = arith.addf %650, %651 : vector<8x32xf32>
    %653 = math.tanh %652 : vector<8x32xf32>
    %654 = arith.mulf %649, %653 : vector<8x32xf32>
    %655 = vector.shape_cast %620 : vector<8x1xi1> to vector<8x1xi1>
    %656 = vector.broadcast %655 : vector<8x1xi1> to vector<8x32xi1>
    %657 = arith.select %656, %654, %621 : vector<8x32xi1>, vector<8x32xf32>
    %c0_259 = arith.constant 0 : index
    %c0_260 = arith.constant 0 : index
    %658 = vector.load %arg9[%c0_259, %c0_260] : memref<8x32xf32, #tpu.memory_space<vmem>>, vector<8x32xf32>
    tpu.vector_store %arg9[%c0_259, %c0_260], %657 {strides = array<i32>} : memref<8x32xf32, #tpu.memory_space<vmem>>, vector<8x32xf32>,
    %659 = vector.shape_cast %620 : vector<8x1xi1> to vector<8x1xi1>
    %660 = vector.broadcast %659 : vector<8x1xi1> to vector<8x32xi1>
    %661 = arith.select %660, %652, %622 : vector<8x32xi1>, vector<8x32xf32>
    %c0_261 = arith.constant 0 : index
    %c0_262 = arith.constant 0 : index
    %662 = vector.load %arg10[%c0_261, %c0_262] : memref<8x32xf32, #tpu.memory_space<vmem>>, vector<8x32xf32>
    tpu.vector_store %arg10[%c0_261, %c0_262], %661 {strides = array<i32>} : memref<8x32xf32, #tpu.memory_space<vmem>>, vector<8x32xf32>,
    %cst_263 = arith.constant 0.000000e+00 : f32
    %663 = vector.shape_cast %620 : vector<8x1xi1> to vector<8x1xi1>
    %664 = vector.broadcast %663 : vector<8x1xi1> to vector<8x32xi1>
    %665 = vector.broadcast %cst_263 : f32 to vector<8x32xf32>
    %666 = arith.select %664, %654, %665 : vector<8x32xi1>, vector<8x32xf32>
    %667 = arith.index_cast %c5_i32 : i32 to index
    %c0_264 = arith.constant 0 : index
    %c0_265 = arith.constant 0 : index
    %668 = vector.load %arg6[%667, %c0_264, %c0_265] : memref<8x8x64xf32, #tpu.memory_space<vmem>>, vector<1x8x32xf32>
    %669 = vector.shape_cast %668 : vector<1x8x32xf32> to vector<8x32xf32>
    %670 = vector.shape_cast %615 : vector<8x32xf32> to vector<1x8x32xf32>
    tpu.vector_store %arg6[%667, %c0_264, %c0_265], %670 {strides = array<i32>} : memref<8x8x64xf32, #tpu.memory_space<vmem>>, vector<1x8x32xf32>,
    %671 = arith.index_cast %564 : i32 to index
    %c0_266 = arith.constant 0 : index
    %c32_267 = arith.constant 32 : index
    %672 = vector.load %arg6[%671, %c0_266, %c32_267] : memref<8x8x64xf32, #tpu.memory_space<vmem>>, vector<1x8x32xf32>
    %673 = vector.shape_cast %672 : vector<1x8x32xf32> to vector<8x32xf32>
    %674 = vector.shape_cast %666 : vector<8x32xf32> to vector<1x8x32xf32>
    tpu.vector_store %arg6[%671, %c0_266, %c32_267], %674 {strides = array<i32>} : memref<8x8x64xf32, #tpu.memory_space<vmem>>, vector<1x8x32xf32>,
    %c6_i32 = arith.constant 6 : i32
    %c7_i32_268 = arith.constant 7 : i32
    %675 = arith.subi %c7_i32_268, %c6_i32 : i32
    %676 = arith.index_cast %c6_i32 : i32 to index
    %c0_269 = arith.constant 0 : index
    %c0_270 = arith.constant 0 : index
    %677 = vector.load %arg0[%676, %c0_269, %c0_270] : memref<8x8x16xf32, #tpu.memory_space<vmem>>, vector<1x8x16xf32>
    %678 = vector.shape_cast %677 : vector<1x8x16xf32> to vector<8x16xf32>
    %679 = vector.broadcast %c6_i32 : i32 to vector<8x1xi32>
    %680 = arith.cmpi sgt, %8, %679 : vector<8x1xi32>
    %c0_271 = arith.constant 0 : index
    %c0_272 = arith.constant 0 : index
    %681 = vector.load %arg7[%c0_271, %c0_272] : memref<8x32xf32, #tpu.memory_space<vmem>>, vector<8x32xf32>
    %c0_273 = arith.constant 0 : index
    %c0_274 = arith.constant 0 : index
    %682 = vector.load %arg8[%c0_273, %c0_274] : memref<8x32xf32, #tpu.memory_space<vmem>>, vector<8x32xf32>
    %683 = tpu.concatenate %678, %681 in 1 : vector<8x16xf32>, vector<8x32xf32> -> vector<8x48xf32>
    %684 = arith.truncf %683 : vector<8x48xf32> to vector<8x48xbf16>
    %c0_275 = arith.constant 0 : index
    %c0_276 = arith.constant 0 : index
    %685 = vector.load %arg2[%c0_275, %c0_276] : memref<48x128xbf16, #tpu.memory_space<vmem>>, vector<48x128xbf16>
    %cst_277 = arith.constant dense<0.000000e+00> : vector<8x128xf32>
    %686 = tpu.matmul %684, %685, %cst_277 {dimension_numbers = #tpu.dot_dimension_numbers<[1], [0], [0], [1], [0, 0, 1, 1], [], []>} : vector<8x48xbf16>, vector<48x128xbf16>, vector<8x128xf32> -> vector<8x128xf32>
    %c0_278 = arith.constant 0 : index
    %c0_279 = arith.constant 0 : index
    %687 = vector.load %arg3[%c0_278, %c0_279] : memref<1x128xf32, #tpu.memory_space<vmem>>, vector<1x128xf32>
    %688 = vector.broadcast %687 : vector<1x128xf32> to vector<8x128xf32>
    %689 = arith.addf %686, %688 : vector<8x128xf32>
    %690 = vector.extract_strided_slice %689 {offsets = [0, 0], sizes = [8, 32], strides = [1, 1]} : vector<8x128xf32> to vector<8x32xf32>
    %691 = arith.negf %690 : vector<8x32xf32>
    %692 = math.exp %691 : vector<8x32xf32>
    %cst_280 = arith.constant 1.000000e+00 : f32
    %693 = vector.broadcast %cst_280 : f32 to vector<8x32xf32>
    %694 = arith.addf %693, %692 : vector<8x32xf32>
    %695 = arith.divf %693, %694 : vector<8x32xf32>
    %696 = vector.extract_strided_slice %689 {offsets = [0, 32], sizes = [8, 32], strides = [1, 1]} : vector<8x128xf32> to vector<8x32xf32>
    %697 = arith.negf %696 : vector<8x32xf32>
    %698 = math.exp %697 : vector<8x32xf32>
    %cst_281 = arith.constant 1.000000e+00 : f32
    %699 = vector.broadcast %cst_281 : f32 to vector<8x32xf32>
    %700 = arith.addf %699, %698 : vector<8x32xf32>
    %701 = arith.divf %699, %700 : vector<8x32xf32>
    %702 = vector.extract_strided_slice %689 {offsets = [0, 64], sizes = [8, 32], strides = [1, 1]} : vector<8x128xf32> to vector<8x32xf32>
    %703 = math.tanh %702 : vector<8x32xf32>
    %704 = vector.extract_strided_slice %689 {offsets = [0, 96], sizes = [8, 32], strides = [1, 1]} : vector<8x128xf32> to vector<8x32xf32>
    %705 = arith.negf %704 : vector<8x32xf32>
    %706 = math.exp %705 : vector<8x32xf32>
    %cst_282 = arith.constant 1.000000e+00 : f32
    %707 = vector.broadcast %cst_282 : f32 to vector<8x32xf32>
    %708 = arith.addf %707, %706 : vector<8x32xf32>
    %709 = arith.divf %707, %708 : vector<8x32xf32>
    %710 = arith.mulf %701, %682 : vector<8x32xf32>
    %711 = arith.mulf %695, %703 : vector<8x32xf32>
    %712 = arith.addf %710, %711 : vector<8x32xf32>
    %713 = math.tanh %712 : vector<8x32xf32>
    %714 = arith.mulf %709, %713 : vector<8x32xf32>
    %715 = vector.shape_cast %680 : vector<8x1xi1> to vector<8x1xi1>
    %716 = vector.broadcast %715 : vector<8x1xi1> to vector<8x32xi1>
    %717 = arith.select %716, %714, %681 : vector<8x32xi1>, vector<8x32xf32>
    %c0_283 = arith.constant 0 : index
    %c0_284 = arith.constant 0 : index
    %718 = vector.load %arg7[%c0_283, %c0_284] : memref<8x32xf32, #tpu.memory_space<vmem>>, vector<8x32xf32>
    tpu.vector_store %arg7[%c0_283, %c0_284], %717 {strides = array<i32>} : memref<8x32xf32, #tpu.memory_space<vmem>>, vector<8x32xf32>,
    %719 = vector.shape_cast %680 : vector<8x1xi1> to vector<8x1xi1>
    %720 = vector.broadcast %719 : vector<8x1xi1> to vector<8x32xi1>
    %721 = arith.select %720, %712, %682 : vector<8x32xi1>, vector<8x32xf32>
    %c0_285 = arith.constant 0 : index
    %c0_286 = arith.constant 0 : index
    %722 = vector.load %arg8[%c0_285, %c0_286] : memref<8x32xf32, #tpu.memory_space<vmem>>, vector<8x32xf32>
    tpu.vector_store %arg8[%c0_285, %c0_286], %721 {strides = array<i32>} : memref<8x32xf32, #tpu.memory_space<vmem>>, vector<8x32xf32>,
    %cst_287 = arith.constant 0.000000e+00 : f32
    %723 = vector.shape_cast %680 : vector<8x1xi1> to vector<8x1xi1>
    %724 = vector.broadcast %723 : vector<8x1xi1> to vector<8x32xi1>
    %725 = vector.broadcast %cst_287 : f32 to vector<8x32xf32>
    %726 = arith.select %724, %714, %725 : vector<8x32xi1>, vector<8x32xf32>
    %727 = arith.index_cast %675 : i32 to index
    %c0_288 = arith.constant 0 : index
    %c0_289 = arith.constant 0 : index
    %728 = vector.load %arg0[%727, %c0_288, %c0_289] : memref<8x8x16xf32, #tpu.memory_space<vmem>>, vector<1x8x16xf32>
    %729 = vector.shape_cast %728 : vector<1x8x16xf32> to vector<8x16xf32>
    %730 = vector.broadcast %675 : i32 to vector<8x1xi32>
    %731 = arith.cmpi sgt, %8, %730 : vector<8x1xi32>
    %c0_290 = arith.constant 0 : index
    %c0_291 = arith.constant 0 : index
    %732 = vector.load %arg9[%c0_290, %c0_291] : memref<8x32xf32, #tpu.memory_space<vmem>>, vector<8x32xf32>
    %c0_292 = arith.constant 0 : index
    %c0_293 = arith.constant 0 : index
    %733 = vector.load %arg10[%c0_292, %c0_293] : memref<8x32xf32, #tpu.memory_space<vmem>>, vector<8x32xf32>
    %734 = tpu.concatenate %729, %732 in 1 : vector<8x16xf32>, vector<8x32xf32> -> vector<8x48xf32>
    %735 = arith.truncf %734 : vector<8x48xf32> to vector<8x48xbf16>
    %c0_294 = arith.constant 0 : index
    %c0_295 = arith.constant 0 : index
    %736 = vector.load %arg4[%c0_294, %c0_295] : memref<48x128xbf16, #tpu.memory_space<vmem>>, vector<48x128xbf16>
    %cst_296 = arith.constant dense<0.000000e+00> : vector<8x128xf32>
    %737 = tpu.matmul %735, %736, %cst_296 {dimension_numbers = #tpu.dot_dimension_numbers<[1], [0], [0], [1], [0, 0, 1, 1], [], []>} : vector<8x48xbf16>, vector<48x128xbf16>, vector<8x128xf32> -> vector<8x128xf32>
    %c0_297 = arith.constant 0 : index
    %c0_298 = arith.constant 0 : index
    %738 = vector.load %arg5[%c0_297, %c0_298] : memref<1x128xf32, #tpu.memory_space<vmem>>, vector<1x128xf32>
    %739 = vector.broadcast %738 : vector<1x128xf32> to vector<8x128xf32>
    %740 = arith.addf %737, %739 : vector<8x128xf32>
    %741 = vector.extract_strided_slice %740 {offsets = [0, 0], sizes = [8, 32], strides = [1, 1]} : vector<8x128xf32> to vector<8x32xf32>
    %742 = arith.negf %741 : vector<8x32xf32>
    %743 = math.exp %742 : vector<8x32xf32>
    %cst_299 = arith.constant 1.000000e+00 : f32
    %744 = vector.broadcast %cst_299 : f32 to vector<8x32xf32>
    %745 = arith.addf %744, %743 : vector<8x32xf32>
    %746 = arith.divf %744, %745 : vector<8x32xf32>
    %747 = vector.extract_strided_slice %740 {offsets = [0, 32], sizes = [8, 32], strides = [1, 1]} : vector<8x128xf32> to vector<8x32xf32>
    %748 = arith.negf %747 : vector<8x32xf32>
    %749 = math.exp %748 : vector<8x32xf32>
    %cst_300 = arith.constant 1.000000e+00 : f32
    %750 = vector.broadcast %cst_300 : f32 to vector<8x32xf32>
    %751 = arith.addf %750, %749 : vector<8x32xf32>
    %752 = arith.divf %750, %751 : vector<8x32xf32>
    %753 = vector.extract_strided_slice %740 {offsets = [0, 64], sizes = [8, 32], strides = [1, 1]} : vector<8x128xf32> to vector<8x32xf32>
    %754 = math.tanh %753 : vector<8x32xf32>
    %755 = vector.extract_strided_slice %740 {offsets = [0, 96], sizes = [8, 32], strides = [1, 1]} : vector<8x128xf32> to vector<8x32xf32>
    %756 = arith.negf %755 : vector<8x32xf32>
    %757 = math.exp %756 : vector<8x32xf32>
    %cst_301 = arith.constant 1.000000e+00 : f32
    %758 = vector.broadcast %cst_301 : f32 to vector<8x32xf32>
    %759 = arith.addf %758, %757 : vector<8x32xf32>
    %760 = arith.divf %758, %759 : vector<8x32xf32>
    %761 = arith.mulf %752, %733 : vector<8x32xf32>
    %762 = arith.mulf %746, %754 : vector<8x32xf32>
    %763 = arith.addf %761, %762 : vector<8x32xf32>
    %764 = math.tanh %763 : vector<8x32xf32>
    %765 = arith.mulf %760, %764 : vector<8x32xf32>
    %766 = vector.shape_cast %731 : vector<8x1xi1> to vector<8x1xi1>
    %767 = vector.broadcast %766 : vector<8x1xi1> to vector<8x32xi1>
    %768 = arith.select %767, %765, %732 : vector<8x32xi1>, vector<8x32xf32>
    %c0_302 = arith.constant 0 : index
    %c0_303 = arith.constant 0 : index
    %769 = vector.load %arg9[%c0_302, %c0_303] : memref<8x32xf32, #tpu.memory_space<vmem>>, vector<8x32xf32>
    tpu.vector_store %arg9[%c0_302, %c0_303], %768 {strides = array<i32>} : memref<8x32xf32, #tpu.memory_space<vmem>>, vector<8x32xf32>,
    %770 = vector.shape_cast %731 : vector<8x1xi1> to vector<8x1xi1>
    %771 = vector.broadcast %770 : vector<8x1xi1> to vector<8x32xi1>
    %772 = arith.select %771, %763, %733 : vector<8x32xi1>, vector<8x32xf32>
    %c0_304 = arith.constant 0 : index
    %c0_305 = arith.constant 0 : index
    %773 = vector.load %arg10[%c0_304, %c0_305] : memref<8x32xf32, #tpu.memory_space<vmem>>, vector<8x32xf32>
    tpu.vector_store %arg10[%c0_304, %c0_305], %772 {strides = array<i32>} : memref<8x32xf32, #tpu.memory_space<vmem>>, vector<8x32xf32>,
    %cst_306 = arith.constant 0.000000e+00 : f32
    %774 = vector.shape_cast %731 : vector<8x1xi1> to vector<8x1xi1>
    %775 = vector.broadcast %774 : vector<8x1xi1> to vector<8x32xi1>
    %776 = vector.broadcast %cst_306 : f32 to vector<8x32xf32>
    %777 = arith.select %775, %765, %776 : vector<8x32xi1>, vector<8x32xf32>
    %778 = arith.index_cast %c6_i32 : i32 to index
    %c0_307 = arith.constant 0 : index
    %c0_308 = arith.constant 0 : index
    %779 = vector.load %arg6[%778, %c0_307, %c0_308] : memref<8x8x64xf32, #tpu.memory_space<vmem>>, vector<1x8x32xf32>
    %780 = vector.shape_cast %779 : vector<1x8x32xf32> to vector<8x32xf32>
    %781 = vector.shape_cast %726 : vector<8x32xf32> to vector<1x8x32xf32>
    tpu.vector_store %arg6[%778, %c0_307, %c0_308], %781 {strides = array<i32>} : memref<8x8x64xf32, #tpu.memory_space<vmem>>, vector<1x8x32xf32>,
    %782 = arith.index_cast %675 : i32 to index
    %c0_309 = arith.constant 0 : index
    %c32_310 = arith.constant 32 : index
    %783 = vector.load %arg6[%782, %c0_309, %c32_310] : memref<8x8x64xf32, #tpu.memory_space<vmem>>, vector<1x8x32xf32>
    %784 = vector.shape_cast %783 : vector<1x8x32xf32> to vector<8x32xf32>
    %785 = vector.shape_cast %777 : vector<8x32xf32> to vector<1x8x32xf32>
    tpu.vector_store %arg6[%782, %c0_309, %c32_310], %785 {strides = array<i32>} : memref<8x8x64xf32, #tpu.memory_space<vmem>>, vector<1x8x32xf32>,
    %c7_i32_311 = arith.constant 7 : i32
    %c7_i32_312 = arith.constant 7 : i32
    %786 = arith.subi %c7_i32_312, %c7_i32_311 : i32
    %787 = arith.index_cast %c7_i32_311 : i32 to index
    %c0_313 = arith.constant 0 : index
    %c0_314 = arith.constant 0 : index
    %788 = vector.load %arg0[%787, %c0_313, %c0_314] : memref<8x8x16xf32, #tpu.memory_space<vmem>>, vector<1x8x16xf32>
    %789 = vector.shape_cast %788 : vector<1x8x16xf32> to vector<8x16xf32>
    %790 = vector.broadcast %c7_i32_311 : i32 to vector<8x1xi32>
    %791 = arith.cmpi sgt, %8, %790 : vector<8x1xi32>
    %c0_315 = arith.constant 0 : index
    %c0_316 = arith.constant 0 : index
    %792 = vector.load %arg7[%c0_315, %c0_316] : memref<8x32xf32, #tpu.memory_space<vmem>>, vector<8x32xf32>
    %c0_317 = arith.constant 0 : index
    %c0_318 = arith.constant 0 : index
    %793 = vector.load %arg8[%c0_317, %c0_318] : memref<8x32xf32, #tpu.memory_space<vmem>>, vector<8x32xf32>
    %794 = tpu.concatenate %789, %792 in 1 : vector<8x16xf32>, vector<8x32xf32> -> vector<8x48xf32>
    %795 = arith.truncf %794 : vector<8x48xf32> to vector<8x48xbf16>
    %c0_319 = arith.constant 0 : index
    %c0_320 = arith.constant 0 : index
    %796 = vector.load %arg2[%c0_319, %c0_320] : memref<48x128xbf16, #tpu.memory_space<vmem>>, vector<48x128xbf16>
    %cst_321 = arith.constant dense<0.000000e+00> : vector<8x128xf32>
    %797 = tpu.matmul %795, %796, %cst_321 {dimension_numbers = #tpu.dot_dimension_numbers<[1], [0], [0], [1], [0, 0, 1, 1], [], []>} : vector<8x48xbf16>, vector<48x128xbf16>, vector<8x128xf32> -> vector<8x128xf32>
    %c0_322 = arith.constant 0 : index
    %c0_323 = arith.constant 0 : index
    %798 = vector.load %arg3[%c0_322, %c0_323] : memref<1x128xf32, #tpu.memory_space<vmem>>, vector<1x128xf32>
    %799 = vector.broadcast %798 : vector<1x128xf32> to vector<8x128xf32>
    %800 = arith.addf %797, %799 : vector<8x128xf32>
    %801 = vector.extract_strided_slice %800 {offsets = [0, 0], sizes = [8, 32], strides = [1, 1]} : vector<8x128xf32> to vector<8x32xf32>
    %802 = arith.negf %801 : vector<8x32xf32>
    %803 = math.exp %802 : vector<8x32xf32>
    %cst_324 = arith.constant 1.000000e+00 : f32
    %804 = vector.broadcast %cst_324 : f32 to vector<8x32xf32>
    %805 = arith.addf %804, %803 : vector<8x32xf32>
    %806 = arith.divf %804, %805 : vector<8x32xf32>
    %807 = vector.extract_strided_slice %800 {offsets = [0, 32], sizes = [8, 32], strides = [1, 1]} : vector<8x128xf32> to vector<8x32xf32>
    %808 = arith.negf %807 : vector<8x32xf32>
    %809 = math.exp %808 : vector<8x32xf32>
    %cst_325 = arith.constant 1.000000e+00 : f32
    %810 = vector.broadcast %cst_325 : f32 to vector<8x32xf32>
    %811 = arith.addf %810, %809 : vector<8x32xf32>
    %812 = arith.divf %810, %811 : vector<8x32xf32>
    %813 = vector.extract_strided_slice %800 {offsets = [0, 64], sizes = [8, 32], strides = [1, 1]} : vector<8x128xf32> to vector<8x32xf32>
    %814 = math.tanh %813 : vector<8x32xf32>
    %815 = vector.extract_strided_slice %800 {offsets = [0, 96], sizes = [8, 32], strides = [1, 1]} : vector<8x128xf32> to vector<8x32xf32>
    %816 = arith.negf %815 : vector<8x32xf32>
    %817 = math.exp %816 : vector<8x32xf32>
    %cst_326 = arith.constant 1.000000e+00 : f32
    %818 = vector.broadcast %cst_326 : f32 to vector<8x32xf32>
    %819 = arith.addf %818, %817 : vector<8x32xf32>
    %820 = arith.divf %818, %819 : vector<8x32xf32>
    %821 = arith.mulf %812, %793 : vector<8x32xf32>
    %822 = arith.mulf %806, %814 : vector<8x32xf32>
    %823 = arith.addf %821, %822 : vector<8x32xf32>
    %824 = math.tanh %823 : vector<8x32xf32>
    %825 = arith.mulf %820, %824 : vector<8x32xf32>
    %826 = vector.shape_cast %791 : vector<8x1xi1> to vector<8x1xi1>
    %827 = vector.broadcast %826 : vector<8x1xi1> to vector<8x32xi1>
    %828 = arith.select %827, %825, %792 : vector<8x32xi1>, vector<8x32xf32>
    %c0_327 = arith.constant 0 : index
    %c0_328 = arith.constant 0 : index
    %829 = vector.load %arg7[%c0_327, %c0_328] : memref<8x32xf32, #tpu.memory_space<vmem>>, vector<8x32xf32>
    tpu.vector_store %arg7[%c0_327, %c0_328], %828 {strides = array<i32>} : memref<8x32xf32, #tpu.memory_space<vmem>>, vector<8x32xf32>,
    %830 = vector.shape_cast %791 : vector<8x1xi1> to vector<8x1xi1>
    %831 = vector.broadcast %830 : vector<8x1xi1> to vector<8x32xi1>
    %832 = arith.select %831, %823, %793 : vector<8x32xi1>, vector<8x32xf32>
    %c0_329 = arith.constant 0 : index
    %c0_330 = arith.constant 0 : index
    %833 = vector.load %arg8[%c0_329, %c0_330] : memref<8x32xf32, #tpu.memory_space<vmem>>, vector<8x32xf32>
    tpu.vector_store %arg8[%c0_329, %c0_330], %832 {strides = array<i32>} : memref<8x32xf32, #tpu.memory_space<vmem>>, vector<8x32xf32>,
    %cst_331 = arith.constant 0.000000e+00 : f32
    %834 = vector.shape_cast %791 : vector<8x1xi1> to vector<8x1xi1>
    %835 = vector.broadcast %834 : vector<8x1xi1> to vector<8x32xi1>
    %836 = vector.broadcast %cst_331 : f32 to vector<8x32xf32>
    %837 = arith.select %835, %825, %836 : vector<8x32xi1>, vector<8x32xf32>
    %838 = arith.index_cast %786 : i32 to index
    %c0_332 = arith.constant 0 : index
    %c0_333 = arith.constant 0 : index
    %839 = vector.load %arg0[%838, %c0_332, %c0_333] : memref<8x8x16xf32, #tpu.memory_space<vmem>>, vector<1x8x16xf32>
    %840 = vector.shape_cast %839 : vector<1x8x16xf32> to vector<8x16xf32>
    %841 = vector.broadcast %786 : i32 to vector<8x1xi32>
    %842 = arith.cmpi sgt, %8, %841 : vector<8x1xi32>
    %c0_334 = arith.constant 0 : index
    %c0_335 = arith.constant 0 : index
    %843 = vector.load %arg9[%c0_334, %c0_335] : memref<8x32xf32, #tpu.memory_space<vmem>>, vector<8x32xf32>
    %c0_336 = arith.constant 0 : index
    %c0_337 = arith.constant 0 : index
    %844 = vector.load %arg10[%c0_336, %c0_337] : memref<8x32xf32, #tpu.memory_space<vmem>>, vector<8x32xf32>
    %845 = tpu.concatenate %840, %843 in 1 : vector<8x16xf32>, vector<8x32xf32> -> vector<8x48xf32>
    %846 = arith.truncf %845 : vector<8x48xf32> to vector<8x48xbf16>
    %c0_338 = arith.constant 0 : index
    %c0_339 = arith.constant 0 : index
    %847 = vector.load %arg4[%c0_338, %c0_339] : memref<48x128xbf16, #tpu.memory_space<vmem>>, vector<48x128xbf16>
    %cst_340 = arith.constant dense<0.000000e+00> : vector<8x128xf32>
    %848 = tpu.matmul %846, %847, %cst_340 {dimension_numbers = #tpu.dot_dimension_numbers<[1], [0], [0], [1], [0, 0, 1, 1], [], []>} : vector<8x48xbf16>, vector<48x128xbf16>, vector<8x128xf32> -> vector<8x128xf32>
    %c0_341 = arith.constant 0 : index
    %c0_342 = arith.constant 0 : index
    %849 = vector.load %arg5[%c0_341, %c0_342] : memref<1x128xf32, #tpu.memory_space<vmem>>, vector<1x128xf32>
    %850 = vector.broadcast %849 : vector<1x128xf32> to vector<8x128xf32>
    %851 = arith.addf %848, %850 : vector<8x128xf32>
    %852 = vector.extract_strided_slice %851 {offsets = [0, 0], sizes = [8, 32], strides = [1, 1]} : vector<8x128xf32> to vector<8x32xf32>
    %853 = arith.negf %852 : vector<8x32xf32>
    %854 = math.exp %853 : vector<8x32xf32>
    %cst_343 = arith.constant 1.000000e+00 : f32
    %855 = vector.broadcast %cst_343 : f32 to vector<8x32xf32>
    %856 = arith.addf %855, %854 : vector<8x32xf32>
    %857 = arith.divf %855, %856 : vector<8x32xf32>
    %858 = vector.extract_strided_slice %851 {offsets = [0, 32], sizes = [8, 32], strides = [1, 1]} : vector<8x128xf32> to vector<8x32xf32>
    %859 = arith.negf %858 : vector<8x32xf32>
    %860 = math.exp %859 : vector<8x32xf32>
    %cst_344 = arith.constant 1.000000e+00 : f32
    %861 = vector.broadcast %cst_344 : f32 to vector<8x32xf32>
    %862 = arith.addf %861, %860 : vector<8x32xf32>
    %863 = arith.divf %861, %862 : vector<8x32xf32>
    %864 = vector.extract_strided_slice %851 {offsets = [0, 64], sizes = [8, 32], strides = [1, 1]} : vector<8x128xf32> to vector<8x32xf32>
    %865 = math.tanh %864 : vector<8x32xf32>
    %866 = vector.extract_strided_slice %851 {offsets = [0, 96], sizes = [8, 32], strides = [1, 1]} : vector<8x128xf32> to vector<8x32xf32>
    %867 = arith.negf %866 : vector<8x32xf32>
    %868 = math.exp %867 : vector<8x32xf32>
    %cst_345 = arith.constant 1.000000e+00 : f32
    %869 = vector.broadcast %cst_345 : f32 to vector<8x32xf32>
    %870 = arith.addf %869, %868 : vector<8x32xf32>
    %871 = arith.divf %869, %870 : vector<8x32xf32>
    %872 = arith.mulf %863, %844 : vector<8x32xf32>
    %873 = arith.mulf %857, %865 : vector<8x32xf32>
    %874 = arith.addf %872, %873 : vector<8x32xf32>
    %875 = math.tanh %874 : vector<8x32xf32>
    %876 = arith.mulf %871, %875 : vector<8x32xf32>
    %877 = vector.shape_cast %842 : vector<8x1xi1> to vector<8x1xi1>
    %878 = vector.broadcast %877 : vector<8x1xi1> to vector<8x32xi1>
    %879 = arith.select %878, %876, %843 : vector<8x32xi1>, vector<8x32xf32>
    %c0_346 = arith.constant 0 : index
    %c0_347 = arith.constant 0 : index
    %880 = vector.load %arg9[%c0_346, %c0_347] : memref<8x32xf32, #tpu.memory_space<vmem>>, vector<8x32xf32>
    tpu.vector_store %arg9[%c0_346, %c0_347], %879 {strides = array<i32>} : memref<8x32xf32, #tpu.memory_space<vmem>>, vector<8x32xf32>,
    %881 = vector.shape_cast %842 : vector<8x1xi1> to vector<8x1xi1>
    %882 = vector.broadcast %881 : vector<8x1xi1> to vector<8x32xi1>
    %883 = arith.select %882, %874, %844 : vector<8x32xi1>, vector<8x32xf32>
    %c0_348 = arith.constant 0 : index
    %c0_349 = arith.constant 0 : index
    %884 = vector.load %arg10[%c0_348, %c0_349] : memref<8x32xf32, #tpu.memory_space<vmem>>, vector<8x32xf32>
    tpu.vector_store %arg10[%c0_348, %c0_349], %883 {strides = array<i32>} : memref<8x32xf32, #tpu.memory_space<vmem>>, vector<8x32xf32>,
    %cst_350 = arith.constant 0.000000e+00 : f32
    %885 = vector.shape_cast %842 : vector<8x1xi1> to vector<8x1xi1>
    %886 = vector.broadcast %885 : vector<8x1xi1> to vector<8x32xi1>
    %887 = vector.broadcast %cst_350 : f32 to vector<8x32xf32>
    %888 = arith.select %886, %876, %887 : vector<8x32xi1>, vector<8x32xf32>
    %889 = arith.index_cast %c7_i32_311 : i32 to index
    %c0_351 = arith.constant 0 : index
    %c0_352 = arith.constant 0 : index
    %890 = vector.load %arg6[%889, %c0_351, %c0_352] : memref<8x8x64xf32, #tpu.memory_space<vmem>>, vector<1x8x32xf32>
    %891 = vector.shape_cast %890 : vector<1x8x32xf32> to vector<8x32xf32>
    %892 = vector.shape_cast %837 : vector<8x32xf32> to vector<1x8x32xf32>
    tpu.vector_store %arg6[%889, %c0_351, %c0_352], %892 {strides = array<i32>} : memref<8x8x64xf32, #tpu.memory_space<vmem>>, vector<1x8x32xf32>,
    %893 = arith.index_cast %786 : i32 to index
    %c0_353 = arith.constant 0 : index
    %c32_354 = arith.constant 32 : index
    %894 = vector.load %arg6[%893, %c0_353, %c32_354] : memref<8x8x64xf32, #tpu.memory_space<vmem>>, vector<1x8x32xf32>
    %895 = vector.shape_cast %894 : vector<1x8x32xf32> to vector<8x32xf32>
    %896 = vector.shape_cast %888 : vector<8x32xf32> to vector<1x8x32xf32>
    tpu.vector_store %arg6[%893, %c0_353, %c32_354], %896 {strides = array<i32>} : memref<8x8x64xf32, #tpu.memory_space<vmem>>, vector<1x8x32xf32>,
    %c8_i32 = arith.constant 8 : i32
    return
  }
}

</mosaic_0001>

<bundles_post_ra>
// kernel: tpu_custom_call.1
= control target key start
LH: loop header
LB: loop body
LE: loop exit
PB: predicated region body
PF: predicated region fallthrough
CT: control target
= control target key end

     0   :  { %11 = vsyncpa [#allocation7], 0  ;;  %s3595_s0 = inlined_call_operand.hbm [shape: f32[8,8,16], index: 0, kind: input, shape index: {}]   ;;  %s3596_s1 = inlined_call_operand.vmem [shape: s32[8,1], index: 1, kind: input, shape index: {}]   ;;  %s3597_s2 = inlined_call_operand.hbm [shape: bf16[48,128], index: 2, kind: input, shape index: {}]   ;;  %s3598_s3 = inlined_call_operand.vmem [shape: f32[1,128], index: 3, kind: input, shape index: {}]   ;;  %s3599_s4 = inlined_call_operand.hbm [shape: bf16[48,128], index: 4, kind: input, shape index: {}]   ;;  %s3600_s5 = inlined_call_operand.vmem [shape: f32[1,128], index: 5, kind: input, shape index: {}]   ;;  %s3601_s6 = inlined_call_operand.hbm [shape: f32[8,8,64], index: 6, kind: output, shape index: {}]  }
   0x1   :  { %12 = vsyncpa [#allocation10], 0 }
   0x2   :  { %13 = vsyncpa [#allocation8], 0  ;;  %s2905_s21 = smov [#allocation9]  }
   0x3   :  { %s33_s22 = sshll.u32 %s2905_s21, 4  ;;  %s34_s22 = int_to_ptr.vmem [resolvable:$true] %s33_s22 }
   0x4   :  { %s2827_s23 = scalar_lea.vmem %s34_s22, 384  ;;  %p2832_p1 = scmp.lt.s32.totalorder %s34_s22, %s34_s22 }
   0x5   :  { %p2828_p0 = scmp.ne.s32.totalorder %s34_s22, %s2827_s23  ;;  %p2833_p2 = scmp.lt.s32.totalorder %s2827_s23, %s2827_s23 }
   0x7   :  { %p2834_p3 = por %p2833_p2, %p2832_p1 }
   0x9   :  { %p2835_p4 = pnand %p2834_p3, %p2828_p0 }
   0xb   :  { %2838 = shalt.err (!%p2835_p4)
}
   0xc   :  { %s2906_s24 = smov 64   ;;  %s2907_s25 = smov 4  }
   0xd   :  { %39 = dma.hbm_to_vmem [thread:$0]  %s3597_s2, 384, %s34_s22, [#allocation10], %s2906_s24, %s2906_s24, %s2907_s25  }
   0xe   :  { %s2908_s28 = smov [#allocation6]  }
   0xf   :  { %s19_s29 = sshll.u32 %s2908_s28, 4  ;;  %s20_s29 = int_to_ptr.vmem [resolvable:$true] %s19_s29 }
  0x10   :  { %s2847_s30 = scalar_lea.vmem %s20_s29, 1024  ;;  %p2852_p6 = scmp.lt.s32.totalorder %s20_s29, %s20_s29 }
  0x11   :  { %p2848_p5 = scmp.ne.s32.totalorder %s20_s29, %s2847_s30  ;;  %p2853_p7 = scmp.lt.s32.totalorder %s2847_s30, %s2847_s30 }
  0x13   :  { %p2854_p8 = por %p2853_p7, %p2852_p6 }
  0x15   :  { %p2855_p9 = pnand %p2854_p8, %p2848_p5 }
  0x17   :  { %2858 = shalt.err (!%p2855_p9)
}
  0x18   :  { %s2909_s7 = smov 128   ;;  %s2910_s8 = smov 8  }
  0x19   :  { %25 = dma.hbm_to_vmem [thread:$0]  %s3595_s0, 1024, %s20_s29, [#allocation7], %s2909_s7, %s2909_s7, %s2910_s8  }
  0x1a   :  { %s2911_s2 = smov [#allocation11]  }
  0x1b   :  { %s47_s11 = sshll.u32 %s2911_s2, 4  ;;  %s48_s11 = int_to_ptr.vmem [resolvable:$true] %s47_s11 }
  0x1c   :  { %s2867_s12 = scalar_lea.vmem %s48_s11, 384  ;;  %p2872_p11 = scmp.lt.s32.totalorder %s48_s11, %s48_s11 }
  0x1d   :  { %p2868_p10 = scmp.ne.s32.totalorder %s48_s11, %s2867_s12  ;;  %p2873_p12 = scmp.lt.s32.totalorder %s2867_s12, %s2867_s12 }
  0x1f   :  { %p2874_p13 = por %p2873_p12, %p2872_p11 }
  0x21   :  { %p2875_p0 = pnand %p2874_p13, %p2868_p10 }
  0x23   :  { %2878 = shalt.err (!%p2875_p0)
}
  0x24   :  { %53 = dma.hbm_to_vmem [thread:$0]  %s3599_s4, 384, %s48_s11, [#allocation10], %s2906_s24, %s2906_s24, %s2907_s25  }
  0x25   :  { %2899 = dma.done.wait [#allocation7], 1024  }
  0x26   :  { %2900 = vsyncadd [#allocation7], 4294966272 }
  0x27   :  { %2901 = dma.done.wait [#allocation10], 768  }
  0x28   :  { %2902 = vsyncadd [#allocation10], 4294966528  ;;  %vm66_vm0 = vcmask 261120   ;;  %v2912_v0 = vmov 0.0   ;;  %vm2913_vm1 = vmmov 0   ;;  %v2643_v1 = vld [vmem:[#allocation9 + $0x10] sm:$0xff]  }
  0x29   :  { %67 = vst.msk [vmem:[#allocation2] sm:$0xff] %vm66_vm0, %v2912_v0  ;;  %69 = vst.msk [vmem:[#allocation4] sm:$0xff] %vm66_vm0, %v2912_v0  ;;  %2427 = vmatprep.subr.bf16.mxu0 %v2912_v0  ;;  %2437 = vmatprep.subr.bf16.mxu1 %v2912_v0  ;;  %v2644_v5 = vld [vmem:[#allocation11 + $0x10] sm:$0xff]   ;;  %s2914_s0 = smov 16   ;;  %v2646_v7 = vld [vmem:[#allocation11 + $0x8] sm:$0xff]   ;;  %vm80_vm2 = vcmask 130048  }
  0x2a   :  { %68 = vst.msk [vmem:[#allocation3] sm:$0xff] %vm66_vm0, %v2912_v0  ;;  %70 = vst.msk [vmem:[#allocation5] sm:$0xff] %vm66_vm0, %v2912_v0  ;;  %2433 = vmatprep.mubr.msk.bf16.mxu0 %vm2913_vm1, %v2912_v0  ;;  %2443 = vmatprep.mubr.msk.bf16.mxu1 %vm2913_vm1, %v2912_v0  ;;  %v2645_v6 = vld [vmem:[#allocation9 + $0x8] sm:$0xff]   ;;  %v2647_v8 = vld [vmem:[#allocation9] sm:$0xff]   ;;  %vm114_vm3 = vcmask 392192   ;;  %v2915_v31 = vmov 0  }
  0x2b   :  { %2428 = vmatpush3.bf16.msra.mxu0 %v2643_v1  ;;  %2438 = vmatpush3.bf16.msra.mxu1 %v2644_v5  ;;  %v2648_v9 = vld [vmem:[#allocation11] sm:$0xff]   ;;  %v72_v11 = vld [vmem:[#allocation6] sm:$0xff]  ;;  %s2916_s18 = smov 32  }
  0x2c   :  { %2429 = vmatprep.subr.bf16.mxu0 %v2912_v0  ;;  %2439 = vmatprep.subr.bf16.mxu1 %v2912_v0  ;;  %v208_v12 = vld [vmem:[#allocation6 + $0x38] sm:$0xff]  ;;  %v3008_v19 = vld [vmem:[%s3598_s3] ss:$0 sm:$0xff] }
  0x2d   :  { %v3013_v20 = vld [vmem:[%s3600_s5] ss:$0 sm:$0xff]  ;;  %2607 = vset.pattern.permute.xlu0 %v2915_v31  ;;  %2606 = vset.pattern.permute.xlu1 %v2915_v31 }
  0x2e   :  { %v3026_v42 = vld [vmem:[%s3596_s1] sm:$0xff]  ;;  %s2917_s1 = smov 96  }
  0x2f   :  { %2430 = vmatpush3.bf16.msra.mxu0 %v2645_v6  ;;  %2440 = vmatpush3.bf16.msra.mxu1 %v2646_v7  ;;  %vm73_vm4 = vcmp.gt.s32.totalorder %v3026_v42, 0  ;;  %vm209_vm5 = vcmp.gt.s32.totalorder %v3026_v42, 7  ;;  %vm355_vm8 = vcmp.gt.s32.totalorder %v3026_v42, 1  ;;  %vm489_vm9 = vcmp.gt.s32.totalorder %v3026_v42, 6 }
  0x30   :  { %v2984_v2 = vld [vmem:[#allocation2] sm:$0xff]  ;;  %v2986_v3 = vld [vmem:[#allocation4] sm:$0xff]  ;;  %2431 = vmatprep.subr.bf16.mxu0 %v2912_v0  ;;  %2441 = vmatprep.subr.bf16.mxu1 %v2912_v0  ;;  %v186_v49 = vsel %vm73_vm4, 1, %v2915_v31  ;;  %v320_v50 = vsel %vm209_vm5, 1, %v2915_v31  ;;  %vm635_vm12 = vcmp.gt.s32.totalorder %v3026_v42, 2  ;;  %vm769_vm13 = vcmp.gt.s32.totalorder %v3026_v42, 5 }
  0x31   :  { %v2601_v4 = vpack.i.bf16 %v2986_v3, %v2984_v2  ;;  %v211_v34 = vld [vmem:[#allocation5] sm:$0xff]  ;;  %v75_v35 = vld [vmem:[#allocation3] sm:$0xff]  ;;  %vm915_vm4 = vcmp.gt.s32.totalorder %v3026_v42, 3  ;;  %vm1049_vm5 = vcmp.gt.s32.totalorder %v3026_v42, 4 }
  0x33   :  { %2602 = vrot.lane.b32.xlu0 %v2601_v4, %s2914_s0  ;;  %2432 = vmatpush3.bf16.msra.mxu0 %v2647_v8  ;;  %v2649_v8 = vld [vmem:[#allocation9 + $0x10] sm:$0xff]  }
  0x34   :  { %2447 = vmatprep.subr.bf16.mxu0 %v2912_v0  ;;  %2442 = vmatpush3.bf16.msra.mxu1 %v2648_v9  ;;  %v2650_v9 = vld [vmem:[#allocation11 + $0x10] sm:$0xff]  }
  0x35   :  { %2457 = vmatprep.subr.bf16.mxu1 %v2912_v0 }
  0xa5   :  { %v2603_v10 = vpop.permute.xlu0 %2602 }
  0xa6   :  { %v2605_v13 = vunpack.i.h.bf16 %v2603_v10  ;;  %v2604_v14 = vunpack.i.l.bf16 %v2603_v10 }
  0xa8   :  { %v81_v15 = vsel %vm80_vm2, %v72_v11, %v2604_v14  ;;  %v216_v16 = vsel %vm80_vm2, %v208_v12, %v2605_v13  ;;  %v2651_v11 = vld [vmem:[#allocation9 + $0x8] sm:$0xff]   ;;  %v2652_v12 = vld [vmem:[#allocation11 + $0x8] sm:$0xff]  }
  0xa9   :  { %v82_v17 = vpack.c.bf16 %v81_v15, %v81_v15  ;;  %v217_v18 = vpack.c.bf16 %v216_v16, %v216_v16  ;;  %v2653_v14 = vld [vmem:[#allocation9] sm:$0xff]   ;;  %v2654_v15 = vld [vmem:[#allocation11] sm:$0xff]  }
  0xab   :  { %2434 = vmatmul.mubr.msk.bf16.vlgmr.msra.gmra.mxu0 %vm114_vm3, %v82_v17  ;;  %2444 = vmatmul.mubr.msk.bf16.vlgmr.msra.gmra.mxu1 %vm114_vm3, %v217_v18 }
  0xac   :  { %2453 = vmatprep.mubr.msk.bf16.mxu0 %vm2913_vm1, %v2912_v0  ;;  %2463 = vmatprep.mubr.msk.bf16.mxu1 %vm2913_vm1, %v2912_v0 }
  0xad   :  { %2448 = vmatpush3.bf16.msra.mxu0 %v2649_v8  ;;  %2458 = vmatpush3.bf16.msra.mxu1 %v2650_v9 }
  0xae   :  { %2449 = vmatprep.subr.bf16.mxu0 %v2912_v0  ;;  %2459 = vmatprep.subr.bf16.mxu1 %v2912_v0 }
  0xb1   :  { %2450 = vmatpush3.bf16.msra.mxu0 %v2651_v11  ;;  %2460 = vmatpush3.bf16.msra.mxu1 %v2652_v12 }
  0xb2   :  { %2451 = vmatprep.subr.bf16.mxu0 %v2912_v0  ;;  %2461 = vmatprep.subr.bf16.mxu1 %v2912_v0 }
  0xb5   :  { %2452 = vmatpush3.bf16.msra.mxu0 %v2653_v14  ;;  %2462 = vmatpush3.bf16.msra.mxu1 %v2654_v15 }
  0xb6   :  { %2467 = vmatprep.subr.bf16.mxu0 %v2912_v0  ;;  %2477 = vmatprep.subr.bf16.mxu1 %v2912_v0 }
 0x16b   :  { %v152_v21 = vpop.f32.mrf.mxu0  ;;  %v286_v22 = vpop.f32.mrf.mxu1 }
 0x16c   :  { %v153_v23 = vadd.f32 %v3008_v19, %v152_v21  ;;  %v287_v24 = vadd.f32 %v3013_v20, %v286_v22 }
 0x16d   :  { %v2435_v25 = vpop.f32.mrf.mxu0  ;;  %v2445_v26 = vpop.f32.mrf.mxu1 }
 0x16e   :  { %2691 = vtanh.f32 %v153_v23  ;;  %v2272_v36 = vmul.f32 -1.442695, %v153_v23  ;;  %v2278_v37 = vmul.f32 -1.442695, %v287_v24  ;;  %v488_v25 = vld [vmem:[#allocation6 + $0x30] sm:$0xff] }
 0x16f   :  { %2693 = vtanh.f32 %v287_v24  ;;  %v155_v27 = vpop.f32.mrf.mxu0  ;;  %v289_v28 = vpop.f32.mrf.mxu1  ;;  %v354_v24 = vld [vmem:[#allocation6 + $0x8] sm:$0xff] }
 0x170   :  { %2695 = vpow2.f32 %v2272_v36 }
 0x171   :  { %v2436_v29 = vpop.f32.mrf.mxu0  ;;  %v2446_v30 = vpop.f32.mrf.mxu1  ;;  %2697 = vpow2.f32 %v2278_v37 }
 0x17b   :  { %v2692_v32 = vpop.eup %2691 }
 0x17c   :  { %v2694_v33 = vpop.eup %2693  ;;  %171 = vrot.lane.b32.xlu0 %v2692_v32, %s2906_s24 }
 0x17d   :  { %305 = vrot.lane.b32.xlu1 %v2694_v33, %s2906_s24  ;;  %v2696_v38 = vpop.eup %2695 }
 0x17e   :  { %v2698_v39 = vpop.eup %2697  ;;  %v161_v40 = vadd.f32 1.0, %v2696_v38 }
 0x17f   :  { %v295_v41 = vadd.f32 1.0, %v2698_v39 }
 0x180   :  { %300 = vrot.lane.b32.xlu0 %v211_v34, %s2916_s18  ;;  %2699 = vrcp.f32 %v161_v40 }
 0x181   :  { %166 = vrot.lane.b32.xlu1 %v75_v35, %s2916_s18  ;;  %2701 = vrcp.f32 %v295_v41 }
 0x18d   :  { %v2700_v43 = vpop.eup %2699 }
 0x18e   :  { %v2702_v45 = vpop.eup %2701 }
 0x1ee   :  { %v172_v44 = vpop.permute.xlu0 %171 }
 0x1ef   :  { %v306_v46 = vpop.permute.xlu1 %305  ;;  %v174_v47 = vmul.f32 %v2700_v43, %v172_v44 }
 0x1f0   :  { %v308_v48 = vmul.f32 %v2702_v45, %v306_v46 }
 0x1f1   :  { %176 = vrot.lane.b32.xlu1 %v174_v47, %s2916_s18 }
 0x1f2   :  { %310 = vrot.lane.b32.xlu0 %v308_v48, %s2916_s18  ;;  %v301_v52 = vpop.permute.xlu0 %300 }
 0x1f3   :  { %v167_v51 = vpop.permute.xlu1 %166  ;;  %v303_v55 = vmul.f32 %v2702_v45, %v301_v52 }
 0x1f4   :  { %v169_v53 = vmul.f32 %v2700_v43, %v167_v51 }
 0x1f5   :  { %188 = vperm.xlu1 %2606, %v186_v49  }
 0x1f6   :  { %322 = vperm.xlu0 %2607, %v320_v50  }
 0x1fa   :  { %191 = vrot.lane.b32.xlu0 %v2984_v2, %s2917_s1 }
 0x263   :  { %v177_v54 = vpop.permute.xlu1 %176 }
 0x264   :  { %v311_v56 = vpop.permute.xlu0 %310  ;;  %v179_v57 = vadd.f32 %v177_v54, %v169_v53 }
 0x265   :  { %v313_v58 = vadd.f32 %v311_v56, %v303_v55 }
 0x266   :  { %2703 = vtanh.f32 %v179_v57 }
 0x267   :  { %2705 = vtanh.f32 %v313_v58 }
 0x270   :  { %v3042_v62 = vpop.permute.xlu1 %188 }
 0x271   :  { %v3040_v61 = vpop.permute.xlu0 %322  ;;  %vm190_vm6 = vcmp.eq.s32.totalorder %v3042_v62, 1 }
 0x272   :  { %vm324_vm7 = vcmp.eq.s32.totalorder %v3040_v61, 1  ;;  %v200_v10 = vsel %vm190_vm6, %v179_v57, %v167_v51 }
 0x273   :  { %v2704_v59 = vpop.eup %2703  ;;  %v334_v23 = vsel %vm324_vm7, %v313_v58, %v301_v52 }
 0x274   :  { %182 = vrot.lane.b32.xlu1 %v2704_v59, %s2906_s24  ;;  %v2706_v60 = vpop.eup %2705 }
 0x275   :  { %v192_v1 = vpop.permute.xlu0 %191 }
 0x278   :  { %316 = vrot.lane.b32.xlu1 %v2706_v60, %s2906_s24 }
 0x27c   :  { %325 = vrot.lane.b32.xlu1 %v2986_v3, %s2917_s1 }
 0x2e6   :  { %v183_v63 = vpop.permute.xlu1 %182 }
 0x2e7   :  { %v3044_v2 = vmul.f32 %v2700_v43, %v183_v63 }
 0x2e9   :  { %v194_v4 = vsel %vm190_vm6, %v3044_v2, %v192_v1  ;;  %v466_v1 = vsel %vm355_vm8, 1, %v2915_v31 }
 0x2ea   :  { %196 = vrot.lane.b32.xlu0 %v194_v4, %s2916_s18  ;;  %v317_v5 = vpop.permute.xlu1 %316  ;;  %v600_v4 = vsel %vm489_vm9, 1, %v2915_v31 }
 0x2eb   :  { %v3051_v6 = vmul.f32 %v2702_v45, %v317_v5 }
 0x2ee   :  { %v326_v3 = vpop.permute.xlu1 %325 }
 0x2ef   :  { %v328_v7 = vsel %vm324_vm7, %v3051_v6, %v326_v3 }
 0x2f0   :  { %330 = vrot.lane.b32.xlu1 %v328_v7, %s2916_s18 }
 0x2f4   :  { %202 = vrot.lane.b32.xlu1 %v200_v10, %s2917_s1 }
 0x35c   :  { %v197_v13 = vpop.permute.xlu0 %196 }
 0x35d   :  { %199 = vst.msk [vmem:[#allocation2] sm:$0xff] %vm66_vm0, %v197_v13 }
 0x362   :  { %v331_v16 = vpop.permute.xlu1 %330 }
 0x363   :  { %333 = vst.msk [vmem:[#allocation4] sm:$0xff] %vm66_vm0, %v331_v16 }
 0x364   :  { %v3070_v18 = vld [vmem:[#allocation2] sm:$0xff] }
 0x366   :  { %v203_v17 = vpop.permute.xlu1 %202 }
 0x367   :  { %205 = vst.msk [vmem:[#allocation3] sm:$0xff] %vm66_vm0, %v203_v17 }
 0x36a   :  { %v3072_v21 = vld [vmem:[#allocation4] sm:$0xff] }
 0x36b   :  { %v2608_v22 = vpack.i.bf16 %v3072_v21, %v3070_v18 }
 0x36d   :  { %2609 = vrot.lane.b32.xlu0 %v2608_v22, %s2914_s0 }
 0x36e   :  { %v357_v48 = vld [vmem:[#allocation3] sm:$0xff] }
 0x371   :  { %336 = vrot.lane.b32.xlu0 %v334_v23, %s2917_s1 }
 0x3df   :  { %v2610_v26 = vpop.permute.xlu0 %2609 }
 0x3e0   :  { %v2612_v27 = vunpack.i.h.bf16 %v2610_v26  ;;  %v2611_v28 = vunpack.i.l.bf16 %v2610_v26 }
 0x3e2   :  { %v496_v29 = vsel %vm80_vm2, %v488_v25, %v2612_v27  ;;  %v362_v30 = vsel %vm80_vm2, %v354_v24, %v2611_v28  ;;  %v2655_v27 = vld [vmem:[#allocation9 + $0x10] sm:$0xff]   ;;  %v2656_v28 = vld [vmem:[#allocation11 + $0x10] sm:$0xff]  }
 0x3e3   :  { %v497_v32 = vpack.c.bf16 %v496_v29, %v496_v29  ;;  %v363_v33 = vpack.c.bf16 %v362_v30, %v362_v30  ;;  %v337_v34 = vpop.permute.xlu0 %336  ;;  %v2657_v30 = vld [vmem:[#allocation9 + $0x8] sm:$0xff]  }
 0x3e4   :  { %339 = vst.msk [vmem:[#allocation5] sm:$0xff] %vm66_vm0, %v337_v34  ;;  %v2660_v34 = vld [vmem:[#allocation11] sm:$0xff]  }
 0x3e5   :  { %2454 = vmatmul.mubr.msk.bf16.vlgmr.msra.gmra.mxu0 %vm114_vm3, %v363_v33  ;;  %2464 = vmatmul.mubr.msk.bf16.vlgmr.msra.gmra.mxu1 %vm114_vm3, %v497_v32  ;;  %v2658_v32 = vld [vmem:[#allocation11 + $0x8] sm:$0xff]  }
 0x3e6   :  { %2473 = vmatprep.mubr.msk.bf16.mxu0 %vm2913_vm1, %v2912_v0  ;;  %2483 = vmatprep.mubr.msk.bf16.mxu1 %vm2913_vm1, %v2912_v0  ;;  %v2659_v33 = vld [vmem:[#allocation9] sm:$0xff]  }
 0x3e7   :  { %2468 = vmatpush3.bf16.msra.mxu0 %v2655_v27  ;;  %2478 = vmatpush3.bf16.msra.mxu1 %v2656_v28  ;;  %v880_v27 = vsel %vm769_vm13, 1, %v2915_v31 }
 0x3e8   :  { %2469 = vmatprep.subr.bf16.mxu0 %v2912_v0  ;;  %2479 = vmatprep.subr.bf16.mxu1 %v2912_v0 }
 0x3eb   :  { %v491_v49 = vld [vmem:[#allocation5] sm:$0xff]  ;;  %2470 = vmatpush3.bf16.msra.mxu0 %v2657_v30  ;;  %2480 = vmatpush3.bf16.msra.mxu1 %v2658_v32 }
 0x3ec   :  { %2471 = vmatprep.subr.bf16.mxu0 %v2912_v0  ;;  %2481 = vmatprep.subr.bf16.mxu1 %v2912_v0 }
 0x3ef   :  { %2472 = vmatpush3.bf16.msra.mxu0 %v2659_v33  ;;  %2482 = vmatpush3.bf16.msra.mxu1 %v2660_v34 }
 0x3f0   :  { %2487 = vmatprep.subr.bf16.mxu0 %v2912_v0  ;;  %2497 = vmatprep.subr.bf16.mxu1 %v2912_v0 }
 0x4a5   :  { %v432_v35 = vpop.f32.mrf.mxu0  ;;  %v566_v36 = vpop.f32.mrf.mxu1 }
 0x4a6   :  { %v433_v37 = vadd.f32 %v3008_v19, %v432_v35  ;;  %v567_v38 = vadd.f32 %v3013_v20, %v566_v36 }
 0x4a7   :  { %v2455_v39 = vpop.f32.mrf.mxu0  ;;  %v2465_v40 = vpop.f32.mrf.mxu1 }
 0x4a8   :  { %2707 = vtanh.f32 %v433_v37  ;;  %v2284_v50 = vmul.f32 -1.442695, %v433_v37  ;;  %v2290_v51 = vmul.f32 -1.442695, %v567_v38 }
 0x4a9   :  { %2709 = vtanh.f32 %v567_v38  ;;  %v435_v41 = vpop.f32.mrf.mxu0  ;;  %v569_v43 = vpop.f32.mrf.mxu1 }
 0x4aa   :  { %2711 = vpow2.f32 %v2284_v50  ;;  %v3147_v43 = vld [vmem:[#allocation6 + $0x10] sm:$0xff] }
 0x4ab   :  { %v2456_v44 = vpop.f32.mrf.mxu0  ;;  %v2466_v45 = vpop.f32.mrf.mxu1  ;;  %2713 = vpow2.f32 %v2290_v51 }
 0x4ac   :  { %v3149_v44 = vld [vmem:[#allocation6 + $0x28] sm:$0xff] }
 0x4b5   :  { %v2708_v46 = vpop.eup %2707 }
 0x4b6   :  { %v2710_v47 = vpop.eup %2709  ;;  %451 = vrot.lane.b32.xlu1 %v2708_v46, %s2906_s24 }
 0x4b7   :  { %585 = vrot.lane.b32.xlu0 %v2710_v47, %s2906_s24  ;;  %v2712_v52 = vpop.eup %2711 }
 0x4b8   :  { %v2714_v53 = vpop.eup %2713  ;;  %v441_v54 = vadd.f32 1.0, %v2712_v52 }
 0x4b9   :  { %v575_v55 = vadd.f32 1.0, %v2714_v53 }
 0x4ba   :  { %446 = vrot.lane.b32.xlu1 %v357_v48, %s2916_s18  ;;  %2715 = vrcp.f32 %v441_v54 }
 0x4bb   :  { %580 = vrot.lane.b32.xlu0 %v491_v49, %s2916_s18  ;;  %2717 = vrcp.f32 %v575_v55 }
 0x4c7   :  { %v2716_v56 = vpop.eup %2715 }
 0x4c8   :  { %v2718_v58 = vpop.eup %2717 }
 0x528   :  { %v452_v57 = vpop.permute.xlu1 %451 }
 0x529   :  { %v586_v59 = vpop.permute.xlu0 %585  ;;  %v454_v60 = vmul.f32 %v2716_v56, %v452_v57 }
 0x52a   :  { %v588_v63 = vmul.f32 %v2718_v58, %v586_v59 }
 0x52b   :  { %456 = vrot.lane.b32.xlu1 %v454_v60, %s2916_s18 }
 0x52c   :  { %590 = vrot.lane.b32.xlu0 %v588_v63, %s2916_s18  ;;  %v447_v5 = vpop.permute.xlu1 %446 }
 0x52d   :  { %v581_v3 = vpop.permute.xlu0 %580  ;;  %v449_v7 = vmul.f32 %v2716_v56, %v447_v5 }
 0x52e   :  { %v583_v8 = vmul.f32 %v2718_v58, %v581_v3 }
 0x52f   :  { %468 = vperm.xlu1 %2606, %v466_v1  }
 0x530   :  { %602 = vperm.xlu0 %2607, %v600_v4  }
 0x59d   :  { %v457_v9 = vpop.permute.xlu1 %456 }
 0x59e   :  { %v591_v10 = vpop.permute.xlu0 %590  ;;  %v459_v11 = vadd.f32 %v457_v9, %v449_v7 }
 0x59f   :  { %v593_v12 = vadd.f32 %v591_v10, %v583_v8 }
 0x5a0   :  { %2719 = vtanh.f32 %v459_v11 }
 0x5a1   :  { %2721 = vtanh.f32 %v593_v12 }
 0x5aa   :  { %v3107_v15 = vpop.permute.xlu1 %468 }
 0x5ab   :  { %v3109_v16 = vpop.permute.xlu0 %602  ;;  %vm470_vm10 = vcmp.eq.s32.totalorder %v3107_v15, 1 }
 0x5ac   :  { %vm604_vm11 = vcmp.eq.s32.totalorder %v3109_v16, 1  ;;  %v480_v29 = vsel %vm470_vm10, %v459_v11, %v447_v5 }
 0x5ad   :  { %v2720_v13 = vpop.eup %2719  ;;  %v614_v41 = vsel %vm604_vm11, %v593_v12, %v581_v3 }
 0x5ae   :  { %v2722_v14 = vpop.eup %2721  ;;  %462 = vrot.lane.b32.xlu1 %v2720_v13, %s2906_s24 }
 0x5af   :  { %596 = vrot.lane.b32.xlu0 %v2722_v14, %s2906_s24 }
 0x5b2   :  { %471 = vrot.lane.b32.xlu1 %v3070_v18, %s2917_s1 }
 0x5b3   :  { %605 = vrot.lane.b32.xlu0 %v3072_v21, %s2917_s1 }
 0x620   :  { %v463_v17 = vpop.permute.xlu1 %462 }
 0x621   :  { %v597_v22 = vpop.permute.xlu0 %596  ;;  %v3111_v23 = vmul.f32 %v2716_v56, %v463_v17 }
 0x622   :  { %v3114_v24 = vmul.f32 %v2718_v58, %v597_v22 }
 0x624   :  { %v472_v25 = vpop.permute.xlu1 %471 }
 0x625   :  { %v606_v26 = vpop.permute.xlu0 %605  ;;  %v474_v18 = vsel %vm470_vm10, %v3111_v23, %v472_v25 }
 0x626   :  { %v608_v21 = vsel %vm604_vm11, %v3114_v24, %v606_v26  ;;  %476 = vrot.lane.b32.xlu1 %v474_v18, %s2916_s18 }
 0x627   :  { %610 = vrot.lane.b32.xlu0 %v608_v21, %s2916_s18  ;;  %v746_v21 = vsel %vm635_vm12, 1, %v2915_v31 }
 0x62b   :  { %482 = vrot.lane.b32.xlu0 %v480_v29, %s2917_s1 }
 0x698   :  { %v477_v35 = vpop.permute.xlu1 %476 }
 0x699   :  { %v611_v36 = vpop.permute.xlu0 %610  ;;  %479 = vst.msk [vmem:[#allocation2] sm:$0xff] %vm66_vm0, %v477_v35 }
 0x69a   :  { %613 = vst.msk [vmem:[#allocation4] sm:$0xff] %vm66_vm0, %v611_v36 }
 0x69d   :  { %v483_v37 = vpop.permute.xlu0 %482 }
 0x69e   :  { %485 = vst.msk [vmem:[#allocation3] sm:$0xff] %vm66_vm0, %v483_v37 }
 0x6a0   :  { %v3137_v38 = vld [vmem:[#allocation2] sm:$0xff] }
 0x6a1   :  { %v3139_v39 = vld [vmem:[#allocation4] sm:$0xff] }
 0x6a2   :  { %v2613_v40 = vpack.i.bf16 %v3139_v39, %v3137_v38 }
 0x6a4   :  { %2614 = vrot.lane.b32.xlu1 %v2613_v40, %s2914_s0 }
 0x6a5   :  { %v637_v3 = vld [vmem:[#allocation3] sm:$0xff] }
 0x6a8   :  { %616 = vrot.lane.b32.xlu1 %v614_v41, %s2917_s1 }
 0x716   :  { %v2615_v45 = vpop.permute.xlu1 %2614 }
 0x717   :  { %v2617_v46 = vunpack.i.h.bf16 %v2615_v45  ;;  %v2616_v47 = vunpack.i.l.bf16 %v2615_v45 }
 0x719   :  { %v776_v48 = vsel %vm80_vm2, %v3149_v44, %v2617_v46  ;;  %v642_v49 = vsel %vm80_vm2, %v3147_v43, %v2616_v47 }
 0x71a   :  { %v777_v50 = vpack.c.bf16 %v776_v48, %v776_v48  ;;  %v643_v51 = vpack.c.bf16 %v642_v49, %v642_v49  ;;  %v617_v52 = vpop.permute.xlu1 %616 }
 0x71b   :  { %619 = vst.msk [vmem:[#allocation5] sm:$0xff] %vm66_vm0, %v617_v52  ;;  %v2661_v52 = vld [vmem:[#allocation9 + $0x10] sm:$0xff]  }
 0x71c   :  { %2474 = vmatmul.mubr.msk.bf16.vlgmr.msra.gmra.mxu0 %vm114_vm3, %v643_v51  ;;  %2484 = vmatmul.mubr.msk.bf16.vlgmr.msra.gmra.mxu1 %vm114_vm3, %v777_v50 }
 0x71d   :  { %2493 = vmatprep.mubr.msk.bf16.mxu0 %vm2913_vm1, %v2912_v0  ;;  %2503 = vmatprep.mubr.msk.bf16.mxu1 %vm2913_vm1, %v2912_v0 }
 0x71e   :  { %2488 = vmatpush3.bf16.msra.mxu0 %v2661_v52 }
 0x71f   :  { %2489 = vmatprep.subr.bf16.mxu0 %v2912_v0 }
 0x722   :  { %v771_v7 = vld [vmem:[#allocation5] sm:$0xff] }
 0x7dc   :  { %v712_v53 = vpop.f32.mrf.mxu0  ;;  %v846_v54 = vpop.f32.mrf.mxu1 }
 0x7dd   :  { %v713_v55 = vadd.f32 %v3008_v19, %v712_v53  ;;  %v847_v56 = vadd.f32 %v3013_v20, %v846_v54  ;;  %v2662_v53 = vld [vmem:[#allocation11 + $0x10] sm:$0xff]  }
 0x7de   :  { %v2475_v57 = vpop.f32.mrf.mxu0  ;;  %v2485_v58 = vpop.f32.mrf.mxu1  ;;  %2498 = vmatpush3.bf16.msra.mxu1 %v2662_v53 }
 0x7df   :  { %2723 = vtanh.f32 %v713_v55  ;;  %v2296_v8 = vmul.f32 -1.442695, %v713_v55  ;;  %v2302_v9 = vmul.f32 -1.442695, %v847_v56  ;;  %v2663_v55 = vld [vmem:[#allocation9 + $0x8] sm:$0xff]   ;;  %2499 = vmatprep.subr.bf16.mxu1 %v2912_v0  ;;  %v2665_v57 = vld [vmem:[#allocation9] sm:$0xff]  }
 0x7e0   :  { %2725 = vtanh.f32 %v847_v56  ;;  %v715_v59 = vpop.f32.mrf.mxu0  ;;  %v849_v60 = vpop.f32.mrf.mxu1  ;;  %v2664_v56 = vld [vmem:[#allocation11 + $0x8] sm:$0xff]   ;;  %2490 = vmatpush3.bf16.msra.mxu0 %v2663_v55  ;;  %v2666_v58 = vld [vmem:[#allocation11] sm:$0xff]   ;;  %v1026_v55 = vsel %vm915_vm4, 1, %v2915_v31 }
 0x7e1   :  { %2727 = vpow2.f32 %v2296_v8  ;;  %2491 = vmatprep.subr.bf16.mxu0 %v2912_v0  ;;  %v3222_v8 = vld [vmem:[#allocation6 + $0x20] sm:$0xff] }
 0x7e2   :  { %v2476_v63 = vpop.f32.mrf.mxu0  ;;  %v2486_v1 = vpop.f32.mrf.mxu1  ;;  %2729 = vpow2.f32 %v2302_v9  ;;  %2500 = vmatpush3.bf16.msra.mxu1 %v2664_v56  ;;  %v1160_v56 = vsel %vm1049_vm5, 1, %v2915_v31 }
 0x7e3   :  { %2501 = vmatprep.subr.bf16.mxu1 %v2912_v0 }
 0x7e4   :  { %2492 = vmatpush3.bf16.msra.mxu0 %v2665_v57 }
 0x7e5   :  { %2507 = vmatprep.subr.bf16.mxu0 %v2912_v0 }
 0x7e6   :  { %2502 = vmatpush3.bf16.msra.mxu1 %v2666_v58 }
 0x7e7   :  { %2517 = vmatprep.subr.bf16.mxu1 %v2912_v0 }
 0x7ec   :  { %v2724_v4 = vpop.eup %2723 }
 0x7ed   :  { %v2726_v5 = vpop.eup %2725  ;;  %731 = vrot.lane.b32.xlu0 %v2724_v4, %s2906_s24 }
 0x7ee   :  { %865 = vrot.lane.b32.xlu1 %v2726_v5, %s2906_s24  ;;  %v2728_v10 = vpop.eup %2727 }
 0x7ef   :  { %v2730_v11 = vpop.eup %2729  ;;  %v721_v12 = vadd.f32 1.0, %v2728_v10 }
 0x7f0   :  { %v855_v13 = vadd.f32 1.0, %v2730_v11 }
 0x7f1   :  { %726 = vrot.lane.b32.xlu0 %v637_v3, %s2916_s18  ;;  %2731 = vrcp.f32 %v721_v12 }
 0x7f2   :  { %860 = vrot.lane.b32.xlu1 %v771_v7, %s2916_s18  ;;  %2733 = vrcp.f32 %v855_v13  ;;  %v3220_v7 = vld [vmem:[#allocation6 + $0x18] sm:$0xff] }
 0x7fe   :  { %v2732_v14 = vpop.eup %2731 }
 0x7ff   :  { %v2734_v22 = vpop.eup %2733 }
 0x85f   :  { %v732_v17 = vpop.permute.xlu0 %731 }
 0x860   :  { %v866_v25 = vpop.permute.xlu1 %865  ;;  %v734_v26 = vmul.f32 %v2732_v14, %v732_v17 }
 0x861   :  { %v868_v18 = vmul.f32 %v2734_v22, %v866_v25 }
 0x862   :  { %736 = vrot.lane.b32.xlu0 %v734_v26, %s2916_s18 }
 0x863   :  { %870 = vrot.lane.b32.xlu1 %v868_v18, %s2916_s18  ;;  %v727_v28 = vpop.permute.xlu0 %726 }
 0x864   :  { %v861_v29 = vpop.permute.xlu1 %860  ;;  %v729_v30 = vmul.f32 %v2732_v14, %v727_v28 }
 0x865   :  { %v863_v32 = vmul.f32 %v2734_v22, %v861_v29 }
 0x866   :  { %748 = vperm.xlu0 %2607, %v746_v21  }
 0x867   :  { %882 = vperm.xlu1 %2606, %v880_v27  }
 0x8d4   :  { %v737_v33 = vpop.permute.xlu0 %736 }
 0x8d5   :  { %v871_v34 = vpop.permute.xlu1 %870  ;;  %v739_v35 = vadd.f32 %v737_v33, %v729_v30 }
 0x8d6   :  { %v873_v36 = vadd.f32 %v871_v34, %v863_v32 }
 0x8d7   :  { %2735 = vtanh.f32 %v739_v35 }
 0x8d8   :  { %2737 = vtanh.f32 %v873_v36 }
 0x8e1   :  { %v3180_v41 = vpop.permute.xlu0 %748 }
 0x8e2   :  { %v3182_v45 = vpop.permute.xlu1 %882  ;;  %vm750_vm14 = vcmp.eq.s32.totalorder %v3180_v41, 1 }
 0x8e3   :  { %vm884_vm15 = vcmp.eq.s32.totalorder %v3182_v45, 1  ;;  %v760_v54 = vsel %vm750_vm14, %v739_v35, %v727_v28 }
 0x8e4   :  { %v2736_v37 = vpop.eup %2735  ;;  %v894_v3 = vsel %vm884_vm15, %v873_v36, %v861_v29 }
 0x8e5   :  { %v2738_v40 = vpop.eup %2737  ;;  %742 = vrot.lane.b32.xlu0 %v2736_v37, %s2906_s24 }
 0x8e6   :  { %876 = vrot.lane.b32.xlu1 %v2738_v40, %s2906_s24 }
 0x8e9   :  { %751 = vrot.lane.b32.xlu0 %v3137_v38, %s2917_s1 }
 0x8ea   :  { %885 = vrot.lane.b32.xlu1 %v3139_v39, %s2917_s1 }
 0x957   :  { %v743_v46 = vpop.permute.xlu0 %742 }
 0x958   :  { %v877_v47 = vpop.permute.xlu1 %876  ;;  %v3184_v48 = vmul.f32 %v2732_v14, %v743_v46 }
 0x959   :  { %v3187_v49 = vmul.f32 %v2734_v22, %v877_v47 }
 0x95b   :  { %v752_v50 = vpop.permute.xlu0 %751 }
 0x95c   :  { %v886_v51 = vpop.permute.xlu1 %885  ;;  %v754_v38 = vsel %vm750_vm14, %v3184_v48, %v752_v50 }
 0x95d   :  { %v888_v39 = vsel %vm884_vm15, %v3187_v49, %v886_v51  ;;  %756 = vrot.lane.b32.xlu0 %v754_v38, %s2916_s18 }
 0x95e   :  { %890 = vrot.lane.b32.xlu1 %v888_v39, %s2916_s18 }
 0x962   :  { %762 = vrot.lane.b32.xlu1 %v760_v54, %s2917_s1 }
 0x9cf   :  { %v757_v59 = vpop.permute.xlu0 %756 }
 0x9d0   :  { %v891_v60 = vpop.permute.xlu1 %890  ;;  %759 = vst.msk [vmem:[#allocation2] sm:$0xff] %vm66_vm0, %v757_v59 }
 0x9d1   :  { %893 = vst.msk [vmem:[#allocation4] sm:$0xff] %vm66_vm0, %v891_v60 }
 0x9d4   :  { %v763_v63 = vpop.permute.xlu1 %762 }
 0x9d5   :  { %765 = vst.msk [vmem:[#allocation3] sm:$0xff] %vm66_vm0, %v763_v63 }
 0x9d7   :  { %v3210_v1 = vld [vmem:[#allocation2] sm:$0xff] }
 0x9d8   :  { %v3212_v4 = vld [vmem:[#allocation4] sm:$0xff] }
 0x9d9   :  { %v2618_v5 = vpack.i.bf16 %v3212_v4, %v3210_v1 }
 0x9db   :  { %2619 = vrot.lane.b32.xlu0 %v2618_v5, %s2914_s0 }
 0x9dc   :  { %v917_v36 = vld [vmem:[#allocation3] sm:$0xff] }
 0x9df   :  { %896 = vrot.lane.b32.xlu0 %v894_v3, %s2917_s1 }
 0xa4d   :  { %v2620_v9 = vpop.permute.xlu0 %2619 }
 0xa4e   :  { %v2622_v10 = vunpack.i.h.bf16 %v2620_v9  ;;  %v2621_v11 = vunpack.i.l.bf16 %v2620_v9 }
 0xa50   :  { %v1056_v12 = vsel %vm80_vm2, %v3222_v8, %v2622_v10  ;;  %v922_v13 = vsel %vm80_vm2, %v3220_v7, %v2621_v11 }
 0xa51   :  { %v1057_v14 = vpack.c.bf16 %v1056_v12, %v1056_v12  ;;  %v923_v17 = vpack.c.bf16 %v922_v13, %v922_v13  ;;  %v897_v22 = vpop.permute.xlu0 %896 }
 0xa52   :  { %899 = vst.msk [vmem:[#allocation5] sm:$0xff] %vm66_vm0, %v897_v22 }
 0xa53   :  { %2494 = vmatmul.mubr.msk.bf16.vlgmr.msra.gmra.mxu0 %vm114_vm3, %v923_v17  ;;  %2504 = vmatmul.mubr.msk.bf16.vlgmr.msra.gmra.mxu1 %vm114_vm3, %v1057_v14 }
 0xa54   :  { %2513 = vmatprep.mubr.msk.bf16.mxu0 %vm2913_vm1, %v2912_v0  ;;  %2523 = vmatprep.mubr.msk.bf16.mxu1 %vm2913_vm1, %v2912_v0 }
 0xa59   :  { %v1051_v37 = vld [vmem:[#allocation5] sm:$0xff] }
 0xb13   :  { %v992_v25 = vpop.f32.mrf.mxu0  ;;  %v1126_v26 = vpop.f32.mrf.mxu1 }
 0xb14   :  { %v993_v18 = vadd.f32 %v3008_v19, %v992_v25  ;;  %v1127_v21 = vadd.f32 %v3013_v20, %v1126_v26  ;;  %v2667_v26 = vld [vmem:[#allocation9 + $0x10] sm:$0xff]  }
 0xb15   :  { %v2495_v27 = vpop.f32.mrf.mxu0  ;;  %v2505_v28 = vpop.f32.mrf.mxu1  ;;  %2508 = vmatpush3.bf16.msra.mxu0 %v2667_v26 }
 0xb16   :  { %2739 = vtanh.f32 %v993_v18  ;;  %v2308_v19 = vmul.f32 -1.442695, %v993_v18  ;;  %v2314_v20 = vmul.f32 -1.442695, %v1127_v21  ;;  %v2668_v18 = vld [vmem:[#allocation11 + $0x10] sm:$0xff]   ;;  %v2670_v28 = vld [vmem:[#allocation11 + $0x8] sm:$0xff]   ;;  %2509 = vmatprep.subr.bf16.mxu0 %v2912_v0 }
 0xb17   :  { %2741 = vtanh.f32 %v1127_v21  ;;  %v995_v29 = vpop.f32.mrf.mxu0  ;;  %v1129_v30 = vpop.f32.mrf.mxu1  ;;  %2518 = vmatpush3.bf16.msra.mxu1 %v2668_v18  ;;  %v2669_v27 = vld [vmem:[#allocation9 + $0x8] sm:$0xff]  }
 0xb18   :  { %2743 = vpow2.f32 %v2308_v19  ;;  %2519 = vmatprep.subr.bf16.mxu1 %v2912_v0  ;;  %v2671_v29 = vld [vmem:[#allocation9] sm:$0xff]   ;;  %v2672_v30 = vld [vmem:[#allocation11] sm:$0xff]  }
 0xb19   :  { %v2496_v32 = vpop.f32.mrf.mxu0  ;;  %v2506_v33 = vpop.f32.mrf.mxu1  ;;  %2745 = vpow2.f32 %v2314_v20  ;;  %2510 = vmatpush3.bf16.msra.mxu0 %v2669_v27 }
 0xb1a   :  { %2511 = vmatprep.subr.bf16.mxu0 %v2912_v0 }
 0xb1b   :  { %2520 = vmatpush3.bf16.msra.mxu1 %v2670_v28 }
 0xb1c   :  { %2521 = vmatprep.subr.bf16.mxu1 %v2912_v0 }
 0xb1d   :  { %2512 = vmatpush3.bf16.msra.mxu0 %v2671_v29 }
 0xb1e   :  { %2527 = vmatprep.subr.bf16.mxu0 %v2912_v0 }
 0xb1f   :  { %2522 = vmatpush3.bf16.msra.mxu1 %v2672_v30 }
 0xb20   :  { %2537 = vmatprep.subr.bf16.mxu1 %v2912_v0 }
 0xb23   :  { %v2740_v34 = vpop.eup %2739 }
 0xb24   :  { %v2742_v35 = vpop.eup %2741  ;;  %1011 = vrot.lane.b32.xlu1 %v2740_v34, %s2906_s24 }
 0xb25   :  { %1145 = vrot.lane.b32.xlu0 %v2742_v35, %s2906_s24  ;;  %v2744_v40 = vpop.eup %2743 }
 0xb26   :  { %v2746_v46 = vpop.eup %2745  ;;  %v1001_v47 = vadd.f32 1.0, %v2744_v40 }
 0xb27   :  { %v1135_v50 = vadd.f32 1.0, %v2746_v46 }
 0xb28   :  { %1006 = vrot.lane.b32.xlu1 %v917_v36, %s2916_s18  ;;  %2747 = vrcp.f32 %v1001_v47 }
 0xb29   :  { %1140 = vrot.lane.b32.xlu0 %v1051_v37, %s2916_s18  ;;  %2749 = vrcp.f32 %v1135_v50 }
 0xb35   :  { %v2748_v51 = vpop.eup %2747 }
 0xb36   :  { %v2750_v39 = vpop.eup %2749 }
 0xb96   :  { %v1012_v38 = vpop.permute.xlu1 %1011 }
 0xb97   :  { %v1146_v52 = vpop.permute.xlu0 %1145  ;;  %v1014_v53 = vmul.f32 %v2748_v51, %v1012_v38 }
 0xb98   :  { %v1148_v54 = vmul.f32 %v2750_v39, %v1146_v52 }
 0xb99   :  { %1016 = vrot.lane.b32.xlu1 %v1014_v53, %s2916_s18 }
 0xb9a   :  { %1150 = vrot.lane.b32.xlu0 %v1148_v54, %s2916_s18  ;;  %v1007_v57 = vpop.permute.xlu1 %1006 }
 0xb9b   :  { %v1141_v58 = vpop.permute.xlu0 %1140  ;;  %v1009_v59 = vmul.f32 %v2748_v51, %v1007_v57 }
 0xb9c   :  { %v1143_v60 = vmul.f32 %v2750_v39, %v1141_v58 }
 0xb9d   :  { %1028 = vperm.xlu1 %2606, %v1026_v55  }
 0xb9e   :  { %1162 = vperm.xlu0 %2607, %v1160_v56  }
 0xc0b   :  { %v1017_v63 = vpop.permute.xlu1 %1016 }
 0xc0c   :  { %v1151_v5 = vpop.permute.xlu0 %1150  ;;  %v1019_v3 = vadd.f32 %v1017_v63, %v1009_v59 }
 0xc0d   :  { %v1153_v9 = vadd.f32 %v1151_v5, %v1143_v60 }
 0xc0e   :  { %2751 = vtanh.f32 %v1019_v3 }
 0xc0f   :  { %2753 = vtanh.f32 %v1153_v9 }
 0xc18   :  { %v3253_v31 = vpop.permute.xlu1 %1028 }
 0xc19   :  { %v3255_v11 = vpop.permute.xlu0 %1162  ;;  %vm1030_vm8 = vcmp.eq.s32.totalorder %v3253_v31, 1 }
 0xc1a   :  { %vm1164_vm9 = vcmp.eq.s32.totalorder %v3255_v11, 1  ;;  %v1040_v21 = vsel %vm1030_vm8, %v1019_v3, %v1007_v57 }
 0xc1b   :  { %v2752_v42 = vpop.eup %2751  ;;  %v1174_v19 = vsel %vm1164_vm9, %v1153_v9, %v1141_v58 }
 0xc1c   :  { %v2754_v10 = vpop.eup %2753  ;;  %1022 = vrot.lane.b32.xlu1 %v2752_v42, %s2906_s24 }
 0xc1d   :  { %1156 = vrot.lane.b32.xlu0 %v2754_v10, %s2906_s24 }
 0xc20   :  { %1031 = vrot.lane.b32.xlu1 %v3210_v1, %s2917_s1 }
 0xc21   :  { %1165 = vrot.lane.b32.xlu0 %v3212_v4, %s2917_s1 }
 0xc8e   :  { %v1023_v12 = vpop.permute.xlu1 %1022 }
 0xc8f   :  { %v1157_v13 = vpop.permute.xlu0 %1156  ;;  %v3257_v14 = vmul.f32 %v2748_v51, %v1023_v12 }
 0xc90   :  { %v3260_v17 = vmul.f32 %v2750_v39, %v1157_v13 }
 0xc92   :  { %v1032_v22 = vpop.permute.xlu1 %1031 }
 0xc93   :  { %v1166_v25 = vpop.permute.xlu0 %1165  ;;  %v1034_v1 = vsel %vm1030_vm8, %v3257_v14, %v1032_v22 }
 0xc94   :  { %v1168_v4 = vsel %vm1164_vm9, %v3260_v17, %v1166_v25  ;;  %1036 = vrot.lane.b32.xlu1 %v1034_v1, %s2916_s18 }
 0xc95   :  { %1170 = vrot.lane.b32.xlu0 %v1168_v4, %s2916_s18 }
 0xc99   :  { %1042 = vrot.lane.b32.xlu0 %v1040_v21, %s2917_s1 }
 0xd06   :  { %v1037_v32 = vpop.permute.xlu1 %1036 }
 0xd07   :  { %v1171_v33 = vpop.permute.xlu0 %1170  ;;  %1039 = vst.msk [vmem:[#allocation2] sm:$0xff] %vm66_vm0, %v1037_v32 }
 0xd08   :  { %1173 = vst.msk [vmem:[#allocation4] sm:$0xff] %vm66_vm0, %v1171_v33 }
 0xd0b   :  { %v1043_v34 = vpop.permute.xlu0 %1042 }
 0xd0c   :  { %1045 = vst.msk [vmem:[#allocation3] sm:$0xff] %vm66_vm0, %v1043_v34 }
 0xd0e   :  { %v3283_v35 = vld [vmem:[#allocation2] sm:$0xff] }
 0xd0f   :  { %v3285_v36 = vld [vmem:[#allocation4] sm:$0xff] }
 0xd10   :  { %v2623_v37 = vpack.i.bf16 %v3285_v36, %v3283_v35 }
 0xd12   :  { %2624 = vrot.lane.b32.xlu1 %v2623_v37, %s2914_s0 }
 0xd13   :  { %v1195_v9 = vld [vmem:[#allocation3] sm:$0xff] }
 0xd16   :  { %1176 = vrot.lane.b32.xlu1 %v1174_v19, %s2917_s1 }
 0xd84   :  { %v2625_v20 = vpop.permute.xlu1 %2624 }
 0xd85   :  { %v2627_v40 = vunpack.i.h.bf16 %v2625_v20  ;;  %v2626_v46 = vunpack.i.l.bf16 %v2625_v20 }
 0xd87   :  { %v1327_v47 = vsel %vm80_vm2, %v3220_v7, %v2627_v40  ;;  %v1200_v50 = vsel %vm80_vm2, %v3222_v8, %v2626_v46  ;;  %v3307_v7 = vld [vmem:[%s3598_s3] ss:$0 sm:$0xff]  ;;  %s2918_s3 = smov [#allocation12]  }
 0xd88   :  { %v1328_v51 = vpack.c.bf16 %v1327_v47, %v1327_v47  ;;  %v1201_v38 = vpack.c.bf16 %v1200_v50, %v1200_v50  ;;  %v1177_v39 = vpop.permute.xlu1 %1176  ;;  %v3312_v8 = vld [vmem:[%s3600_s5] ss:$0 sm:$0xff]  ;;  %s2254_s5 = sshll.u32 %s2918_s3, 4  ;;  %s2255_s5 = int_to_ptr.vmem [resolvable:$true] %s2254_s5 }
 0xd89   :  { %1179 = vst.msk [vmem:[#allocation5] sm:$0xff] %vm66_vm0, %v1177_v39  ;;  %p2884_p2 = scmp.lt.s32.totalorder %s2255_s5, %s2255_s5 }
 0xd8a   :  { %2514 = vmatmul.mubr.msk.bf16.vlgmr.msra.gmra.mxu0 %vm114_vm3, %v1201_v38  ;;  %2524 = vmatmul.mubr.msk.bf16.vlgmr.msra.gmra.mxu1 %vm114_vm3, %v1328_v51 }
 0xd8b   :  { %2533 = vmatprep.mubr.msk.bf16.mxu0 %vm2913_vm1, %v2912_v0  ;;  %2543 = vmatprep.mubr.msk.bf16.mxu1 %vm2913_vm1, %v2912_v0 }
 0xd90   :  { %v1322_v42 = vld [vmem:[#allocation5] sm:$0xff] }
 0xe4a   :  { %v1270_v52 = vpop.f32.mrf.mxu0  ;;  %v1397_v53 = vpop.f32.mrf.mxu1 }
 0xe4b   :  { %v1271_v54 = vadd.f32 %v3307_v7, %v1270_v52  ;;  %v1398_v55 = vadd.f32 %v3312_v8, %v1397_v53 }
 0xe4c   :  { %v2515_v56 = vpop.f32.mrf.mxu0  ;;  %v2525_v57 = vpop.f32.mrf.mxu1 }
 0xe4d   :  { %2755 = vtanh.f32 %v1271_v54  ;;  %v2320_v10 = vmul.f32 -1.442695, %v1271_v54  ;;  %v2326_v12 = vmul.f32 -1.442695, %v1398_v55  ;;  %v2675_v56 = vld [vmem:[#allocation9 + $0x8] sm:$0xff]   ;;  %v2676_v57 = vld [vmem:[#allocation11 + $0x8] sm:$0xff]  }
 0xe4e   :  { %2757 = vtanh.f32 %v1398_v55  ;;  %v1273_v58 = vpop.f32.mrf.mxu0  ;;  %v1400_v59 = vpop.f32.mrf.mxu1 }
 0xe4f   :  { %2759 = vpow2.f32 %v2320_v10  ;;  %v2677_v58 = vld [vmem:[#allocation9] sm:$0xff]   ;;  %v2678_v59 = vld [vmem:[#allocation11] sm:$0xff]  }
 0xe50   :  { %v2516_v60 = vpop.f32.mrf.mxu0  ;;  %v2526_v63 = vpop.f32.mrf.mxu1  ;;  %2761 = vpow2.f32 %v2326_v12 }
 0xe5a   :  { %v2756_v5 = vpop.eup %2755 }
 0xe5b   :  { %v2758_v3 = vpop.eup %2757  ;;  %1289 = vrot.lane.b32.xlu0 %v2756_v5, %s2906_s24 }
 0xe5c   :  { %1416 = vrot.lane.b32.xlu1 %v2758_v3, %s2906_s24  ;;  %v2760_v13 = vpop.eup %2759 }
 0xe5d   :  { %v2762_v22 = vpop.eup %2761  ;;  %v1279_v25 = vadd.f32 1.0, %v2760_v13 }
 0xe5e   :  { %v1406_v1 = vadd.f32 1.0, %v2762_v22 }
 0xe5f   :  { %1284 = vrot.lane.b32.xlu0 %v1195_v9, %s2916_s18  ;;  %2763 = vrcp.f32 %v1279_v25 }
 0xe60   :  { %1411 = vrot.lane.b32.xlu1 %v1322_v42, %s2916_s18  ;;  %2765 = vrcp.f32 %v1406_v1 }
 0xe6c   :  { %v2764_v4 = vpop.eup %2763 }
 0xe6d   :  { %v2766_v18 = vpop.eup %2765 }
 0xecd   :  { %v1290_v26 = vpop.permute.xlu0 %1289 }
 0xece   :  { %v1417_v21 = vpop.permute.xlu1 %1416  ;;  %v1292_v27 = vmul.f32 %v2764_v4, %v1290_v26 }
 0xecf   :  { %v1419_v28 = vmul.f32 %v2766_v18, %v1417_v21 }
 0xed0   :  { %1294 = vrot.lane.b32.xlu0 %v1292_v27, %s2916_s18 }
 0xed1   :  { %1421 = vrot.lane.b32.xlu1 %v1419_v28, %s2916_s18  ;;  %v1285_v29 = vpop.permute.xlu0 %1284 }
 0xed2   :  { %v1412_v30 = vpop.permute.xlu1 %1411  ;;  %v1287_v32 = vmul.f32 %v2764_v4, %v1285_v29 }
 0xed3   :  { %v1414_v33 = vmul.f32 %v2766_v18, %v1412_v30 }
 0xf42   :  { %v1295_v34 = vpop.permute.xlu0 %1294 }
 0xf43   :  { %v1422_v37 = vpop.permute.xlu1 %1421  ;;  %v1297_v19 = vadd.f32 %v1295_v34, %v1287_v32 }
 0xf44   :  { %v1424_v20 = vadd.f32 %v1422_v37, %v1414_v33 }
 0xf45   :  { %2767 = vtanh.f32 %v1297_v19  ;;  %v1313_v55 = vsel %vm1164_vm9, %v1297_v19, %v1285_v29 }
 0xf46   :  { %2769 = vtanh.f32 %v1424_v20  ;;  %v1440_v10 = vsel %vm1030_vm8, %v1424_v20, %v1412_v30 }
 0xf52   :  { %v2768_v40 = vpop.eup %2767 }
 0xf53   :  { %v2770_v46 = vpop.eup %2769  ;;  %1300 = vrot.lane.b32.xlu0 %v2768_v40, %s2906_s24 }
 0xf54   :  { %1427 = vrot.lane.b32.xlu1 %v2770_v46, %s2906_s24 }
 0xf57   :  { %1304 = vrot.lane.b32.xlu0 %v3283_v35, %s2917_s1  ;;  %v2673_v35 = vld [vmem:[#allocation9 + $0x10] sm:$0xff]  }
 0xf58   :  { %1431 = vrot.lane.b32.xlu1 %v3285_v36, %s2917_s1  ;;  %v2674_v36 = vld [vmem:[#allocation11 + $0x10] sm:$0xff]   ;;  %2528 = vmatpush3.bf16.msra.mxu0 %v2673_v35 }
 0xf59   :  { %2538 = vmatpush3.bf16.msra.mxu1 %v2674_v36  ;;  %2529 = vmatprep.subr.bf16.mxu0 %v2912_v0 }
 0xf5a   :  { %2539 = vmatprep.subr.bf16.mxu1 %v2912_v0 }
 0xf5c   :  { %2530 = vmatpush3.bf16.msra.mxu0 %v2675_v56 }
 0xf5d   :  { %2540 = vmatpush3.bf16.msra.mxu1 %v2676_v57  ;;  %2531 = vmatprep.subr.bf16.mxu0 %v2912_v0 }
 0xf5e   :  { %2541 = vmatprep.subr.bf16.mxu1 %v2912_v0 }
 0xf60   :  { %2532 = vmatpush3.bf16.msra.mxu0 %v2677_v58 }
 0xf61   :  { %2542 = vmatpush3.bf16.msra.mxu1 %v2678_v59  ;;  %2547 = vmatprep.subr.bf16.mxu0 %v2912_v0 }
 0xf62   :  { %2557 = vmatprep.subr.bf16.mxu1 %v2912_v0 }
 0xfc5   :  { %v1301_v47 = vpop.permute.xlu0 %1300 }
 0xfc6   :  { %v1428_v50 = vpop.permute.xlu1 %1427  ;;  %v3328_v51 = vmul.f32 %v2764_v4, %v1301_v47 }
 0xfc7   :  { %v3330_v38 = vmul.f32 %v2766_v18, %v1428_v50 }
 0xfc9   :  { %v1305_v39 = vpop.permute.xlu0 %1304 }
 0xfca   :  { %v1432_v52 = vpop.permute.xlu1 %1431  ;;  %v1307_v53 = vsel %vm1164_vm9, %v3328_v51, %v1305_v39 }
 0xfcb   :  { %v1434_v54 = vsel %vm1030_vm8, %v3330_v38, %v1432_v52  ;;  %1309 = vrot.lane.b32.xlu0 %v1307_v53, %s2916_s18 }
 0xfcc   :  { %1436 = vrot.lane.b32.xlu1 %v1434_v54, %s2916_s18 }
 0xfd0   :  { %1315 = vrot.lane.b32.xlu1 %v1313_v55, %s2917_s1 }
0x103d   :  { %v1310_v60 = vpop.permute.xlu0 %1309 }
0x103e   :  { %v1437_v63 = vpop.permute.xlu1 %1436  ;;  %1312 = vst.msk [vmem:[#allocation2] sm:$0xff] %vm66_vm0, %v1310_v60 }
0x103f   :  { %1439 = vst.msk [vmem:[#allocation4] sm:$0xff] %vm66_vm0, %v1437_v63 }
0x1042   :  { %v1316_v5 = vpop.permute.xlu1 %1315 }
0x1043   :  { %1318 = vst.msk [vmem:[#allocation3] sm:$0xff] %vm66_vm0, %v1316_v5 }
0x1045   :  { %v3352_v3 = vld [vmem:[#allocation2] sm:$0xff] }
0x1046   :  { %v3354_v9 = vld [vmem:[#allocation4] sm:$0xff] }
0x1047   :  { %v2628_v42 = vpack.i.bf16 %v3354_v9, %v3352_v3 }
0x1049   :  { %2629 = vrot.lane.b32.xlu0 %v2628_v42, %s2914_s0 }
0x104a   :  { %v1459_v20 = vld [vmem:[#allocation3] sm:$0xff] }
0x104d   :  { %1442 = vrot.lane.b32.xlu0 %v1440_v10, %s2917_s1 }
0x10bb   :  { %v2630_v12 = vpop.permute.xlu0 %2629 }
0x10bc   :  { %v2632_v13 = vunpack.i.h.bf16 %v2630_v12  ;;  %v2631_v22 = vunpack.i.l.bf16 %v2630_v12 }
0x10be   :  { %v1591_v25 = vsel %vm80_vm2, %v3147_v43, %v2632_v13  ;;  %v1464_v1 = vsel %vm80_vm2, %v3149_v44, %v2631_v22 }
0x10bf   :  { %v1592_v4 = vpack.c.bf16 %v1591_v25, %v1591_v25  ;;  %v1465_v26 = vpack.c.bf16 %v1464_v1, %v1464_v1  ;;  %v1443_v18 = vpop.permute.xlu0 %1442 }
0x10c0   :  { %1445 = vst.msk [vmem:[#allocation5] sm:$0xff] %vm66_vm0, %v1443_v18 }
0x10c1   :  { %2534 = vmatmul.mubr.msk.bf16.vlgmr.msra.gmra.mxu0 %vm114_vm3, %v1465_v26  ;;  %2544 = vmatmul.mubr.msk.bf16.vlgmr.msra.gmra.mxu1 %vm114_vm3, %v1592_v4 }
0x10c2   :  { %2553 = vmatprep.mubr.msk.bf16.mxu0 %vm2913_vm1, %v2912_v0  ;;  %2563 = vmatprep.mubr.msk.bf16.mxu1 %vm2913_vm1, %v2912_v0 }
0x10c7   :  { %v1586_v40 = vld [vmem:[#allocation5] sm:$0xff] }
0x1181   :  { %v1534_v21 = vpop.f32.mrf.mxu0  ;;  %v1661_v43 = vpop.f32.mrf.mxu1 }
0x1182   :  { %v1535_v27 = vadd.f32 %v3307_v7, %v1534_v21  ;;  %v1662_v44 = vadd.f32 %v3312_v8, %v1661_v43 }
0x1183   :  { %v2535_v28 = vpop.f32.mrf.mxu0  ;;  %v2545_v29 = vpop.f32.mrf.mxu1 }
0x1184   :  { %2771 = vtanh.f32 %v1535_v27  ;;  %v2332_v46 = vmul.f32 -1.442695, %v1535_v27  ;;  %v2338_v47 = vmul.f32 -1.442695, %v1662_v44  ;;  %v2681_v28 = vld [vmem:[#allocation9 + $0x8] sm:$0xff]   ;;  %v2682_v29 = vld [vmem:[#allocation11 + $0x8] sm:$0xff]  }
0x1185   :  { %2773 = vtanh.f32 %v1662_v44  ;;  %v1537_v30 = vpop.f32.mrf.mxu0  ;;  %v1664_v32 = vpop.f32.mrf.mxu1 }
0x1186   :  { %2775 = vpow2.f32 %v2332_v46  ;;  %v2683_v30 = vld [vmem:[#allocation9] sm:$0xff]   ;;  %v2684_v32 = vld [vmem:[#allocation11] sm:$0xff]  }
0x1187   :  { %v2536_v33 = vpop.f32.mrf.mxu0  ;;  %v2546_v34 = vpop.f32.mrf.mxu1  ;;  %2777 = vpow2.f32 %v2338_v47  ;;  %v1721_v47 = vld [vmem:[#allocation6 + $0x30] sm:$0xff] }
0x1191   :  { %v2772_v37 = vpop.eup %2771 }
0x1192   :  { %v2774_v19 = vpop.eup %2773  ;;  %1553 = vrot.lane.b32.xlu1 %v2772_v37, %s2906_s24 }
0x1193   :  { %1680 = vrot.lane.b32.xlu0 %v2774_v19, %s2906_s24  ;;  %v2776_v50 = vpop.eup %2775 }
0x1194   :  { %v2778_v39 = vpop.eup %2777  ;;  %v1543_v52 = vadd.f32 1.0, %v2776_v50  ;;  %v1848_v50 = vld [vmem:[#allocation6 + $0x8] sm:$0xff] }
0x1195   :  { %v1670_v53 = vadd.f32 1.0, %v2778_v39 }
0x1196   :  { %1548 = vrot.lane.b32.xlu1 %v1459_v20, %s2916_s18  ;;  %2779 = vrcp.f32 %v1543_v52 }
0x1197   :  { %1675 = vrot.lane.b32.xlu0 %v1586_v40, %s2916_s18  ;;  %2781 = vrcp.f32 %v1670_v53 }
0x11a3   :  { %v2780_v54 = vpop.eup %2779 }
0x11a4   :  { %v2782_v36 = vpop.eup %2781 }
0x1204   :  { %v1554_v35 = vpop.permute.xlu1 %1553 }
0x1205   :  { %v1681_v55 = vpop.permute.xlu0 %1680  ;;  %v1556_v56 = vmul.f32 %v2780_v54, %v1554_v35 }
0x1206   :  { %v1683_v57 = vmul.f32 %v2782_v36, %v1681_v55 }
0x1207   :  { %1558 = vrot.lane.b32.xlu1 %v1556_v56, %s2916_s18 }
0x1208   :  { %1685 = vrot.lane.b32.xlu0 %v1683_v57, %s2916_s18  ;;  %v1549_v58 = vpop.permute.xlu1 %1548 }
0x1209   :  { %v1676_v59 = vpop.permute.xlu0 %1675  ;;  %v1551_v60 = vmul.f32 %v2780_v54, %v1549_v58 }
0x120a   :  { %v1678_v63 = vmul.f32 %v2782_v36, %v1676_v59 }
0x1279   :  { %v1559_v5 = vpop.permute.xlu1 %1558 }
0x127a   :  { %v1686_v42 = vpop.permute.xlu0 %1685  ;;  %v1561_v10 = vadd.f32 %v1559_v5, %v1551_v60 }
0x127b   :  { %v1688_v12 = vadd.f32 %v1686_v42, %v1678_v63 }
0x127c   :  { %2783 = vtanh.f32 %v1561_v10  ;;  %v1577_v44 = vsel %vm884_vm15, %v1561_v10, %v1549_v58 }
0x127d   :  { %2785 = vtanh.f32 %v1688_v12  ;;  %v1704_v46 = vsel %vm750_vm14, %v1688_v12, %v1676_v59 }
0x1289   :  { %v2784_v13 = vpop.eup %2783 }
0x128a   :  { %v2786_v22 = vpop.eup %2785  ;;  %1564 = vrot.lane.b32.xlu1 %v2784_v13, %s2906_s24 }
0x128b   :  { %1691 = vrot.lane.b32.xlu0 %v2786_v22, %s2906_s24 }
0x128e   :  { %1568 = vrot.lane.b32.xlu1 %v3352_v3, %s2917_s1  ;;  %v2679_v3 = vld [vmem:[#allocation9 + $0x10] sm:$0xff]  }
0x128f   :  { %1695 = vrot.lane.b32.xlu0 %v3354_v9, %s2917_s1  ;;  %v2680_v9 = vld [vmem:[#allocation11 + $0x10] sm:$0xff]   ;;  %2548 = vmatpush3.bf16.msra.mxu0 %v2679_v3 }
0x1290   :  { %2558 = vmatpush3.bf16.msra.mxu1 %v2680_v9  ;;  %2549 = vmatprep.subr.bf16.mxu0 %v2912_v0 }
0x1291   :  { %2559 = vmatprep.subr.bf16.mxu1 %v2912_v0 }
0x1293   :  { %2550 = vmatpush3.bf16.msra.mxu0 %v2681_v28 }
0x1294   :  { %2560 = vmatpush3.bf16.msra.mxu1 %v2682_v29  ;;  %2551 = vmatprep.subr.bf16.mxu0 %v2912_v0 }
0x1295   :  { %2561 = vmatprep.subr.bf16.mxu1 %v2912_v0 }
0x1297   :  { %2552 = vmatpush3.bf16.msra.mxu0 %v2683_v30 }
0x1298   :  { %2562 = vmatpush3.bf16.msra.mxu1 %v2684_v32  ;;  %2567 = vmatprep.subr.bf16.mxu0 %v2912_v0 }
0x1299   :  { %2577 = vmatprep.subr.bf16.mxu1 %v2912_v0 }
0x12fc   :  { %v1565_v25 = vpop.permute.xlu1 %1564 }
0x12fd   :  { %v1692_v1 = vpop.permute.xlu0 %1691  ;;  %v3387_v4 = vmul.f32 %v2780_v54, %v1565_v25 }
0x12fe   :  { %v3389_v26 = vmul.f32 %v2782_v36, %v1692_v1 }
0x1300   :  { %v1569_v18 = vpop.permute.xlu1 %1568 }
0x1301   :  { %v1696_v21 = vpop.permute.xlu0 %1695  ;;  %v1571_v43 = vsel %vm884_vm15, %v3387_v4, %v1569_v18 }
0x1302   :  { %v1698_v27 = vsel %vm750_vm14, %v3389_v26, %v1696_v21  ;;  %1573 = vrot.lane.b32.xlu1 %v1571_v43, %s2916_s18 }
0x1303   :  { %1700 = vrot.lane.b32.xlu0 %v1698_v27, %s2916_s18 }
0x1307   :  { %1579 = vrot.lane.b32.xlu0 %v1577_v44, %s2917_s1 }
0x1374   :  { %v1574_v33 = vpop.permute.xlu1 %1573 }
0x1375   :  { %v1701_v34 = vpop.permute.xlu0 %1700  ;;  %1576 = vst.msk [vmem:[#allocation2] sm:$0xff] %vm66_vm0, %v1574_v33 }
0x1376   :  { %1703 = vst.msk [vmem:[#allocation4] sm:$0xff] %vm66_vm0, %v1701_v34 }
0x1379   :  { %v1580_v37 = vpop.permute.xlu0 %1579 }
0x137a   :  { %1582 = vst.msk [vmem:[#allocation3] sm:$0xff] %vm66_vm0, %v1580_v37 }
0x137c   :  { %v3411_v19 = vld [vmem:[#allocation2] sm:$0xff] }
0x137d   :  { %v3413_v20 = vld [vmem:[#allocation4] sm:$0xff] }
0x137e   :  { %v2633_v40 = vpack.i.bf16 %v3413_v20, %v3411_v19 }
0x1380   :  { %2634 = vrot.lane.b32.xlu1 %v2633_v40, %s2914_s0 }
0x1381   :  { %v1723_v1 = vld [vmem:[#allocation3] sm:$0xff] }
0x1384   :  { %1706 = vrot.lane.b32.xlu1 %v1704_v46, %s2917_s1 }
0x13f2   :  { %v2635_v39 = vpop.permute.xlu1 %2634 }
0x13f3   :  { %v2637_v52 = vunpack.i.h.bf16 %v2635_v39  ;;  %v2636_v53 = vunpack.i.l.bf16 %v2635_v39 }
0x13f5   :  { %v1855_v54 = vsel %vm80_vm2, %v1848_v50, %v2637_v52  ;;  %v1728_v35 = vsel %vm80_vm2, %v1721_v47, %v2636_v53 }
0x13f6   :  { %v1856_v36 = vpack.c.bf16 %v1855_v54, %v1855_v54  ;;  %v1729_v55 = vpack.c.bf16 %v1728_v35, %v1728_v35  ;;  %v1707_v56 = vpop.permute.xlu1 %1706 }
0x13f7   :  { %1709 = vst.msk [vmem:[#allocation5] sm:$0xff] %vm66_vm0, %v1707_v56 }
0x13f8   :  { %2554 = vmatmul.mubr.msk.bf16.vlgmr.msra.gmra.mxu0 %vm114_vm3, %v1729_v55  ;;  %2564 = vmatmul.mubr.msk.bf16.vlgmr.msra.gmra.mxu1 %vm114_vm3, %v1856_v36 }
0x13f9   :  { %2573 = vmatprep.mubr.msk.bf16.mxu0 %vm2913_vm1, %v2912_v0  ;;  %2583 = vmatprep.mubr.msk.bf16.mxu1 %vm2913_vm1, %v2912_v0  ;;  %vm351_vm1 = vcmask 523520  }
0x13fe   :  { %v1850_v18 = vld [vmem:[#allocation5] sm:$0xff] }
0x14b8   :  { %v1798_v57 = vpop.f32.mrf.mxu0  ;;  %v1925_v58 = vpop.f32.mrf.mxu1 }
0x14b9   :  { %v1799_v59 = vadd.f32 %v3307_v7, %v1798_v57  ;;  %v1926_v60 = vadd.f32 %v3312_v8, %v1925_v58 }
0x14ba   :  { %v2555_v63 = vpop.f32.mrf.mxu0  ;;  %v2565_v5 = vpop.f32.mrf.mxu1 }
0x14bb   :  { %2787 = vtanh.f32 %v1799_v59  ;;  %v2344_v21 = vmul.f32 -1.442695, %v1799_v59  ;;  %v2350_v43 = vmul.f32 -1.442695, %v1926_v60 }
0x14bc   :  { %2789 = vtanh.f32 %v1926_v60  ;;  %v1801_v42 = vpop.f32.mrf.mxu0  ;;  %v1928_v10 = vpop.f32.mrf.mxu1 }
0x14bd   :  { %2791 = vpow2.f32 %v2344_v21  ;;  %v2687_v42 = vld [vmem:[#allocation9 + $0x8] sm:$0xff]   ;;  %v2688_v10 = vld [vmem:[#allocation11 + $0x8] sm:$0xff]  }
0x14be   :  { %v2556_v12 = vpop.f32.mrf.mxu0  ;;  %v2566_v13 = vpop.f32.mrf.mxu1  ;;  %2793 = vpow2.f32 %v2350_v43 }
0x14bf   :  { %v2689_v12 = vld [vmem:[#allocation9] sm:$0xff]   ;;  %v2690_v13 = vld [vmem:[#allocation11] sm:$0xff]  }
0x14c8   :  { %v2788_v22 = vpop.eup %2787 }
0x14c9   :  { %v2790_v25 = vpop.eup %2789  ;;  %1817 = vrot.lane.b32.xlu0 %v2788_v22, %s2906_s24 }
0x14ca   :  { %1944 = vrot.lane.b32.xlu1 %v2790_v25, %s2906_s24  ;;  %v2792_v27 = vpop.eup %2791 }
0x14cb   :  { %v2794_v3 = vpop.eup %2793  ;;  %v1807_v9 = vadd.f32 1.0, %v2792_v27  ;;  %v1985_v27 = vld [vmem:[#allocation6 + $0x38] sm:$0xff] }
0x14cc   :  { %v1934_v44 = vadd.f32 1.0, %v2794_v3  ;;  %v2112_v3 = vld [vmem:[#allocation6] sm:$0xff] }
0x14cd   :  { %1812 = vrot.lane.b32.xlu0 %v1723_v1, %s2916_s18  ;;  %2795 = vrcp.f32 %v1807_v9 }
0x14ce   :  { %1939 = vrot.lane.b32.xlu1 %v1850_v18, %s2916_s18  ;;  %2797 = vrcp.f32 %v1934_v44 }
0x14da   :  { %v2796_v28 = vpop.eup %2795 }
0x14db   :  { %v2798_v30 = vpop.eup %2797 }
0x153b   :  { %v1818_v29 = vpop.permute.xlu0 %1817 }
0x153c   :  { %v1945_v32 = vpop.permute.xlu1 %1944  ;;  %v1820_v33 = vmul.f32 %v2796_v28, %v1818_v29 }
0x153d   :  { %v1947_v34 = vmul.f32 %v2798_v30, %v1945_v32 }
0x153e   :  { %1822 = vrot.lane.b32.xlu0 %v1820_v33, %s2916_s18 }
0x153f   :  { %1949 = vrot.lane.b32.xlu1 %v1947_v34, %s2916_s18  ;;  %v1813_v37 = vpop.permute.xlu0 %1812 }
0x1540   :  { %v1940_v40 = vpop.permute.xlu1 %1939  ;;  %v1815_v46 = vmul.f32 %v2796_v28, %v1813_v37 }
0x1541   :  { %v1942_v47 = vmul.f32 %v2798_v30, %v1940_v40 }
0x15b0   :  { %v1823_v50 = vpop.permute.xlu0 %1822 }
0x15b1   :  { %v1950_v39 = vpop.permute.xlu1 %1949  ;;  %v1825_v52 = vadd.f32 %v1823_v50, %v1815_v46 }
0x15b2   :  { %v1952_v53 = vadd.f32 %v1950_v39, %v1942_v47 }
0x15b3   :  { %2799 = vtanh.f32 %v1825_v52  ;;  %v1841_v5 = vsel %vm604_vm11, %v1825_v52, %v1813_v37 }
0x15b4   :  { %2801 = vtanh.f32 %v1952_v53  ;;  %v1968_v43 = vsel %vm470_vm10, %v1952_v53, %v1940_v40 }
0x15c0   :  { %v2800_v54 = vpop.eup %2799 }
0x15c1   :  { %v2802_v35 = vpop.eup %2801  ;;  %1828 = vrot.lane.b32.xlu0 %v2800_v54, %s2906_s24 }
0x15c2   :  { %1955 = vrot.lane.b32.xlu1 %v2802_v35, %s2906_s24 }
0x15c5   :  { %1832 = vrot.lane.b32.xlu0 %v3411_v19, %s2917_s1  ;;  %v2685_v19 = vld [vmem:[#allocation9 + $0x10] sm:$0xff]  }
0x15c6   :  { %1959 = vrot.lane.b32.xlu1 %v3413_v20, %s2917_s1  ;;  %v2686_v20 = vld [vmem:[#allocation11 + $0x10] sm:$0xff]   ;;  %2568 = vmatpush3.bf16.msra.mxu0 %v2685_v19 }
0x15c7   :  { %2578 = vmatpush3.bf16.msra.mxu1 %v2686_v20  ;;  %2569 = vmatprep.subr.bf16.mxu0 %v2912_v0 }
0x15c8   :  { %2579 = vmatprep.subr.bf16.mxu1 %v2912_v0 }
0x15ca   :  { %2570 = vmatpush3.bf16.msra.mxu0 %v2687_v42 }
0x15cb   :  { %2580 = vmatpush3.bf16.msra.mxu1 %v2688_v10  ;;  %2571 = vmatprep.subr.bf16.mxu0 %v2912_v0 }
0x15cc   :  { %2581 = vmatprep.subr.bf16.mxu1 %v2912_v0 }
0x15ce   :  { %2572 = vmatpush3.bf16.msra.mxu0 %v2689_v12 }
0x15cf   :  { %2582 = vmatpush3.bf16.msra.mxu1 %v2690_v13 }
0x1633   :  { %v1829_v36 = vpop.permute.xlu0 %1828 }
0x1634   :  { %v1956_v55 = vpop.permute.xlu1 %1955  ;;  %v3444_v56 = vmul.f32 %v2796_v28, %v1829_v36 }
0x1635   :  { %v3446_v57 = vmul.f32 %v2798_v30, %v1956_v55 }
0x1636   :  { %v1847_v31 = vsel %vm604_vm11, %v3444_v56, 0.0 }
0x1637   :  { %v1833_v58 = vpop.permute.xlu0 %1832  ;;  %v1974_v11 = vsel %vm470_vm10, %v3446_v57, 0.0 }
0x1638   :  { %v1960_v59 = vpop.permute.xlu1 %1959  ;;  %v1835_v60 = vsel %vm604_vm11, %v3444_v56, %v1833_v58 }
0x1639   :  { %v1962_v63 = vsel %vm470_vm10, %v3446_v57, %v1960_v59  ;;  %1837 = vrot.lane.b32.xlu0 %v1835_v60, %s2916_s18 }
0x163a   :  { %1964 = vrot.lane.b32.xlu1 %v1962_v63, %s2916_s18 }
0x163e   :  { %1843 = vrot.lane.b32.xlu1 %v1841_v5, %s2917_s1 }
0x16ab   :  { %v1838_v22 = vpop.permute.xlu0 %1837 }
0x16ac   :  { %v1965_v25 = vpop.permute.xlu1 %1964  ;;  %1840 = vst.msk [vmem:[#allocation2] sm:$0xff] %vm66_vm0, %v1838_v22 }
0x16ad   :  { %1967 = vst.msk [vmem:[#allocation4] sm:$0xff] %vm66_vm0, %v1965_v25 }
0x16b0   :  { %v1844_v1 = vpop.permute.xlu1 %1843 }
0x16b1   :  { %1846 = vst.msk [vmem:[#allocation3] sm:$0xff] %vm66_vm0, %v1844_v1 }
0x16b3   :  { %v3466_v18 = vld [vmem:[#allocation2] sm:$0xff] }
0x16b4   :  { %v3468_v21 = vld [vmem:[#allocation4] sm:$0xff] }
0x16b5   :  { %v2638_v0 = vpack.i.bf16 %v3468_v21, %v3466_v18 }
0x16b7   :  { %2639 = vrot.lane.b32.xlu0 %v2638_v0, %s2914_s0 }
0x16b8   :  { %v1987_v58 = vld [vmem:[#allocation3] sm:$0xff] }
0x16bb   :  { %1970 = vrot.lane.b32.xlu0 %v1968_v43, %s2917_s1 }
0x1729   :  { %v2640_v9 = vpop.permute.xlu0 %2639 }
0x172a   :  { %v2642_v44 = vunpack.i.h.bf16 %v2640_v9  ;;  %v2641_v28 = vunpack.i.l.bf16 %v2640_v9 }
0x172c   :  { %v2119_v29 = vsel %vm80_vm2, %v2112_v3, %v2642_v44  ;;  %v1992_v30 = vsel %vm80_vm2, %v1985_v27, %v2641_v28 }
0x172d   :  { %v2120_v32 = vpack.c.bf16 %v2119_v29, %v2119_v29  ;;  %v1993_v33 = vpack.c.bf16 %v1992_v30, %v1992_v30  ;;  %v1971_v34 = vpop.permute.xlu0 %1970  ;;  %v206_v30 = vsel %vm190_vm6, %v3044_v2, 0.0  ;;  %v766_v2 = vsel %vm750_vm14, %v3184_v48, 0.0 }
0x172e   :  { %1973 = vst.msk [vmem:[#allocation5] sm:$0xff] %vm66_vm0, %v1971_v34  ;;  %v1319_v48 = vsel %vm1164_vm9, %v3328_v51, 0.0 }
0x172f   :  { %2574 = vmatmul.mubr.msk.bf16.vlgmr.msra.gmra.mxu0 %vm114_vm3, %v1993_v33  ;;  %2584 = vmatmul.mubr.msk.bf16.vlgmr.msra.gmra.mxu1 %vm114_vm3, %v2120_v32  ;;  %v340_v32 = vsel %vm324_vm7, %v3051_v6, 0.0  ;;  %v486_v33 = vsel %vm470_vm10, %v3111_v23, 0.0  ;;  %v900_v6 = vsel %vm884_vm15, %v3187_v49, 0.0  ;;  %v1046_v23 = vsel %vm1030_vm8, %v3257_v14, 0.0 }
0x1730   :  { %v1446_v49 = vsel %vm1030_vm8, %v3330_v38, 0.0  ;;  %v1583_v14 = vsel %vm884_vm15, %v3387_v4, 0.0 }
0x1735   :  { %v2114_v59 = vld [vmem:[#allocation5] sm:$0xff] }
0x17ef   :  { %v2062_v37 = vpop.f32.mrf.mxu0  ;;  %v2189_v40 = vpop.f32.mrf.mxu1 }
0x17f0   :  { %v2063_v46 = vadd.f32 %v3307_v7, %v2062_v37  ;;  %v2190_v47 = vadd.f32 %v3312_v8, %v2189_v40 }
0x17f1   :  { %v2575_v50 = vpop.f32.mrf.mxu0  ;;  %v2585_v39 = vpop.f32.mrf.mxu1 }
0x17f2   :  { %2803 = vtanh.f32 %v2063_v46  ;;  %v2356_v7 = vmul.f32 -1.442695, %v2063_v46  ;;  %v2362_v8 = vmul.f32 -1.442695, %v2190_v47 }
0x17f3   :  { %2805 = vtanh.f32 %v2190_v47  ;;  %v2065_v52 = vpop.f32.mrf.mxu0  ;;  %v2192_v53 = vpop.f32.mrf.mxu1 }
0x17f4   :  { %2807 = vpow2.f32 %v2356_v7 }
0x17f5   :  { %v2576_v54 = vpop.f32.mrf.mxu0  ;;  %v2586_v35 = vpop.f32.mrf.mxu1  ;;  %2809 = vpow2.f32 %v2362_v8 }
0x17ff   :  { %v2804_v36 = vpop.eup %2803 }
0x1800   :  { %v2806_v55 = vpop.eup %2805  ;;  %2081 = vrot.lane.b32.xlu1 %v2804_v36, %s2906_s24 }
0x1801   :  { %2208 = vrot.lane.b32.xlu0 %v2806_v55, %s2906_s24  ;;  %v2808_v60 = vpop.eup %2807 }
0x1802   :  { %v2810_v63 = vpop.eup %2809  ;;  %v2071_v19 = vadd.f32 1.0, %v2808_v60 }
0x1803   :  { %v2198_v20 = vadd.f32 1.0, %v2810_v63 }
0x1804   :  { %2076 = vrot.lane.b32.xlu1 %v1987_v58, %s2916_s18  ;;  %2811 = vrcp.f32 %v2071_v19 }
0x1805   :  { %2203 = vrot.lane.b32.xlu0 %v2114_v59, %s2916_s18  ;;  %2813 = vrcp.f32 %v2198_v20 }
0x1811   :  { %v2812_v5 = vpop.eup %2811 }
0x1812   :  { %v2814_v10 = vpop.eup %2813 }
0x1872   :  { %v2082_v42 = vpop.permute.xlu1 %2081 }
0x1873   :  { %v2209_v12 = vpop.permute.xlu0 %2208  ;;  %v2084_v13 = vmul.f32 %v2812_v5, %v2082_v42 }
0x1874   :  { %v2211_v22 = vmul.f32 %v2814_v10, %v2209_v12 }
0x1875   :  { %2086 = vrot.lane.b32.xlu1 %v2084_v13, %s2916_s18 }
0x1876   :  { %2213 = vrot.lane.b32.xlu0 %v2211_v22, %s2916_s18  ;;  %v2077_v25 = vpop.permute.xlu1 %2076 }
0x1877   :  { %v2204_v1 = vpop.permute.xlu0 %2203  ;;  %v2079_v0 = vmul.f32 %v2812_v5, %v2077_v25 }
0x1878   :  { %v2206_v43 = vmul.f32 %v2814_v10, %v2204_v1 }
0x18e7   :  { %v2087_v27 = vpop.permute.xlu1 %2086 }
0x18e8   :  { %v2214_v3 = vpop.permute.xlu0 %2213  ;;  %v2089_v9 = vadd.f32 %v2087_v27, %v2079_v0 }
0x18e9   :  { %v2216_v44 = vadd.f32 %v2214_v3, %v2206_v43 }
0x18ea   :  { %2815 = vtanh.f32 %v2089_v9  ;;  %v2105_v41 = vsel %vm324_vm7, %v2089_v9, %v2077_v25 }
0x18eb   :  { %2817 = vtanh.f32 %v2216_v44 }
0x18f7   :  { %v2816_v28 = vpop.eup %2815 }
0x18f8   :  { %v2818_v29 = vpop.eup %2817  ;;  %2092 = vrot.lane.b32.xlu1 %v2816_v28, %s2906_s24 }
0x18f9   :  { %2219 = vrot.lane.b32.xlu0 %v2818_v29, %s2906_s24 }
0x18fc   :  { %2096 = vrot.lane.b32.xlu1 %v3466_v18, %s2917_s1  ;;  %v620_v18 = vsel %vm604_vm11, %v3114_v24, 0.0  ;;  %v1180_v24 = vsel %vm1164_vm9, %v3260_v17, 0.0  ;;  %v1710_v17 = vsel %vm750_vm14, %v3389_v26, 0.0 }
0x18fd   :  { %2223 = vrot.lane.b32.xlu0 %v3468_v21, %s2917_s1  ;;  %v2232_v21 = vsel %vm190_vm6, %v2216_v44, %v2204_v1 }
0x1900   :  { %342 = vrot.lane.b32.xlu1 %v206_v30, %s2916_s18 }
0x1901   :  { %347 = vrot.lane.b32.xlu0 %v340_v32, %s2906_s24 }
0x1904   :  { %622 = vrot.lane.b32.xlu1 %v486_v33, %s2916_s18 }
0x1905   :  { %628 = vrot.lane.b32.xlu0 %v620_v18, %s2906_s24 }
0x1908   :  { %902 = vrot.lane.b32.xlu1 %v766_v2, %s2916_s18 }
0x1909   :  { %908 = vrot.lane.b32.xlu0 %v900_v6, %s2906_s24 }
0x190c   :  { %1182 = vrot.lane.b32.xlu1 %v1046_v23, %s2916_s18 }
0x190d   :  { %1188 = vrot.lane.b32.xlu0 %v1180_v24, %s2906_s24 }
0x1910   :  { %1448 = vrot.lane.b32.xlu1 %v1319_v48, %s2916_s18 }
0x1911   :  { %1453 = vrot.lane.b32.xlu0 %v1446_v49, %s2906_s24 }
0x1914   :  { %1712 = vrot.lane.b32.xlu1 %v1583_v14, %s2916_s18 }
0x1915   :  { %1717 = vrot.lane.b32.xlu0 %v1710_v17, %s2906_s24 }
0x1918   :  { %1976 = vrot.lane.b32.xlu1 %v1847_v31, %s2916_s18 }
0x1919   :  { %1981 = vrot.lane.b32.xlu0 %v1974_v11, %s2906_s24 }
0x191d   :  { %2107 = vrot.lane.b32.xlu0 %v2105_v41, %s2917_s1 }
0x196a   :  { %v2093_v45 = vpop.permute.xlu1 %2092 }
0x196b   :  { %v2220_v51 = vpop.permute.xlu0 %2219  ;;  %v2095_v38 = vmul.f32 %v2812_v5, %v2093_v45 }
0x196c   :  { %v2222_v4 = vmul.f32 %v2814_v10, %v2220_v51 }
0x196d   :  { %v2111_v16 = vsel %vm324_vm7, %v2095_v38, 0.0 }
0x196e   :  { %v2238_v15 = vsel %vm190_vm6, %v2222_v4, 0.0  ;;  %2240 = vrot.lane.b32.xlu1 %v2111_v16, %s2916_s18  ;;  %v2097_v26 = vpop.permute.xlu1 %2096 }
0x196f   :  { %v2224_v56 = vpop.permute.xlu0 %2223  ;;  %2245 = vrot.lane.b32.xlu0 %v2238_v15, %s2906_s24  ;;  %v2099_v57 = vsel %vm324_vm7, %v2095_v38, %v2097_v26  ;;  %s2879_s24 = scalar_lea.vmem %s2255_s5, 1024 }
0x1970   :  { %v2226_v40 = vsel %vm190_vm6, %v2222_v4, %v2224_v56  ;;  %p2880_p1 = scmp.ne.s32.totalorder %s2255_s5, %s2879_s24  ;;  %p2885_p3 = scmp.lt.s32.totalorder %s2879_s24, %s2879_s24 }
0x1972   :  { %2101 = vrot.lane.b32.xlu1 %v2099_v57, %s2916_s18  ;;  %v343_v34 = vpop.permute.xlu1 %342  ;;  %p2886_p4 = por %p2885_p3, %p2884_p2 }
0x1973   :  { %v348_v37 = vpop.permute.xlu0 %347  ;;  %2234 = vrot.lane.b32.xlu0 %v2232_v21, %s2917_s1  ;;  %345 = vst.msk [vmem:[#allocation12] sm:$0xff] %vm66_vm0, %v343_v34 }
0x1974   :  { %352 = vst.msk [vmem:[#allocation12 + $0x38] sm:$0xff] %vm351_vm1, %v348_v37  ;;  %p2887_p5 = pnand %p2886_p4, %p2880_p1 }
0x1976   :  { %2228 = vrot.lane.b32.xlu1 %v2226_v40, %s2916_s18  ;;  %v623_v61 = vpop.permute.xlu1 %622 }
0x1977   :  { %v629_v46 = vpop.permute.xlu0 %628  ;;  %626 = vst.msk [vmem:[#allocation12 + $0x8] sm:$0xff] %vm66_vm0, %v623_v61 }
0x1978   :  { %632 = vst.msk [vmem:[#allocation12 + $0x30] sm:$0xff] %vm351_vm1, %v629_v46 }
0x197a   :  { %v903_v47 = vpop.permute.xlu1 %902 }
0x197b   :  { %v909_v50 = vpop.permute.xlu0 %908  ;;  %906 = vst.msk [vmem:[#allocation12 + $0x10] sm:$0xff] %vm66_vm0, %v903_v47 }
0x197c   :  { %912 = vst.msk [vmem:[#allocation12 + $0x28] sm:$0xff] %vm351_vm1, %v909_v50 }
0x197e   :  { %v1183_v39 = vpop.permute.xlu1 %1182 }
0x197f   :  { %v1189_v52 = vpop.permute.xlu0 %1188  ;;  %1186 = vst.msk [vmem:[#allocation12 + $0x18] sm:$0xff] %vm66_vm0, %v1183_v39 }
0x1980   :  { %1192 = vst.msk [vmem:[#allocation12 + $0x20] sm:$0xff] %vm351_vm1, %v1189_v52 }
0x1982   :  { %v1449_v62 = vpop.permute.xlu1 %1448 }
0x1983   :  { %v1454_v53 = vpop.permute.xlu0 %1453  ;;  %1451 = vst.msk [vmem:[#allocation12 + $0x20] sm:$0xff] %vm66_vm0, %v1449_v62 }
0x1984   :  { %1456 = vst.msk [vmem:[#allocation12 + $0x18] sm:$0xff] %vm351_vm1, %v1454_v53 }
0x1986   :  { %v1713_v54 = vpop.permute.xlu1 %1712 }
0x1987   :  { %v1718_v35 = vpop.permute.xlu0 %1717  ;;  %1715 = vst.msk [vmem:[#allocation12 + $0x28] sm:$0xff] %vm66_vm0, %v1713_v54 }
0x1988   :  { %1720 = vst.msk [vmem:[#allocation12 + $0x10] sm:$0xff] %vm351_vm1, %v1718_v35 }
0x198a   :  { %v1977_v36 = vpop.permute.xlu1 %1976 }
0x198b   :  { %v1982_v55 = vpop.permute.xlu0 %1981  ;;  %1979 = vst.msk [vmem:[#allocation12 + $0x30] sm:$0xff] %vm66_vm0, %v1977_v36 }
0x198c   :  { %1984 = vst.msk [vmem:[#allocation12 + $0x8] sm:$0xff] %vm351_vm1, %v1982_v55 }
0x198f   :  { %v2108_v58 = vpop.permute.xlu0 %2107 }
0x1990   :  { %2110 = vst.msk [vmem:[#allocation3] sm:$0xff] %vm66_vm0, %v2108_v58 }
0x19e0   :  { %v2241_v59 = vpop.permute.xlu1 %2240 }
0x19e1   :  { %v2246_v7 = vpop.permute.xlu0 %2245  ;;  %2243 = vst.msk [vmem:[#allocation12 + $0x38] sm:$0xff] %vm66_vm0, %v2241_v59 }
0x19e2   :  { %2248 = vst.msk [vmem:[#allocation12] sm:$0xff] %vm351_vm1, %v2246_v7 }
0x19e3   :  { %2890 = shalt.err (!%p2887_p5)
}
0x19e4   :  { %2260 = dma.vmem_to_hbm [thread:$0]  %s2255_s5, 1024, %s3601_s6, [#allocation8], %s2909_s7, %s2909_s7, %s2910_s8   ;;  %v2102_v8 = vpop.permute.xlu1 %2101 }
0x19e5   :  { %v2235_v60 = vpop.permute.xlu0 %2234  ;;  %2104 = vst.msk [vmem:[#allocation2] sm:$0xff] %vm66_vm0, %v2102_v8 }
0x19e6   :  { %2237 = vst.msk [vmem:[#allocation5] sm:$0xff] %vm66_vm0, %v2235_v60 }
0x19e8   :  { %v2229_v63 = vpop.permute.xlu1 %2228 }
0x19e9   :  { %2231 = vst.msk [vmem:[#allocation4] sm:$0xff] %vm66_vm0, %v2229_v63 }
0x19ea   :  { %2903 = dma.done.wait [#allocation8], 1024  }
0x19eb   :  { %2904 = vsyncadd [#allocation8], 4294966272 }
0x19ec   :  { %2264 = vsyncpa [#allocation7], 1 }
0x19ed   :  { %2265 = vsyncpa [#allocation10], 1 }
0x19ee   :  { %2266 = vsyncpa [#allocation8], 1 }

</bundles_post_ra>
